<compile_context>
chip_gen: v5e
topology: v5e:2x2
jax: 0.10.0
libtpu: 0.0.40
codegen_flags: <defaults>
</compile_context>

<pallas_src>
import functools

import jax
import jax.numpy as jnp
from jax.experimental import pallas as pl
from jax.experimental.pallas import tpu as pltpu


# ----------------------------------------------------------------------------
# small helpers
# ----------------------------------------------------------------------------
def _round_up(a, b):
    return -(-a // b) * b


def _pick_vmem_limit_bytes():
    """~3/4 of physical VMEM, capped at 100 MiB (=> ~96 MiB v5e/v6e, ~48 MiB v7x)."""
    default_cap = 64 * 1024 * 1024
    try:
        cap = int(getattr(pltpu.get_tpu_info(), "vmem_capacity_bytes", default_cap))
    except Exception:   # conservative fallback if the query is unavailable
        cap = default_cap
    return max(32 * 1024 * 1024, min(cap * 3 // 4, 100 * 1024 * 1024))


def _est_block_vmem_bytes(Sh, W, Wp, Ch, Cx, K, p):
    """Rough per-grid-step VMEM use, accounting for (8,128) tile (lane) padding."""
    E = Sh + 2 * p
    EW, ShW = E * W, Sh * W
    r8 = lambda v: _round_up(v, 8)
    r128 = lambda v: _round_up(v, 128)
    cols = K * K * (Ch + Cx)
    bf, f32 = 2, 4
    io = ((Sh + 4 * p) * r8(Wp) * r128(Ch) * bf          # padded h strip (bf16)
          + (Sh + 4 * p) * r8(Wp) * r128(Cx) * bf        # padded x strip (bf16)
          + r8(ShW) * r128(Ch) * f32                     # h (blend input)
          + r8(EW) * r128(3 * Ch) * f32                  # context (+bias)
          + r8(ShW) * r128(Ch) * f32)                    # output
    w = r8(cols) * r128(3 * Ch) * bf + r8(K * K * Ch) * r128(Ch) * bf
    scratch = r8(EW) * r128(cols) * bf                   # im2col patch scratch
    interm = 6 * r8(EW) * 128 * f32                      # acc / zr / q working set
    return 2 * (io + w) + scratch + interm               # x2: pipeline double-buffering


def _pick_strip_height(H, W, Wp, Ch, Cx, K, p, vmem_limit, max_block_rows):
    """Largest divisor of H whose strip fits the VMEM budget / row target."""
    budget = int(vmem_limit * 0.7)
    for Sh in range(H, 0, -1):
        if H % Sh:
            continue
        if max_block_rows is not None and Sh * W > max_block_rows and Sh > 1:
            continue
        if _est_block_vmem_bytes(Sh, W, Wp, Ch, Cx, K, p) <= budget:
            return Sh
    return 1


# ----------------------------------------------------------------------------
# Pallas kernel: one ContextConvGRUCell on one H-strip of one batch element
#   z  = sigmoid(conv([h, x], Wz) + bz + cz)
#   r  = sigmoid(conv([h, x], Wr) + br + cr)
#   q  = tanh   (conv([r*h, x], Wq) + bq + cq)
#   h' = h + z * (q - h)
# The conv over a channel concat is split into conv(h, .) + conv(x, .) (exactly
# equivalent) and both are fused into one contraction-stacked matmul.
# ----------------------------------------------------------------------------
def _gru_cell_kernel(hb_ref, xb_ref, h_ref, ctx_ref, w_ref, wq_ref, out_ref,
                     patch_ref, *, Sh, W, K, Ch, Cx):
    """Per-grid-step shapes:
      hb_ref   : (1, Sh+4p, W+2p, Ch)   zero-padded h strip, 2p H-halo   (bf16)
      xb_ref   : (1, Sh+4p, W+2p, Cx)   zero-padded x strip, 2p H-halo   (bf16)
      h_ref    : (1, Sh*W, Ch)          unpadded h (blend input)         (f32)
      ctx_ref  : (1, (Sh+2p)*W, 3*Ch)   context + bias [z|r|q], p H-halo (f32)
      w_ref    : (K*K*(Ch+Cx), 3*Ch)    [[Wzh Wrh 0],[Wzx Wrx Wqx]]      (bf16)
      wq_ref   : (K*K*Ch, Ch)           Wqh                              (bf16)
      out_ref  : (1, Sh*W, Ch)          next hidden state                (f32)
      patch_ref: ((Sh+2p)*W, K*K*(Ch+Cx)) VMEM im2col scratch            (bf16)

    z/r are computed on Sh+2p "extended" rows (the strip plus a p-row halo) so
    the q-gate conv, which consumes r*h, has correct r at strip boundaries.
    Out-of-image halo rows of the padded inputs/context are exactly zero, so
    their (unused) z/r values are well defined and the roll-based r*h patch
    only ever multiplies out-of-image taps against exactly-zero patch columns.
    """
    p = K // 2
    E = Sh + 2 * p                 # extended rows: strip + r halo
    EW, ShW = E * W, Sh * W
    r0 = p * W                     # flat offset of the first real output row
    nh = K * K * Ch                # width of the h part of the patch matrix

    # ---- im2col straight into the VMEM scratch (inputs are already bf16) ---
    for dy in range(K):
        for dx in range(K):
            t = dy * K + dx
            patch_ref[:, t * Ch:(t + 1) * Ch] = (
                hb_ref[0, dy:dy + E, dx:dx + W, :].reshape(EW, Ch))
            patch_ref[:, nh + t * Cx:nh + (t + 1) * Cx] = (
                xb_ref[0, dy:dy + E, dx:dx + W, :].reshape(EW, Cx))

    # ---- one fused MXU matmul for all three gates (Cout = 3*Ch) ------------
    acc = jnp.dot(patch_ref[...], w_ref[...],
                  preferred_element_type=jnp.float32) + ctx_ref[0]

    zr = jax.nn.sigmoid(acc[:, :2 * Ch])        # z|r in a single 2*Ch-lane pass
    z = zr[r0:r0 + ShW, :Ch]                    # z only needed on output rows
    r = zr[:, Ch:]                              # r needed on all extended rows

    # ---- q gate: im2col(zero_pad(r*h)) == rolled(r) * h-patch columns ------
    # Valid ONLY because the padding (halo) taps are exactly-zero columns of
    # the h patch (h was zero-padded in the wrapper): wrapped / out-of-image
    # rolled r values are always multiplied by zero.
    for dy in range(K):
        for dx in range(K):
            t = dy * K + dx
            d = (dy - p) * W + (dx - p)         # flat row offset of this tap
            rr = r if d == 0 else pltpu.roll(r, shift=(-d) % EW, axis=0)
            # TODO(synk): on v5e (no bf16 VALU) do this multiply in f32.
            patch_ref[:, t * Ch:(t + 1) * Ch] = (
                rr.astype(jnp.bfloat16) * patch_ref[:, t * Ch:(t + 1) * Ch])

    q = jnp.tanh(
        jnp.dot(patch_ref[:, :nh], wq_ref[...],
                preferred_element_type=jnp.float32)[r0:r0 + ShW]
        + acc[r0:r0 + ShW, 2 * Ch:])

    h_prev = h_ref[0]                           # (Sh*W, Ch) f32
    # TODO(synk): a lane-dense (1, Sh, W*Ch) store would unmask the Ch=32-wide
    # vst, but needs an in-kernel sublane->lane merge; kept the proven layout.
    out_ref[...] = (h_prev + z * (q - h_prev)).reshape(1, ShW, Ch).astype(out_ref.dtype)


def context_conv_gru_cell(h, x, cz, cr, cq, params, kernel_size, *,
                          max_block_rows=4096):
    """h, x, cz, cr, cq: NHWC float32.  Returns the next hidden state, NHWC."""
    N, H, W, Ch = h.shape
    Cx = x.shape[-1]
    K = kernel_size
    p = K // 2
    Wp = W + 2 * p
    (wzh, wzx, bz), (wrh, wrx, br), (wqh, wqx, bq) = params

    vmem_limit = _pick_vmem_limit_bytes()
    Sh = _pick_strip_height(H, W, Wp, Ch, Cx, K, p, vmem_limit, max_block_rows)
    S = H // Sh                      # number of H-strips
    E = Sh + 2 * p
    EW, ShW = E * W, Sh * W
    NS = N * S
    cols = K * K * (Ch + Cx)

    def strips(a_pad, halo):
        # (N, H + 2*halo, ., .) -> (N, S, Sh + 2*halo, ., .) with overlapping halos
        if S == 1:
            return a_pad[:, None]
        return jnp.stack(
            [a_pad[:, s * Sh:s * Sh + Sh + 2 * halo] for s in range(S)], axis=1)

    # Zero-padded (2p in H so the r-halo rows can be convolved too, p in W),
    # cast to bf16 ONCE here (they only feed the MXU).
    h_pad2 = jnp.pad(h, ((0, 0), (2 * p, 2 * p), (p, p), (0, 0))).astype(jnp.bfloat16)
    x_pad2 = jnp.pad(x, ((0, 0), (2 * p, 2 * p), (p, p), (0, 0))).astype(jnp.bfloat16)
    h_blk = strips(h_pad2, 2 * p).reshape(NS, Sh + 4 * p, Wp, Ch)
    x_blk = strips(x_pad2, 2 * p).reshape(NS, Sh + 4 * p, Wp, Cx)

    # Context with the per-gate bias folded in, ordered [z|r|q], p-row H-halo.
    bb = lambda b: b.reshape(1, 1, 1, Ch)
    ctx = jnp.concatenate([cz + bb(bz), cr + bb(br), cq + bb(bq)], axis=-1)
    ctx_pad = jnp.pad(ctx, ((0, 0), (p, p), (0, 0), (0, 0)))
    ctx_blk = strips(ctx_pad, p).reshape(NS, EW, 3 * Ch)

    h_flat = h.reshape(NS, ShW, Ch)   # f32: keeps the (1-z)h blend full precision

    # Gate-fused, im2col-flattened, contraction-stacked bf16 weights
    # (rows ordered (dy, dx, cin); h rows first, then x rows; h->q block = 0).
    wh_zr = jnp.concatenate([wzh, wrh], axis=-1).reshape(K * K * Ch, 2 * Ch)
    wh_all = jnp.concatenate([wh_zr, jnp.zeros((K * K * Ch, Ch), wh_zr.dtype)], axis=-1)
    wx_all = jnp.concatenate([wzx, wrx, wqx], axis=-1).reshape(K * K * Cx, 3 * Ch)
    w_all = jnp.concatenate([wh_all, wx_all], axis=0).astype(jnp.bfloat16)
    wq = wqh.reshape(K * K * Ch, Ch).astype(jnp.bfloat16)

    grid_spec = pltpu.PrefetchScalarGridSpec(
        num_scalar_prefetch=0,
        grid=(NS,),
        in_specs=[
            pl.BlockSpec((1, Sh + 4 * p, Wp, Ch), lambda i: (i, 0, 0, 0)),
            pl.BlockSpec((1, Sh + 4 * p, Wp, Cx), lambda i: (i, 0, 0, 0)),
            pl.BlockSpec((1, ShW, Ch), lambda i: (i, 0, 0)),
            pl.BlockSpec((1, EW, 3 * Ch), lambda i: (i, 0, 0)),
            pl.BlockSpec((cols, 3 * Ch), lambda i: (0, 0)),      # resident weights
            pl.BlockSpec((K * K * Ch, Ch), lambda i: (0, 0)),
        ],
        out_specs=pl.BlockSpec((1, ShW, Ch), lambda i: (i, 0, 0)),
        scratch_shapes=[pltpu.VMEM((EW, cols), jnp.bfloat16)],   # im2col scratch
    )
    # TODO(synk): if strip DMA is still exposed on v6e, try
    # pipeline_mode=pl.Buffered(3) on the two padded-input specs.
    kernel = functools.partial(_gru_cell_kernel, Sh=Sh, W=W, K=K, Ch=Ch, Cx=Cx)
    out = pl.pallas_call(
        kernel,
        out_shape=jax.ShapeDtypeStruct((NS, ShW, Ch), h.dtype),
        grid_spec=grid_spec,
        compiler_params=pltpu.CompilerParams(
            dimension_semantics=("parallel",),
            vmem_limit_bytes=vmem_limit),
    )(h_blk, x_blk, h_flat, ctx_blk, w_all, wq)
    return out.reshape(N, H, W, Ch)


# ----------------------------------------------------------------------------
# Cross-scale glue (plain JAX): spatial_2d_maxpool_as / Spatial2DInterpolAs
# ----------------------------------------------------------------------------
def _maxpool_as(src, ref):
    # NCHW adaptive max-pool of `src` down to `ref`'s spatial size
    # (integer downscale factor, as in the coarse-to-fine pyramid).
    N, C, Hs, Ws = src.shape
    Hr, Wr = ref.shape[-2:]
    fh, fw = Hs // Hr, Ws // Wr
    assert fh * Hr == Hs and fw * Wr == Ws
    return jnp.max(src.reshape(N, C, Hr, fh, Wr, fw), axis=(3, 5))


def _upsample_as(src, ref):
    # Bilinear resize to ref's spatial size, half-pixel centers
    # (== F.interpolate(mode='bilinear', align_corners=False)).
    # TODO(synk): verify exact edge-weight parity with torch F.interpolate;
    # this is plain-JAX data movement, not the kernel hot path.
    N, C, _, _ = src.shape
    Hr, Wr = ref.shape[-2:]
    return jax.image.resize(src, (N, C, Hr, Wr), method='bilinear')


def _cross_input(idx, hd_states, x, num_stacked):
    h = hd_states[idx]
    if idx == 0:
        return _maxpool_as(hd_states[idx + 1], h)
    elif idx == num_stacked - 1:
        up = _upsample_as(hd_states[idx - 1], h)
        return jnp.concatenate([x, up], axis=1)
    else:
        down = _maxpool_as(hd_states[idx + 1], h)
        up = _upsample_as(hd_states[idx - 1], h)
        return jnp.concatenate([down, up], axis=1)


def _forward_impl(hd_states, x, contexts, params, kernel_size, cell_fn):
    """hd_states: list (coarse->fine) of NCHW; x: NCHW (finest scale);
    contexts: list of (cz, cr, cq) NCHW tuples."""
    num = len(hd_states)
    t_in = lambda a: jnp.transpose(a, (0, 2, 3, 1))   # NCHW -> NHWC
    t_out = lambda a: jnp.transpose(a, (0, 3, 1, 2))  # NHWC -> NCHW
    next_states = []
    for idx in range(num):
        h = hd_states[idx]
        inp = _cross_input(idx, hd_states, x, num)
        cz, cr, cq = contexts[idx]
        o = cell_fn(t_in(h), t_in(inp), t_in(cz), t_in(cr), t_in(cq),
                    params[idx], kernel_size)
        next_states.append(t_out(o))
    return next_states


def cross_stacked_context_gru(hd_states, x, contexts, params, kernel_size):
    return _forward_impl(hd_states, x, contexts, params, kernel_size,
                         context_conv_gru_cell)


# ----------------------------------------------------------------------------
# Pure-JAX reference (for validation of the Pallas cell)
# ----------------------------------------------------------------------------
def _reference_cell(h, x, cz, cr, cq, params, kernel_size):
    (wzh, wzx, bz), (wrh, wrx, br), (wqh, wqx, bq) = params

    def conv2d(inp, w):
        return jax.lax.conv_general_dilated(
            inp, w, window_strides=(1, 1), padding='SAME',
            dimension_numbers=('NHWC', 'HWIO', 'NHWC'))

    bb = lambda b: b.reshape(1, 1, 1, -1)
    z = jax.nn.sigmoid(conv2d(h, wzh) + conv2d(x, wzx) + bb(bz) + cz)
    r = jax.nn.sigmoid(conv2d(h, wrh) + conv2d(x, wrx) + bb(br) + cr)
    q = jnp.tanh(conv2d(r * h, wqh) + conv2d(x, wqx) + bb(bq) + cq)
    return (1.0 - z) * h + z * q


def reference_forward(hd_states, x, contexts, params, kernel_size):
    return _forward_impl(hd_states, x, contexts, params, kernel_size,
                         _reference_cell)


# ----------------------------------------------------------------------------
# Deterministic parameter construction
# ----------------------------------------------------------------------------
def make_cell_params(key, ch_h, ch_x, K):
    ks = jax.random.split(key, 9)

    def w(k_, cin):
        fan_in = cin * K * K
        return jax.random.normal(k_, (K, K, cin, ch_h), jnp.float32) / jnp.sqrt(fan_in)

    def b(k_):
        return 0.01 * jax.random.normal(k_, (1, ch_h), jnp.float32)

    return (
        (w(ks[0], ch_h), w(ks[1], ch_x), b(ks[2])),   # z gate: (W_h, W_x, b)
        (w(ks[3], ch_h), w(ks[4], ch_x), b(ks[5])),   # r gate
        (w(ks[6], ch_h), w(ks[7], ch_x), b(ks[8])),   # q gate
    )


if __name__ == "__main__":
    key = jax.random.PRNGKey(0)
    N = 2
    K = 3                            # conv kernel size
    input_dim = 16                   # channels of x (finest-scale features)
    hidden_dims = [32, 32, 32]       # coarse -> fine
    spatial = [(8, 8), (16, 16), (32, 32)]   # coarse -> fine

    keys = jax.random.split(key, 16)
    hd_states = [
        jax.random.normal(keys[i], (N, hidden_dims[i], *spatial[i]), jnp.float32)
        for i in range(3)
    ]
    x = jax.random.normal(keys[3], (N, input_dim, *spatial[-1]), jnp.float32)

    contexts = []
    for i in range(3):
        cz = jax.random.normal(keys[4 + 3 * i], (N, hidden_dims[i], *spatial[i]), jnp.float32)
        cr = jax.random.normal(keys[5 + 3 * i], (N, hidden_dims[i], *spatial[i]), jnp.float32)
        cq = jax.random.normal(keys[6 + 3 * i], (N, hidden_dims[i], *spatial[i]), jnp.float32)
        contexts.append((cz, cr, cq))

    # Per-cell input channel counts of the cross-connected input
    # (note: the original torch code's `input_dim[idx+1]` for the middle cell
    #  is taken to mean hidden_dims[idx+1], as the forward pass implies).
    in_ch = [
        hidden_dims[1],                      # idx 0: maxpool(hd[1])
        hidden_dims[2] + hidden_dims[0],     # idx 1: cat(maxpool(hd[2]), up(hd[0]))
        input_dim + hidden_dims[1],          # idx 2: cat(x, up(hd[1]))
    ]
    pkeys = jax.random.split(keys[13], 3)
    params = [make_cell_params(pkeys[i], hidden_dims[i], in_ch[i], K) for i in range(3)]

    outs = cross_stacked_context_gru(hd_states, x, contexts, params, K)
    outs = [jax.block_until_ready(o) for o in outs]

    refs = reference_forward(hd_states, x, contexts, params, K)
    for o, r in zip(outs, refs):
        assert o.shape == r.shape and o.dtype == r.dtype
        # Tolerance accounts for the bf16 conv operands (f32 accumulation) in
        # the Pallas kernel vs the fully-f32 XLA reference.
        if not jnp.allclose(o, r, atol=5e-2, rtol=5e-2):
            err = float(jnp.max(jnp.abs(o - r)))
            raise AssertionError(
                f"Pallas kernel disagrees with JAX reference (max abs err {err})")

    # Extra check: force multi-strip tiling (4 H-strips) on the finest cell to
    # validate the halo/strip path that v7x relies on at production sizes.
    t_in = lambda a: jnp.transpose(a, (0, 2, 3, 1))
    inp2 = _cross_input(2, hd_states, x, 3)
    cz2, cr2, cq2 = contexts[2]
    o_strip = context_conv_gru_cell(t_in(hd_states[2]), t_in(inp2), t_in(cz2),
                                    t_in(cr2), t_in(cq2), params[2], K,
                                    max_block_rows=256)
    o_strip = jax.block_until_ready(o_strip)
    r_strip = _reference_cell(t_in(hd_states[2]), t_in(inp2), t_in(cz2),
                              t_in(cr2), t_in(cq2), params[2], K)
    if not jnp.allclose(o_strip, r_strip, atol=5e-2, rtol=5e-2):
        err = float(jnp.max(jnp.abs(o_strip - r_strip)))
        raise AssertionError(
            f"Strip-tiled Pallas kernel disagrees with reference (max abs err {err})")

    print("KERNEL_OK")
</pallas_src>

<mosaic_0001>
module attributes {stable_mosaic.version = 11 : i64} {
  func.func @_gru_cell_kernel(%arg0: i32, %arg1: memref<1x12x10x32xbf16, #tpu.memory_space<vmem>>, %arg2: memref<1x12x10x32xbf16, #tpu.memory_space<vmem>>, %arg3: memref<1x64x32xf32, #tpu.memory_space<vmem>>, %arg4: memref<1x80x96xf32, #tpu.memory_space<vmem>>, %arg5: memref<576x96xbf16, #tpu.memory_space<vmem>>, %arg6: memref<288x32xbf16, #tpu.memory_space<vmem>>, %arg7: memref<1x64x32xf32, #tpu.memory_space<vmem>>, %arg8: memref<80x576xbf16, #tpu.memory_space<vmem>>) attributes {dimension_semantics = [#tpu.dimension_semantics<parallel>], iteration_bounds = array<i64: 2>, scalar_prefetch = 0 : i64, scratch_operands = 1 : i64, tpu.core_type = #tpu.core_type<tc>, window_params = [{transform_indices = @transform_0, window_bounds = array<i64: 1, 12, 10, 32>}, {transform_indices = @transform_1, window_bounds = array<i64: 1, 12, 10, 32>}, {transform_indices = @transform_2, window_bounds = array<i64: 1, 64, 32>}, {transform_indices = @transform_3, window_bounds = array<i64: 1, 80, 96>}, {pipeline_mode = #tpu.pipeline_mode<synchronous>, transform_indices = @transform_4, window_bounds = array<i64: 576, 96>}, {pipeline_mode = #tpu.pipeline_mode<synchronous>, transform_indices = @transform_5, window_bounds = array<i64: 288, 32>}, {transform_indices = @transform_6, window_bounds = array<i64: 1, 64, 32>}]} {
    %c0 = arith.constant 0 : index
    %c0_0 = arith.constant 0 : index
    %c0_1 = arith.constant 0 : index
    %c0_2 = arith.constant 0 : index
    %0 = vector.load %arg1[%c0, %c0_0, %c0_1, %c0_2] : memref<1x12x10x32xbf16, #tpu.memory_space<vmem>>, vector<1x10x8x32xbf16>
    %1 = vector.shape_cast %0 : vector<1x10x8x32xbf16> to vector<10x8x32xbf16>
    %2 = vector.shape_cast %1 : vector<10x8x32xbf16> to vector<80x32xbf16>
    %c0_3 = arith.constant 0 : index
    %c0_4 = arith.constant 0 : index
    %3 = vector.load %arg8[%c0_3, %c0_4] : memref<80x576xbf16, #tpu.memory_space<vmem>>, vector<80x32xbf16>
    tpu.vector_store %arg8[%c0_3, %c0_4], %2 {strides = array<i32>} : memref<80x576xbf16, #tpu.memory_space<vmem>>, vector<80x32xbf16>,
    %c0_5 = arith.constant 0 : index
    %c0_6 = arith.constant 0 : index
    %c0_7 = arith.constant 0 : index
    %c0_8 = arith.constant 0 : index
    %4 = vector.load %arg2[%c0_5, %c0_6, %c0_7, %c0_8] : memref<1x12x10x32xbf16, #tpu.memory_space<vmem>>, vector<1x10x8x32xbf16>
    %5 = vector.shape_cast %4 : vector<1x10x8x32xbf16> to vector<10x8x32xbf16>
    %6 = vector.shape_cast %5 : vector<10x8x32xbf16> to vector<80x32xbf16>
    %c0_9 = arith.constant 0 : index
    %c288 = arith.constant 288 : index
    %7 = vector.load %arg8[%c0_9, %c288] : memref<80x576xbf16, #tpu.memory_space<vmem>>, vector<80x32xbf16>
    tpu.vector_store %arg8[%c0_9, %c288], %6 {strides = array<i32>} : memref<80x576xbf16, #tpu.memory_space<vmem>>, vector<80x32xbf16>,
    %c0_10 = arith.constant 0 : index
    %c0_11 = arith.constant 0 : index
    %c1 = arith.constant 1 : index
    %c0_12 = arith.constant 0 : index
    %8 = vector.load %arg1[%c0_10, %c0_11, %c1, %c0_12] : memref<1x12x10x32xbf16, #tpu.memory_space<vmem>>, vector<1x10x8x32xbf16>
    %9 = vector.shape_cast %8 : vector<1x10x8x32xbf16> to vector<10x8x32xbf16>
    %10 = vector.shape_cast %9 : vector<10x8x32xbf16> to vector<80x32xbf16>
    %c0_13 = arith.constant 0 : index
    %c32 = arith.constant 32 : index
    %11 = vector.load %arg8[%c0_13, %c32] : memref<80x576xbf16, #tpu.memory_space<vmem>>, vector<80x32xbf16>
    tpu.vector_store %arg8[%c0_13, %c32], %10 {strides = array<i32>} : memref<80x576xbf16, #tpu.memory_space<vmem>>, vector<80x32xbf16>,
    %c0_14 = arith.constant 0 : index
    %c0_15 = arith.constant 0 : index
    %c1_16 = arith.constant 1 : index
    %c0_17 = arith.constant 0 : index
    %12 = vector.load %arg2[%c0_14, %c0_15, %c1_16, %c0_17] : memref<1x12x10x32xbf16, #tpu.memory_space<vmem>>, vector<1x10x8x32xbf16>
    %13 = vector.shape_cast %12 : vector<1x10x8x32xbf16> to vector<10x8x32xbf16>
    %14 = vector.shape_cast %13 : vector<10x8x32xbf16> to vector<80x32xbf16>
    %c0_18 = arith.constant 0 : index
    %c320 = arith.constant 320 : index
    %15 = vector.load %arg8[%c0_18, %c320] : memref<80x576xbf16, #tpu.memory_space<vmem>>, vector<80x32xbf16>
    tpu.vector_store %arg8[%c0_18, %c320], %14 {strides = array<i32>} : memref<80x576xbf16, #tpu.memory_space<vmem>>, vector<80x32xbf16>,
    %c0_19 = arith.constant 0 : index
    %c0_20 = arith.constant 0 : index
    %c2 = arith.constant 2 : index
    %c0_21 = arith.constant 0 : index
    %16 = vector.load %arg1[%c0_19, %c0_20, %c2, %c0_21] : memref<1x12x10x32xbf16, #tpu.memory_space<vmem>>, vector<1x10x8x32xbf16>
    %17 = vector.shape_cast %16 : vector<1x10x8x32xbf16> to vector<10x8x32xbf16>
    %18 = vector.shape_cast %17 : vector<10x8x32xbf16> to vector<80x32xbf16>
    %c0_22 = arith.constant 0 : index
    %c64 = arith.constant 64 : index
    %19 = vector.load %arg8[%c0_22, %c64] : memref<80x576xbf16, #tpu.memory_space<vmem>>, vector<80x32xbf16>
    tpu.vector_store %arg8[%c0_22, %c64], %18 {strides = array<i32>} : memref<80x576xbf16, #tpu.memory_space<vmem>>, vector<80x32xbf16>,
    %c0_23 = arith.constant 0 : index
    %c0_24 = arith.constant 0 : index
    %c2_25 = arith.constant 2 : index
    %c0_26 = arith.constant 0 : index
    %20 = vector.load %arg2[%c0_23, %c0_24, %c2_25, %c0_26] : memref<1x12x10x32xbf16, #tpu.memory_space<vmem>>, vector<1x10x8x32xbf16>
    %21 = vector.shape_cast %20 : vector<1x10x8x32xbf16> to vector<10x8x32xbf16>
    %22 = vector.shape_cast %21 : vector<10x8x32xbf16> to vector<80x32xbf16>
    %c0_27 = arith.constant 0 : index
    %c352 = arith.constant 352 : index
    %23 = vector.load %arg8[%c0_27, %c352] : memref<80x576xbf16, #tpu.memory_space<vmem>>, vector<80x32xbf16>
    tpu.vector_store %arg8[%c0_27, %c352], %22 {strides = array<i32>} : memref<80x576xbf16, #tpu.memory_space<vmem>>, vector<80x32xbf16>,
    %c0_28 = arith.constant 0 : index
    %c1_29 = arith.constant 1 : index
    %c0_30 = arith.constant 0 : index
    %c0_31 = arith.constant 0 : index
    %24 = vector.load %arg1[%c0_28, %c1_29, %c0_30, %c0_31] : memref<1x12x10x32xbf16, #tpu.memory_space<vmem>>, vector<1x10x8x32xbf16>
    %25 = vector.shape_cast %24 : vector<1x10x8x32xbf16> to vector<10x8x32xbf16>
    %26 = vector.shape_cast %25 : vector<10x8x32xbf16> to vector<80x32xbf16>
    %c0_32 = arith.constant 0 : index
    %c96 = arith.constant 96 : index
    %27 = vector.load %arg8[%c0_32, %c96] : memref<80x576xbf16, #tpu.memory_space<vmem>>, vector<80x32xbf16>
    tpu.vector_store %arg8[%c0_32, %c96], %26 {strides = array<i32>} : memref<80x576xbf16, #tpu.memory_space<vmem>>, vector<80x32xbf16>,
    %c0_33 = arith.constant 0 : index
    %c1_34 = arith.constant 1 : index
    %c0_35 = arith.constant 0 : index
    %c0_36 = arith.constant 0 : index
    %28 = vector.load %arg2[%c0_33, %c1_34, %c0_35, %c0_36] : memref<1x12x10x32xbf16, #tpu.memory_space<vmem>>, vector<1x10x8x32xbf16>
    %29 = vector.shape_cast %28 : vector<1x10x8x32xbf16> to vector<10x8x32xbf16>
    %30 = vector.shape_cast %29 : vector<10x8x32xbf16> to vector<80x32xbf16>
    %c0_37 = arith.constant 0 : index
    %c384 = arith.constant 384 : index
    %31 = vector.load %arg8[%c0_37, %c384] : memref<80x576xbf16, #tpu.memory_space<vmem>>, vector<80x32xbf16>
    tpu.vector_store %arg8[%c0_37, %c384], %30 {strides = array<i32>} : memref<80x576xbf16, #tpu.memory_space<vmem>>, vector<80x32xbf16>,
    %c0_38 = arith.constant 0 : index
    %c1_39 = arith.constant 1 : index
    %c1_40 = arith.constant 1 : index
    %c0_41 = arith.constant 0 : index
    %32 = vector.load %arg1[%c0_38, %c1_39, %c1_40, %c0_41] : memref<1x12x10x32xbf16, #tpu.memory_space<vmem>>, vector<1x10x8x32xbf16>
    %33 = vector.shape_cast %32 : vector<1x10x8x32xbf16> to vector<10x8x32xbf16>
    %34 = vector.shape_cast %33 : vector<10x8x32xbf16> to vector<80x32xbf16>
    %c0_42 = arith.constant 0 : index
    %c128 = arith.constant 128 : index
    %35 = vector.load %arg8[%c0_42, %c128] : memref<80x576xbf16, #tpu.memory_space<vmem>>, vector<80x32xbf16>
    tpu.vector_store %arg8[%c0_42, %c128], %34 {strides = array<i32>} : memref<80x576xbf16, #tpu.memory_space<vmem>>, vector<80x32xbf16>,
    %c0_43 = arith.constant 0 : index
    %c1_44 = arith.constant 1 : index
    %c1_45 = arith.constant 1 : index
    %c0_46 = arith.constant 0 : index
    %36 = vector.load %arg2[%c0_43, %c1_44, %c1_45, %c0_46] : memref<1x12x10x32xbf16, #tpu.memory_space<vmem>>, vector<1x10x8x32xbf16>
    %37 = vector.shape_cast %36 : vector<1x10x8x32xbf16> to vector<10x8x32xbf16>
    %38 = vector.shape_cast %37 : vector<10x8x32xbf16> to vector<80x32xbf16>
    %c0_47 = arith.constant 0 : index
    %c416 = arith.constant 416 : index
    %39 = vector.load %arg8[%c0_47, %c416] : memref<80x576xbf16, #tpu.memory_space<vmem>>, vector<80x32xbf16>
    tpu.vector_store %arg8[%c0_47, %c416], %38 {strides = array<i32>} : memref<80x576xbf16, #tpu.memory_space<vmem>>, vector<80x32xbf16>,
    %c0_48 = arith.constant 0 : index
    %c1_49 = arith.constant 1 : index
    %c2_50 = arith.constant 2 : index
    %c0_51 = arith.constant 0 : index
    %40 = vector.load %arg1[%c0_48, %c1_49, %c2_50, %c0_51] : memref<1x12x10x32xbf16, #tpu.memory_space<vmem>>, vector<1x10x8x32xbf16>
    %41 = vector.shape_cast %40 : vector<1x10x8x32xbf16> to vector<10x8x32xbf16>
    %42 = vector.shape_cast %41 : vector<10x8x32xbf16> to vector<80x32xbf16>
    %c0_52 = arith.constant 0 : index
    %c160 = arith.constant 160 : index
    %43 = vector.load %arg8[%c0_52, %c160] : memref<80x576xbf16, #tpu.memory_space<vmem>>, vector<80x32xbf16>
    tpu.vector_store %arg8[%c0_52, %c160], %42 {strides = array<i32>} : memref<80x576xbf16, #tpu.memory_space<vmem>>, vector<80x32xbf16>,
    %c0_53 = arith.constant 0 : index
    %c1_54 = arith.constant 1 : index
    %c2_55 = arith.constant 2 : index
    %c0_56 = arith.constant 0 : index
    %44 = vector.load %arg2[%c0_53, %c1_54, %c2_55, %c0_56] : memref<1x12x10x32xbf16, #tpu.memory_space<vmem>>, vector<1x10x8x32xbf16>
    %45 = vector.shape_cast %44 : vector<1x10x8x32xbf16> to vector<10x8x32xbf16>
    %46 = vector.shape_cast %45 : vector<10x8x32xbf16> to vector<80x32xbf16>
    %c0_57 = arith.constant 0 : index
    %c448 = arith.constant 448 : index
    %47 = vector.load %arg8[%c0_57, %c448] : memref<80x576xbf16, #tpu.memory_space<vmem>>, vector<80x32xbf16>
    tpu.vector_store %arg8[%c0_57, %c448], %46 {strides = array<i32>} : memref<80x576xbf16, #tpu.memory_space<vmem>>, vector<80x32xbf16>,
    %c0_58 = arith.constant 0 : index
    %c2_59 = arith.constant 2 : index
    %c0_60 = arith.constant 0 : index
    %c0_61 = arith.constant 0 : index
    %48 = vector.load %arg1[%c0_58, %c2_59, %c0_60, %c0_61] : memref<1x12x10x32xbf16, #tpu.memory_space<vmem>>, vector<1x10x8x32xbf16>
    %49 = vector.shape_cast %48 : vector<1x10x8x32xbf16> to vector<10x8x32xbf16>
    %50 = vector.shape_cast %49 : vector<10x8x32xbf16> to vector<80x32xbf16>
    %c0_62 = arith.constant 0 : index
    %c192 = arith.constant 192 : index
    %51 = vector.load %arg8[%c0_62, %c192] : memref<80x576xbf16, #tpu.memory_space<vmem>>, vector<80x32xbf16>
    tpu.vector_store %arg8[%c0_62, %c192], %50 {strides = array<i32>} : memref<80x576xbf16, #tpu.memory_space<vmem>>, vector<80x32xbf16>,
    %c0_63 = arith.constant 0 : index
    %c2_64 = arith.constant 2 : index
    %c0_65 = arith.constant 0 : index
    %c0_66 = arith.constant 0 : index
    %52 = vector.load %arg2[%c0_63, %c2_64, %c0_65, %c0_66] : memref<1x12x10x32xbf16, #tpu.memory_space<vmem>>, vector<1x10x8x32xbf16>
    %53 = vector.shape_cast %52 : vector<1x10x8x32xbf16> to vector<10x8x32xbf16>
    %54 = vector.shape_cast %53 : vector<10x8x32xbf16> to vector<80x32xbf16>
    %c0_67 = arith.constant 0 : index
    %c480 = arith.constant 480 : index
    %55 = vector.load %arg8[%c0_67, %c480] : memref<80x576xbf16, #tpu.memory_space<vmem>>, vector<80x32xbf16>
    tpu.vector_store %arg8[%c0_67, %c480], %54 {strides = array<i32>} : memref<80x576xbf16, #tpu.memory_space<vmem>>, vector<80x32xbf16>,
    %c0_68 = arith.constant 0 : index
    %c2_69 = arith.constant 2 : index
    %c1_70 = arith.constant 1 : index
    %c0_71 = arith.constant 0 : index
    %56 = vector.load %arg1[%c0_68, %c2_69, %c1_70, %c0_71] : memref<1x12x10x32xbf16, #tpu.memory_space<vmem>>, vector<1x10x8x32xbf16>
    %57 = vector.shape_cast %56 : vector<1x10x8x32xbf16> to vector<10x8x32xbf16>
    %58 = vector.shape_cast %57 : vector<10x8x32xbf16> to vector<80x32xbf16>
    %c0_72 = arith.constant 0 : index
    %c224 = arith.constant 224 : index
    %59 = vector.load %arg8[%c0_72, %c224] : memref<80x576xbf16, #tpu.memory_space<vmem>>, vector<80x32xbf16>
    tpu.vector_store %arg8[%c0_72, %c224], %58 {strides = array<i32>} : memref<80x576xbf16, #tpu.memory_space<vmem>>, vector<80x32xbf16>,
    %c0_73 = arith.constant 0 : index
    %c2_74 = arith.constant 2 : index
    %c1_75 = arith.constant 1 : index
    %c0_76 = arith.constant 0 : index
    %60 = vector.load %arg2[%c0_73, %c2_74, %c1_75, %c0_76] : memref<1x12x10x32xbf16, #tpu.memory_space<vmem>>, vector<1x10x8x32xbf16>
    %61 = vector.shape_cast %60 : vector<1x10x8x32xbf16> to vector<10x8x32xbf16>
    %62 = vector.shape_cast %61 : vector<10x8x32xbf16> to vector<80x32xbf16>
    %c0_77 = arith.constant 0 : index
    %c512 = arith.constant 512 : index
    %63 = vector.load %arg8[%c0_77, %c512] : memref<80x576xbf16, #tpu.memory_space<vmem>>, vector<80x32xbf16>
    tpu.vector_store %arg8[%c0_77, %c512], %62 {strides = array<i32>} : memref<80x576xbf16, #tpu.memory_space<vmem>>, vector<80x32xbf16>,
    %c0_78 = arith.constant 0 : index
    %c2_79 = arith.constant 2 : index
    %c2_80 = arith.constant 2 : index
    %c0_81 = arith.constant 0 : index
    %64 = vector.load %arg1[%c0_78, %c2_79, %c2_80, %c0_81] : memref<1x12x10x32xbf16, #tpu.memory_space<vmem>>, vector<1x10x8x32xbf16>
    %65 = vector.shape_cast %64 : vector<1x10x8x32xbf16> to vector<10x8x32xbf16>
    %66 = vector.shape_cast %65 : vector<10x8x32xbf16> to vector<80x32xbf16>
    %c0_82 = arith.constant 0 : index
    %c256 = arith.constant 256 : index
    %67 = vector.load %arg8[%c0_82, %c256] : memref<80x576xbf16, #tpu.memory_space<vmem>>, vector<80x32xbf16>
    tpu.vector_store %arg8[%c0_82, %c256], %66 {strides = array<i32>} : memref<80x576xbf16, #tpu.memory_space<vmem>>, vector<80x32xbf16>,
    %c0_83 = arith.constant 0 : index
    %c2_84 = arith.constant 2 : index
    %c2_85 = arith.constant 2 : index
    %c0_86 = arith.constant 0 : index
    %68 = vector.load %arg2[%c0_83, %c2_84, %c2_85, %c0_86] : memref<1x12x10x32xbf16, #tpu.memory_space<vmem>>, vector<1x10x8x32xbf16>
    %69 = vector.shape_cast %68 : vector<1x10x8x32xbf16> to vector<10x8x32xbf16>
    %70 = vector.shape_cast %69 : vector<10x8x32xbf16> to vector<80x32xbf16>
    %c0_87 = arith.constant 0 : index
    %c544 = arith.constant 544 : index
    %71 = vector.load %arg8[%c0_87, %c544] : memref<80x576xbf16, #tpu.memory_space<vmem>>, vector<80x32xbf16>
    tpu.vector_store %arg8[%c0_87, %c544], %70 {strides = array<i32>} : memref<80x576xbf16, #tpu.memory_space<vmem>>, vector<80x32xbf16>,
    %c0_88 = arith.constant 0 : index
    %c0_89 = arith.constant 0 : index
    %72 = vector.load %arg8[%c0_88, %c0_89] : memref<80x576xbf16, #tpu.memory_space<vmem>>, vector<80x576xbf16>
    %c0_90 = arith.constant 0 : index
    %c0_91 = arith.constant 0 : index
    %73 = vector.load %arg5[%c0_90, %c0_91] : memref<576x96xbf16, #tpu.memory_space<vmem>>, vector<576x96xbf16>
    %cst = arith.constant dense<0.000000e+00> : vector<80x96xf32>
    %74 = tpu.matmul %72, %73, %cst {dimension_numbers = #tpu.dot_dimension_numbers<[1], [0], [0], [1], [0, 0, 1, 1], [], []>} : vector<80x576xbf16>, vector<576x96xbf16>, vector<80x96xf32> -> vector<80x96xf32>
    %c0_92 = arith.constant 0 : index
    %c0_93 = arith.constant 0 : index
    %c0_94 = arith.constant 0 : index
    %75 = vector.load %arg4[%c0_92, %c0_93, %c0_94] : memref<1x80x96xf32, #tpu.memory_space<vmem>>, vector<1x80x96xf32>
    %76 = vector.shape_cast %75 : vector<1x80x96xf32> to vector<80x96xf32>
    %77 = arith.addf %74, %76 : vector<80x96xf32>
    %78 = vector.extract_strided_slice %77 {offsets = [0, 0], sizes = [80, 64], strides = [1, 1]} : vector<80x96xf32> to vector<80x64xf32>
    %79 = arith.negf %78 : vector<80x64xf32>
    %80 = math.exp %79 : vector<80x64xf32>
    %cst_95 = arith.constant 1.000000e+00 : f32
    %81 = vector.broadcast %cst_95 : f32 to vector<80x64xf32>
    %82 = arith.addf %81, %80 : vector<80x64xf32>
    %83 = arith.divf %81, %82 : vector<80x64xf32>
    %84 = vector.extract_strided_slice %83 {offsets = [8, 0], sizes = [64, 32], strides = [1, 1]} : vector<80x64xf32> to vector<64x32xf32>
    %85 = vector.extract_strided_slice %83 {offsets = [0, 32], sizes = [80, 32], strides = [1, 1]} : vector<80x64xf32> to vector<80x32xf32>
    %c9_i32 = arith.constant 9 : i32
    %86 = tpu.dynamic_rotate %85 by %c9_i32 dim 0 : vector<80x32xf32>, i32 -> vector<80x32xf32>
    %87 = arith.truncf %86 : vector<80x32xf32> to vector<80x32xbf16>
    %c0_96 = arith.constant 0 : index
    %c0_97 = arith.constant 0 : index
    %88 = vector.load %arg8[%c0_96, %c0_97] : memref<80x576xbf16, #tpu.memory_space<vmem>>, vector<80x32xbf16>
    %89 = arith.mulf %87, %88 : vector<80x32xbf16>
    %c0_98 = arith.constant 0 : index
    %c0_99 = arith.constant 0 : index
    %90 = vector.load %arg8[%c0_98, %c0_99] : memref<80x576xbf16, #tpu.memory_space<vmem>>, vector<80x32xbf16>
    tpu.vector_store %arg8[%c0_98, %c0_99], %89 {strides = array<i32>} : memref<80x576xbf16, #tpu.memory_space<vmem>>, vector<80x32xbf16>,
    %c8_i32 = arith.constant 8 : i32
    %91 = tpu.dynamic_rotate %85 by %c8_i32 dim 0 : vector<80x32xf32>, i32 -> vector<80x32xf32>
    %92 = arith.truncf %91 : vector<80x32xf32> to vector<80x32xbf16>
    %c0_100 = arith.constant 0 : index
    %c32_101 = arith.constant 32 : index
    %93 = vector.load %arg8[%c0_100, %c32_101] : memref<80x576xbf16, #tpu.memory_space<vmem>>, vector<80x32xbf16>
    %94 = arith.mulf %92, %93 : vector<80x32xbf16>
    %c0_102 = arith.constant 0 : index
    %c32_103 = arith.constant 32 : index
    %95 = vector.load %arg8[%c0_102, %c32_103] : memref<80x576xbf16, #tpu.memory_space<vmem>>, vector<80x32xbf16>
    tpu.vector_store %arg8[%c0_102, %c32_103], %94 {strides = array<i32>} : memref<80x576xbf16, #tpu.memory_space<vmem>>, vector<80x32xbf16>,
    %c7_i32 = arith.constant 7 : i32
    %96 = tpu.dynamic_rotate %85 by %c7_i32 dim 0 : vector<80x32xf32>, i32 -> vector<80x32xf32>
    %97 = arith.truncf %96 : vector<80x32xf32> to vector<80x32xbf16>
    %c0_104 = arith.constant 0 : index
    %c64_105 = arith.constant 64 : index
    %98 = vector.load %arg8[%c0_104, %c64_105] : memref<80x576xbf16, #tpu.memory_space<vmem>>, vector<80x32xbf16>
    %99 = arith.mulf %97, %98 : vector<80x32xbf16>
    %c0_106 = arith.constant 0 : index
    %c64_107 = arith.constant 64 : index
    %100 = vector.load %arg8[%c0_106, %c64_107] : memref<80x576xbf16, #tpu.memory_space<vmem>>, vector<80x32xbf16>
    tpu.vector_store %arg8[%c0_106, %c64_107], %99 {strides = array<i32>} : memref<80x576xbf16, #tpu.memory_space<vmem>>, vector<80x32xbf16>,
    %c1_i32 = arith.constant 1 : i32
    %101 = tpu.dynamic_rotate %85 by %c1_i32 dim 0 : vector<80x32xf32>, i32 -> vector<80x32xf32>
    %102 = arith.truncf %101 : vector<80x32xf32> to vector<80x32xbf16>
    %c0_108 = arith.constant 0 : index
    %c96_109 = arith.constant 96 : index
    %103 = vector.load %arg8[%c0_108, %c96_109] : memref<80x576xbf16, #tpu.memory_space<vmem>>, vector<80x32xbf16>
    %104 = arith.mulf %102, %103 : vector<80x32xbf16>
    %c0_110 = arith.constant 0 : index
    %c96_111 = arith.constant 96 : index
    %105 = vector.load %arg8[%c0_110, %c96_111] : memref<80x576xbf16, #tpu.memory_space<vmem>>, vector<80x32xbf16>
    tpu.vector_store %arg8[%c0_110, %c96_111], %104 {strides = array<i32>} : memref<80x576xbf16, #tpu.memory_space<vmem>>, vector<80x32xbf16>,
    %106 = arith.truncf %85 : vector<80x32xf32> to vector<80x32xbf16>
    %c0_112 = arith.constant 0 : index
    %c128_113 = arith.constant 128 : index
    %107 = vector.load %arg8[%c0_112, %c128_113] : memref<80x576xbf16, #tpu.memory_space<vmem>>, vector<80x32xbf16>
    %108 = arith.mulf %106, %107 : vector<80x32xbf16>
    %c0_114 = arith.constant 0 : index
    %c128_115 = arith.constant 128 : index
    %109 = vector.load %arg8[%c0_114, %c128_115] : memref<80x576xbf16, #tpu.memory_space<vmem>>, vector<80x32xbf16>
    tpu.vector_store %arg8[%c0_114, %c128_115], %108 {strides = array<i32>} : memref<80x576xbf16, #tpu.memory_space<vmem>>, vector<80x32xbf16>,
    %c79_i32 = arith.constant 79 : i32
    %110 = tpu.dynamic_rotate %85 by %c79_i32 dim 0 : vector<80x32xf32>, i32 -> vector<80x32xf32>
    %111 = arith.truncf %110 : vector<80x32xf32> to vector<80x32xbf16>
    %c0_116 = arith.constant 0 : index
    %c160_117 = arith.constant 160 : index
    %112 = vector.load %arg8[%c0_116, %c160_117] : memref<80x576xbf16, #tpu.memory_space<vmem>>, vector<80x32xbf16>
    %113 = arith.mulf %111, %112 : vector<80x32xbf16>
    %c0_118 = arith.constant 0 : index
    %c160_119 = arith.constant 160 : index
    %114 = vector.load %arg8[%c0_118, %c160_119] : memref<80x576xbf16, #tpu.memory_space<vmem>>, vector<80x32xbf16>
    tpu.vector_store %arg8[%c0_118, %c160_119], %113 {strides = array<i32>} : memref<80x576xbf16, #tpu.memory_space<vmem>>, vector<80x32xbf16>,
    %c73_i32 = arith.constant 73 : i32
    %115 = tpu.dynamic_rotate %85 by %c73_i32 dim 0 : vector<80x32xf32>, i32 -> vector<80x32xf32>
    %116 = arith.truncf %115 : vector<80x32xf32> to vector<80x32xbf16>
    %c0_120 = arith.constant 0 : index
    %c192_121 = arith.constant 192 : index
    %117 = vector.load %arg8[%c0_120, %c192_121] : memref<80x576xbf16, #tpu.memory_space<vmem>>, vector<80x32xbf16>
    %118 = arith.mulf %116, %117 : vector<80x32xbf16>
    %c0_122 = arith.constant 0 : index
    %c192_123 = arith.constant 192 : index
    %119 = vector.load %arg8[%c0_122, %c192_123] : memref<80x576xbf16, #tpu.memory_space<vmem>>, vector<80x32xbf16>
    tpu.vector_store %arg8[%c0_122, %c192_123], %118 {strides = array<i32>} : memref<80x576xbf16, #tpu.memory_space<vmem>>, vector<80x32xbf16>,
    %c72_i32 = arith.constant 72 : i32
    %120 = tpu.dynamic_rotate %85 by %c72_i32 dim 0 : vector<80x32xf32>, i32 -> vector<80x32xf32>
    %121 = arith.truncf %120 : vector<80x32xf32> to vector<80x32xbf16>
    %c0_124 = arith.constant 0 : index
    %c224_125 = arith.constant 224 : index
    %122 = vector.load %arg8[%c0_124, %c224_125] : memref<80x576xbf16, #tpu.memory_space<vmem>>, vector<80x32xbf16>
    %123 = arith.mulf %121, %122 : vector<80x32xbf16>
    %c0_126 = arith.constant 0 : index
    %c224_127 = arith.constant 224 : index
    %124 = vector.load %arg8[%c0_126, %c224_127] : memref<80x576xbf16, #tpu.memory_space<vmem>>, vector<80x32xbf16>
    tpu.vector_store %arg8[%c0_126, %c224_127], %123 {strides = array<i32>} : memref<80x576xbf16, #tpu.memory_space<vmem>>, vector<80x32xbf16>,
    %c71_i32 = arith.constant 71 : i32
    %125 = tpu.dynamic_rotate %85 by %c71_i32 dim 0 : vector<80x32xf32>, i32 -> vector<80x32xf32>
    %126 = arith.truncf %125 : vector<80x32xf32> to vector<80x32xbf16>
    %c0_128 = arith.constant 0 : index
    %c256_129 = arith.constant 256 : index
    %127 = vector.load %arg8[%c0_128, %c256_129] : memref<80x576xbf16, #tpu.memory_space<vmem>>, vector<80x32xbf16>
    %128 = arith.mulf %126, %127 : vector<80x32xbf16>
    %c0_130 = arith.constant 0 : index
    %c256_131 = arith.constant 256 : index
    %129 = vector.load %arg8[%c0_130, %c256_131] : memref<80x576xbf16, #tpu.memory_space<vmem>>, vector<80x32xbf16>
    tpu.vector_store %arg8[%c0_130, %c256_131], %128 {strides = array<i32>} : memref<80x576xbf16, #tpu.memory_space<vmem>>, vector<80x32xbf16>,
    %c0_132 = arith.constant 0 : index
    %c0_133 = arith.constant 0 : index
    %130 = vector.load %arg8[%c0_132, %c0_133] : memref<80x576xbf16, #tpu.memory_space<vmem>>, vector<80x288xbf16>
    %c0_134 = arith.constant 0 : index
    %c0_135 = arith.constant 0 : index
    %131 = vector.load %arg6[%c0_134, %c0_135] : memref<288x32xbf16, #tpu.memory_space<vmem>>, vector<288x32xbf16>
    %cst_136 = arith.constant dense<0.000000e+00> : vector<80x32xf32>
    %132 = tpu.matmul %130, %131, %cst_136 {dimension_numbers = #tpu.dot_dimension_numbers<[1], [0], [0], [1], [0, 0, 1, 1], [], []>} : vector<80x288xbf16>, vector<288x32xbf16>, vector<80x32xf32> -> vector<80x32xf32>
    %133 = vector.extract_strided_slice %132 {offsets = [8, 0], sizes = [64, 32], strides = [1, 1]} : vector<80x32xf32> to vector<64x32xf32>
    %134 = vector.extract_strided_slice %77 {offsets = [8, 64], sizes = [64, 32], strides = [1, 1]} : vector<80x96xf32> to vector<64x32xf32>
    %135 = arith.addf %133, %134 : vector<64x32xf32>
    %136 = math.tanh %135 : vector<64x32xf32>
    %c0_137 = arith.constant 0 : index
    %c0_138 = arith.constant 0 : index
    %c0_139 = arith.constant 0 : index
    %137 = vector.load %arg3[%c0_137, %c0_138, %c0_139] : memref<1x64x32xf32, #tpu.memory_space<vmem>>, vector<1x64x32xf32>
    %138 = vector.shape_cast %137 : vector<1x64x32xf32> to vector<64x32xf32>
    %139 = arith.subf %136, %138 : vector<64x32xf32>
    %140 = arith.mulf %84, %139 : vector<64x32xf32>
    %141 = arith.addf %138, %140 : vector<64x32xf32>
    %142 = vector.shape_cast %141 : vector<64x32xf32> to vector<1x64x32xf32>
    %c0_140 = arith.constant 0 : index
    %c0_141 = arith.constant 0 : index
    %c0_142 = arith.constant 0 : index
    %143 = vector.load %arg7[%c0_140, %c0_141, %c0_142] : memref<1x64x32xf32, #tpu.memory_space<vmem>>, vector<1x64x32xf32>
    tpu.vector_store %arg7[%c0_140, %c0_141, %c0_142], %142 {strides = array<i32>} : memref<1x64x32xf32, #tpu.memory_space<vmem>>, vector<1x64x32xf32>,
    return
  }
  func.func @transform_0(%arg0: i32) -> (i32, i32, i32, i32) {
    %c0_i32 = arith.constant 0 : i32
    %c0_i32_0 = arith.constant 0 : i32
    %c0_i32_1 = arith.constant 0 : i32
    %c0_i32_2 = arith.constant 0 : i32
    return %arg0, %c0_i32, %c0_i32_0, %c0_i32_1 : i32, i32, i32, i32
  }
  func.func @transform_1(%arg0: i32) -> (i32, i32, i32, i32) {
    %c0_i32 = arith.constant 0 : i32
    %c0_i32_0 = arith.constant 0 : i32
    %c0_i32_1 = arith.constant 0 : i32
    %c0_i32_2 = arith.constant 0 : i32
    return %arg0, %c0_i32, %c0_i32_0, %c0_i32_1 : i32, i32, i32, i32
  }
  func.func @transform_2(%arg0: i32) -> (i32, i32, i32) {
    %c0_i32 = arith.constant 0 : i32
    %c0_i32_0 = arith.constant 0 : i32
    %c0_i32_1 = arith.constant 0 : i32
    return %arg0, %c0_i32, %c0_i32_0 : i32, i32, i32
  }
  func.func @transform_3(%arg0: i32) -> (i32, i32, i32) {
    %c0_i32 = arith.constant 0 : i32
    %c0_i32_0 = arith.constant 0 : i32
    %c0_i32_1 = arith.constant 0 : i32
    return %arg0, %c0_i32, %c0_i32_0 : i32, i32, i32
  }
  func.func @transform_4(%arg0: i32) -> (i32, i32) {
    %c0_i32 = arith.constant 0 : i32
    %c0_i32_0 = arith.constant 0 : i32
    %c0_i32_1 = arith.constant 0 : i32
    return %c0_i32, %c0_i32_0 : i32, i32
  }
  func.func @transform_5(%arg0: i32) -> (i32, i32) {
    %c0_i32 = arith.constant 0 : i32
    %c0_i32_0 = arith.constant 0 : i32
    %c0_i32_1 = arith.constant 0 : i32
    return %c0_i32, %c0_i32_0 : i32, i32
  }
  func.func @transform_6(%arg0: i32) -> (i32, i32, i32) {
    %c0_i32 = arith.constant 0 : i32
    %c0_i32_0 = arith.constant 0 : i32
    %c0_i32_1 = arith.constant 0 : i32
    return %arg0, %c0_i32, %c0_i32_0 : i32, i32, i32
  }
}

</mosaic_0001>

<bundles_post_ra>
// kernel: tpu_custom_call.1
= control target key start
LH: loop header
LB: loop body
LE: loop exit
PB: predicated region body
PF: predicated region fallthrough
CT: control target
= control target key end

     0   :  { %s6081_s21 = smov 0   ;;  %s8012_s0 = inlined_call_operand.vmem [shape: bf16[2,12,10,32], index: 0, kind: input, shape index: {}]   ;;  %s8013_s1 = inlined_call_operand.vmem [shape: bf16[2,12,10,32], index: 1, kind: input, shape index: {}]   ;;  %s8014_s2 = inlined_call_operand.vmem [shape: f32[2,64,32], index: 2, kind: input, shape index: {}]   ;;  %s8015_s3 = inlined_call_operand.vmem [shape: f32[2,80,96], index: 3, kind: input, shape index: {}]   ;;  %s8016_s4 = inlined_call_operand.vmem [shape: bf16[576,96], index: 4, kind: input, shape index: {}]   ;;  %s8017_s5 = inlined_call_operand.vmem [shape: bf16[288,32], index: 5, kind: input, shape index: {}]   ;;  %s8018_s6 = inlined_call_operand.vmem [shape: f32[2,64,32], index: 6, kind: output, shape index: {}]  }
   0x1 LB: > { %s5000_s22 = sadd.s32 4294967295, %s6041_s21   ;;  %p5004_p0 = scmp.ge.s32.totalorder %s6041_s21, 1  ;;  %s6041_s21 = sphi %s6081_s21, %s16_s21  }
   0x2   : > { %p242_p1 = scmp.lt.s32.totalorder %s6041_s21, 3 }
   0x4   : > { %p243_p2 = pnand %p5004_p0, %p242_p1 }
   0x6   : > { %246 = sbr.rel (%p243_p2) target bundleno = 1775 (0x6ef), region = 44 }
   0xb   : > { %p287_p3 = scmp.lt.s32.totalorder %s5000_s22, 1  ;;  %vm839_vm0 = vcmask 1042432   ;;  %vm840_vm1 = vcmask 1046532   ;;  %vm415_vm3 = vsmask.f32 3328  ;;  %s6043_s27 = smov 96  }
   0xc   : > { %vm6099_vm2 = vmor %vm839_vm0, %vm840_vm1  ;;  %vm416_vm4 = vsmask.f32 7440  ;;  %s6044_s28 = smov 64   ;;  %s6045_s29 = smov 32   ;;  %vm323_vm6 = vcmask 257024   ;;  %vm384_vm7 = vcmask 519424  }
   0xd   : > { %s8048_s22 = smov (!%p287_p3, %s5000_s22), 1  ;;  %vm6122_vm5 = vmor %vm415_vm3, %vm416_vm4  ;;  %vm788_vm8 = vcmask 781824   ;;  %vm1032_vm9 = vcmask 1044224   ;;  %vm2920_vm10 = vcmask 523264  }
   0xe   : > { %s5766_s23 = smul.u32 96, %s8048_s22 }
   0xf   : > { %s5767_s13 = smul.u32 80, %s8048_s22 }
  0x10   : > { %s6097_s26 = scalar_lea.vmem %s8012_s0, %s5766_s23  ;;  %s6204_s8 = scalar_lea.vmem %s8013_s1, %s5766_s23 }
  0x11   : > { %v5032_v1 = vld [vmem:[%s6097_s26 + $0x8] sm:$0xf]  ;;  %v799_v2 = vld [vmem:[%s6097_s26] sm:$0xe]  ;;  %v800_v3 = vld [vmem:[%s6097_s26 + $0x4] sm:$0x1]  ;;  %s7128_s16 = scalar_lea.vmem %s8015_s3, %s5767_s13 }
  0x12   : > { %1064 = vrot.lane.b32.xlu2 %v5032_v1, %s6043_s27  ;;  %v5012_v4 = vrot.slane %v799_v2, 9  ;;  %v844_v5 = vrot.slane %v800_v3, 5  ;;  %v395_v6 = vld [vmem:[%s6097_s26] sm:$0xf]  ;;  %v396_v7 = vld [vmem:[%s6097_s26 + $0x4] sm:$0x1] }
  0x13   : > { %v419_v8 = vshrl.u32 %v395_v6, 16  ;;  %v422_v9 = vshll.u32 %v395_v6, 16  ;;  %v801_v10 = vld [vmem:[%s6097_s26 + $0x8] sm:$0xe]  ;;  %v428_v12 = vshll.u32 %v396_v7, 16 }
  0x14   : > { %v845_v11 = vsel %vm6099_vm2, %v5012_v4, %v844_v5  ;;  %v802_v13 = vld [vmem:[%s6097_s26 + $0xc] sm:$0x1]  ;;  %v5013_v14 = vrot.slane %v801_v10, 9  ;;  %v5033_v15 = vld [vmem:[%s6097_s26 + $0x10] sm:$0xf] }
  0x15   : > { %882 = vrot.lane.b32.xlu1 %v845_v11, %s6044_s28  ;;  %v421_v16 = vrot.slane %v419_v8, 4  ;;  %v424_v17 = vrot.slane %v422_v9, 5  ;;  %v848_v18 = vrot.slane %v802_v13, 5  ;;  %v803_v19 = vld [vmem:[%s6097_s26 + $0x10] sm:$0xe]  ;;  %v430_v20 = vrot.slane %v428_v12, 5 }
  0x16   : > { %v397_v21 = vld [vmem:[%s6097_s26 + $0x8] sm:$0xf]  ;;  %v398_v22 = vld [vmem:[%s6097_s26 + $0xc] sm:$0x1]  ;;  %v401_v26 = vld [vmem:[%s6097_s26 + $0x18] sm:$0xf] }
  0x17   : > { %v425_v23 = vor.u32 %v424_v17, %v421_v16  ;;  %v433_v24 = vshrl.u32 %v397_v21, 16  ;;  %v436_v25 = vshll.u32 %v397_v21, 16  ;;  %v402_v27 = vld [vmem:[%s6097_s26 + $0x1c] sm:$0x1]  ;;  %v849_v29 = vsel %vm6099_vm2, %v5013_v14, %v848_v18  ;;  %v804_v30 = vld [vmem:[%s6097_s26 + $0x14] sm:$0x1] }
  0x18   : > { %v5014_v31 = vrot.slane %v803_v19, 9  ;;  %v461_v32 = vshrl.u32 %v401_v26, 16  ;;  %v464_v33 = vshll.u32 %v401_v26, 16  ;;  %v442_v37 = vshll.u32 %v398_v22, 16  ;;  %v399_v38 = vld [vmem:[%s6097_s26 + $0x10] sm:$0xf] }
  0x19   : > { %v426_v34 = vrot.slane %v425_v23, 4  ;;  %v435_v35 = vrot.slane %v433_v24, 4  ;;  %v438_v36 = vrot.slane %v436_v25, 5  ;;  %v470_v41 = vshll.u32 %v402_v27, 16  ;;  %v400_v54 = vld [vmem:[%s6097_s26 + $0x14] sm:$0x1] }
  0x1a   : > { %1066 = vrot.lane.b32.xlu2 %v5033_v15, %s6043_s27  ;;  %v463_v39 = vrot.slane %v461_v32, 4  ;;  %v466_v40 = vrot.slane %v464_v33, 5  ;;  %v447_v42 = vshrl.u32 %v399_v38, 16  ;;  %v852_v44 = vrot.slane %v804_v30, 5  ;;  %v405_v56 = vld [vmem:[%s6097_s26 + $0x28] sm:$0xf] }
  0x1b   : > { %v431_v43 = vsel %vm6122_vm5, %v426_v34, %v430_v20  ;;  %v439_v45 = vor.u32 %v438_v36, %v435_v35  ;;  %v450_v46 = vshll.u32 %v399_v38, 16  ;;  %v444_v49 = vrot.slane %v442_v37, 5  ;;  %v403_v4 = vld [vmem:[%s6097_s26 + $0x20] sm:$0xf]  ;;  %v406_v6 = vld [vmem:[%s6097_s26 + $0x2c] sm:$0x1] }
  0x1c   : > { %558 = vrot.lane.b32.xlu0 %v431_v43, %s6045_s29  ;;  %v467_v47 = vor.u32 %v466_v40, %v463_v39  ;;  %v449_v50 = vrot.slane %v447_v42, 4  ;;  %v472_v53 = vrot.slane %v470_v41, 5  ;;  %v853_v55 = vsel %vm6099_vm2, %v5014_v31, %v852_v44  ;;  %v5035_v5 = vld [vmem:[%s6097_s26 + $0x20] sm:$0xf]  ;;  %v808_v8 = vld [vmem:[%s6097_s26 + $0x24] sm:$0x1] }
  0x1d   : > { %884 = vrot.lane.b32.xlu1 %v849_v29, %s6044_s28  ;;  %v440_v48 = vrot.slane %v439_v45, 4  ;;  %v452_v51 = vrot.slane %v450_v46, 5  ;;  %v456_v59 = vshll.u32 %v400_v54, 16  ;;  %v489_v61 = vshrl.u32 %v405_v56, 16  ;;  %v807_v7 = vld [vmem:[%s6097_s26 + $0x20] sm:$0xe] }
  0x1e   : > { %v468_v52 = vrot.slane %v467_v47, 4  ;;  %v492_v62 = vshll.u32 %v405_v56, 16  ;;  %v5034_v10 = vld [vmem:[%s6097_s26 + $0x18] sm:$0xf]  ;;  %v475_v11 = vshrl.u32 %v403_v4, 16  ;;  %v478_v12 = vshll.u32 %v403_v4, 16 }
  0x1f   : > { %v445_v57 = vsel %vm6122_vm5, %v440_v48, %v444_v49  ;;  %v453_v58 = vor.u32 %v452_v51, %v449_v50  ;;  %v458_v1 = vrot.slane %v456_v59, 5  ;;  %v491_v2 = vrot.slane %v489_v61, 4  ;;  %v805_v13 = vld [vmem:[%s6097_s26 + $0x18] sm:$0xe]  ;;  %v806_v14 = vld [vmem:[%s6097_s26 + $0x1c] sm:$0x1] }
  0x20   : > { %v473_v60 = vsel %vm6122_vm5, %v468_v52, %v472_v53  ;;  %v494_v3 = vrot.slane %v492_v62, 5  ;;  %v498_v16 = vshll.u32 %v406_v6, 16  ;;  %v5016_v17 = vrot.slane %v807_v7, 9  ;;  %v404_v25 = vld [vmem:[%s6097_s26 + $0x24] sm:$0x1] }
  0x21   : > { %v454_v63 = vrot.slane %v453_v58, 4  ;;  %v860_v18 = vrot.slane %v808_v8, 5  ;;  %v5015_v19 = vrot.slane %v805_v13, 9  ;;  %v856_v20 = vrot.slane %v806_v14, 5  ;;  %v409_v27 = vld [vmem:[%s6097_s26 + $0x38] sm:$0xf] }
  0x22   : > { %886 = vrot.lane.b32.xlu2 %v853_v55, %s6044_s28  ;;  %v495_v15 = vor.u32 %v494_v3, %v491_v2  ;;  %v477_v21 = vrot.slane %v475_v11, 4  ;;  %v480_v22 = vrot.slane %v478_v12, 5  ;;  %v500_v24 = vrot.slane %v498_v16, 5  ;;  %v407_v39 = vld [vmem:[%s6097_s26 + $0x30] sm:$0xf] }
  0x23   : > { %v459_v9 = vsel %vm6122_vm5, %v454_v63, %v458_v1  ;;  %v861_v26 = vsel %vm6099_vm2, %v5016_v17, %v860_v18  ;;  %v857_v29 = vsel %vm6099_vm2, %v5015_v19, %v856_v20  ;;  %v484_v31 = vshll.u32 %v404_v25, 16  ;;  %v5037_v40 = vld [vmem:[%s6097_s26 + $0x30] sm:$0xf]  ;;  %v410_v41 = vld [vmem:[%s6097_s26 + $0x3c] sm:$0x1] }
  0x24   : > { %560 = vrot.lane.b32.xlu0 %v445_v57, %s6045_s29  ;;  %v496_v23 = vrot.slane %v495_v15, 4  ;;  %v481_v30 = vor.u32 %v480_v22, %v477_v21  ;;  %v517_v33 = vshrl.u32 %v409_v27, 16  ;;  %v520_v34 = vshll.u32 %v409_v27, 16  ;;  %v811_v42 = vld [vmem:[%s6097_s26 + $0x30] sm:$0xe] }
  0x25   : > { %564 = vrot.lane.b32.xlu1 %v473_v60, %s6045_s29  ;;  %v486_v36 = vrot.slane %v484_v31, 5  ;;  %v812_v43 = vld [vmem:[%s6097_s26 + $0x34] sm:$0x1]  ;;  %v5036_v45 = vld [vmem:[%s6097_s26 + $0x28] sm:$0xf]  ;;  %v503_v46 = vshrl.u32 %v407_v39, 16 }
  0x26   : > { %v501_v32 = vsel %vm6122_vm5, %v496_v23, %v500_v24  ;;  %v482_v35 = vrot.slane %v481_v30, 4  ;;  %v519_v37 = vrot.slane %v517_v33, 4  ;;  %v522_v38 = vrot.slane %v520_v34, 5  ;;  %v809_v48 = vld [vmem:[%s6097_s26 + $0x28] sm:$0xe] }
  0x27   : > { %v506_v47 = vshll.u32 %v407_v39, 16  ;;  %v810_v49 = vld [vmem:[%s6097_s26 + $0x2c] sm:$0x1]  ;;  %v526_v51 = vshll.u32 %v410_v41, 16  ;;  %v5018_v52 = vrot.slane %v811_v42, 9  ;;  %v868_v53 = vrot.slane %v812_v43, 5 }
  0x28   : > { %v487_v44 = vsel %vm6122_vm5, %v482_v35, %v486_v36  ;;  %v523_v50 = vor.u32 %v522_v38, %v519_v37  ;;  %v5017_v54 = vrot.slane %v809_v48, 9  ;;  %v864_v55 = vrot.slane %v810_v49, 5  ;;  %v408_v60 = vld [vmem:[%s6097_s26 + $0x34] sm:$0x1]  ;;  %v413_v62 = vld [vmem:[%s6097_s26 + $0x48] sm:$0xf] }
  0x29   : > { %v505_v56 = vrot.slane %v503_v46, 4  ;;  %v508_v57 = vrot.slane %v506_v47, 5  ;;  %v528_v59 = vrot.slane %v526_v51, 5  ;;  %v869_v61 = vsel %vm6099_vm2, %v5018_v52, %v868_v53  ;;  %v5039_v11 = vld [vmem:[%s6097_s26 + $0x40] sm:$0xf] }
  0x2a   : > { %1070 = vrot.lane.b32.xlu2 %v5035_v5, %s6043_s27  ;;  %v524_v58 = vrot.slane %v523_v50, 4  ;;  %v865_v63 = vsel %vm6099_vm2, %v5017_v54, %v864_v55  ;;  %v512_v2 = vshll.u32 %v408_v60, 16  ;;  %v545_v4 = vshrl.u32 %v413_v62, 16  ;;  %v414_v12 = vld [vmem:[%s6097_s26 + $0x4c] sm:$0x1] }
  0x2b   : > { %v509_v1 = vor.u32 %v508_v57, %v505_v56  ;;  %v548_v5 = vshll.u32 %v413_v62, 16  ;;  %v815_v13 = vld [vmem:[%s6097_s26 + $0x40] sm:$0xe]  ;;  %v816_v14 = vld [vmem:[%s6097_s26 + $0x44] sm:$0x1]  ;;  %v554_v22 = vshll.u32 %v414_v12, 16 }
  0x2c   : > { %562 = vrot.lane.b32.xlu0 %v459_v9, %s6045_s29  ;;  %v529_v3 = vsel %vm6122_vm5, %v524_v58, %v528_v59  ;;  %v514_v7 = vrot.slane %v512_v2, 5  ;;  %v547_v8 = vrot.slane %v545_v4, 4  ;;  %v5038_v16 = vld [vmem:[%s6097_s26 + $0x38] sm:$0xf]  ;;  %v814_v20 = vld [vmem:[%s6097_s26 + $0x3c] sm:$0x1] }
  0x2d   : > { %1068 = vrot.lane.b32.xlu1 %v5034_v10, %s6043_s27  ;;  %v510_v6 = vrot.slane %v509_v1, 4  ;;  %v550_v9 = vrot.slane %v548_v5, 5  ;;  %v411_v10 = vld [vmem:[%s6097_s26 + $0x40] sm:$0xf]  ;;  %v813_v19 = vld [vmem:[%s6097_s26 + $0x38] sm:$0xe] }
  0x2e   : > { %v531_v17 = vshrl.u32 %v411_v10, 16  ;;  %v534_v18 = vshll.u32 %v411_v10, 16  ;;  %v5020_v23 = vrot.slane %v815_v13, 9  ;;  %v876_v24 = vrot.slane %v816_v14, 5  ;;  %v598_v25 = vld [vmem:[%s6204_s8] sm:$0xf] }
  0x2f   : > { %v515_v15 = vsel %vm6122_vm5, %v510_v6, %v514_v7  ;;  %v551_v21 = vor.u32 %v550_v9, %v547_v8  ;;  %v872_v27 = vrot.slane %v814_v20, 5  ;;  %v412_v33 = vld [vmem:[%s6097_s26 + $0x44] sm:$0x1]  ;;  %v619_v35 = vshrl.u32 %v598_v25, 16  ;;  %v5041_v46 = vld [vmem:[%s6097_s26 + $0x50] sm:$0xf] }
  0x30   : > { %v536_v30 = vrot.slane %v534_v18, 5  ;;  %v877_v34 = vsel %vm6099_vm2, %v5020_v23, %v876_v24  ;;  %v622_v36 = vshll.u32 %v598_v25, 16  ;;  %v540_v39 = vshll.u32 %v412_v33, 16  ;;  %v599_v43 = vld [vmem:[%s6204_s8 + $0x4] sm:$0x1]  ;;  %v5704_v5 = vld [vmem:[%s8016_s4 + $0x38] sm:$0xff] }
  0x31   : > { %v552_v31 = vrot.slane %v551_v21, 4  ;;  %v621_v41 = vrot.slane %v619_v35, 4  ;;  %v628_v48 = vshll.u32 %v599_v43, 16  ;;  %v5040_v50 = vld [vmem:[%s6097_s26 + $0x48] sm:$0xf]  ;;  %2936 = vmatpush.bf16.msra.mxu0 %v5704_v5 }
  0x32   : > { %890 = vrot.lane.b32.xlu2 %v861_v26, %s6044_s28  ;;  %v5019_v26 = vrot.slane %v813_v19, 9  ;;  %v624_v42 = vrot.slane %v622_v36, 5  ;;  %v817_v51 = vld [vmem:[%s6097_s26 + $0x48] sm:$0xe]  ;;  %v818_v52 = vld [vmem:[%s6097_s26 + $0x4c] sm:$0x1] }
  0x33   : > { %v630_v54 = vrot.slane %v628_v48, 5  ;;  %v5021_v55 = vrot.slane %v817_v51, 9  ;;  %v880_v56 = vrot.slane %v818_v52, 5  ;;  %v600_v57 = vld [vmem:[%s6204_s8 + $0x8] sm:$0xf]  ;;  %v5700_v52 = vld [vmem:[%s8016_s4 + $0x18] sm:$0xff] }
  0x34   : > { %888 = vrot.lane.b32.xlu0 %v857_v29, %s6044_s28  ;;  %v533_v29 = vrot.slane %v531_v17, 4  ;;  %v873_v37 = vsel %vm6099_vm2, %v5019_v26, %v872_v27  ;;  %v625_v47 = vor.u32 %v624_v42, %v621_v41  ;;  %v5074_v58 = vld [vmem:[%s6204_s8 + $0x10] sm:$0xf]  ;;  %v924_v60 = vld [vmem:[%s6204_s8 + $0x8] sm:$0xe]  ;;  %v633_v62 = vshrl.u32 %v600_v57, 16 }
  0x35   : > { %568 = vrot.lane.b32.xlu1 %v501_v32, %s6045_s29  ;;  %v556_v32 = vrot.slane %v554_v22, 5  ;;  %v881_v1 = vsel %vm6099_vm2, %v5021_v55, %v880_v56  ;;  %v1340_v2 = vshrl.u32 %v5074_v58, 16  ;;  %v335_v4 = vld [vmem:[%s6204_s8 + $0x8] sm:$0xf]  ;;  %v5023_v6 = vrot.slane %v924_v60, 9 }
  0x36   : > { %v537_v38 = vor.u32 %v536_v30, %v533_v29  ;;  %v626_v53 = vrot.slane %v625_v47, 4  ;;  %v922_v8 = vld [vmem:[%s6204_s8] sm:$0xe]  ;;  %v923_v9 = vld [vmem:[%s6204_s8 + $0x4] sm:$0x1]  ;;  %v635_v10 = vrot.slane %v633_v62, 4 }
  0x37   : > { %v601_v12 = vld [vmem:[%s6204_s8 + $0xc] sm:$0x1]  ;;  %v1342_v13 = vrot.slane %v1340_v2, 4  ;;  %v964_v17 = vrot.slane %v923_v9, 5  ;;  %v5072_v18 = vld [vmem:[%s6204_s8 + $0x8] sm:$0xf] }
  0x38   : > { %v631_v59 = vsel %vm6122_vm5, %v626_v53, %v630_v54  ;;  %v5075_v20 = vld [vmem:[%s6204_s8 + $0x14] sm:$0x1]  ;;  %v5122_v21 = vld [vmem:[%s6204_s8 + $0x8] sm:$0xe]  ;;  %v5123_v22 = vld [vmem:[%s6204_s8 + $0xc] sm:$0x1] }
  0x39   : > { %v642_v24 = vshll.u32 %v601_v12, 16  ;;  %v334_v25 = vld [vmem:[%s6204_s8] sm:$0xf]  ;;  %v1326_v27 = vshrl.u32 %v5072_v18, 16  ;;  %v1329_v29 = vshll.u32 %v5072_v18, 16  ;;  %v5142_v33 = vrot.slane %v5122_v21, 9 }
  0x3a   : > { %1074 = vrot.lane.b32.xlu2 %v5037_v40, %s6043_s27  ;;  %v557_v40 = vsel %vm6122_vm5, %v552_v31, %v556_v32  ;;  %v1349_v31 = vshll.u32 %v5075_v20, 16  ;;  %v5702_v32 = vld [vmem:[%s8016_s4 + $0x28] sm:$0xff]  ;;  %v313_v41 = vld [vmem:[%s6097_s26] sm:$0xf]  ;;  %v5095_v47 = vld [vmem:[%s6097_s26 + $0x14] sm:$0x1] }
  0x3b   : > { %v5073_v43 = vld [vmem:[%s6204_s8 + $0xc] sm:$0x1]  ;;  %324 = vst.msk [vmem:[#allocation2] sm:$0xf] %vm323_vm6, %v313_v41  ;;  %v1551_v54 = vrot.slane %v5095_v47, 5 }
  0x3c   : > { %566 = vrot.lane.b32.xlu0 %v487_v44, %s6045_s29  ;;  %v538_v44 = vrot.slane %v537_v38, 4  ;;  %v1351_v42 = vrot.slane %v1349_v31, 5  ;;  %v5092_v55 = vld [vmem:[%s6097_s26 + $0x8] sm:$0xe]  ;;  %v5093_v56 = vld [vmem:[%s6097_s26 + $0xc] sm:$0x1] }
  0x3d   : > { %1072 = vrot.lane.b32.xlu1 %v5036_v45, %s6043_s27  ;;  %v542_v45 = vrot.slane %v540_v39, 5  ;;  %v1328_v39 = vrot.slane %v1326_v27, 4  ;;  %v5112_v62 = vrot.slane %v5092_v55, 9  ;;  %v5172_v5 = vld [vmem:[%s6097_s26 + $0x10] sm:$0xf] }
  0x3e   : > { %v316_v9 = vld [vmem:[%s6097_s26 + $0x18] sm:$0xf]  ;;  %v1891_v12 = vshll.u32 %v5172_v5, 16  ;;  %v315_v20 = vld [vmem:[%s6097_s26 + $0x10] sm:$0xf] }
  0x3f   : > { %v543_v49 = vsel %vm6122_vm5, %v538_v44, %v542_v45  ;;  %v5701_v44 = vld [vmem:[%s8016_s4 + $0x20] sm:$0xff]  ;;  %327 = vst.msk [vmem:[#allocation2 + $0x3c] sm:$0xf] %vm323_vm6, %v316_v9  ;;  %v5173_v27 = vld [vmem:[%s6097_s26 + $0x14] sm:$0x1] }
  0x40   : > { %326 = vst.msk [vmem:[#allocation2 + $0x28] sm:$0xf] %vm323_vm6, %v315_v20 }
  0x42   : > { %894 = vrot.lane.b32.xlu2 %v869_v61, %s6044_s28  ;;  %v925_v61 = vld [vmem:[%s6204_s8 + $0xc] sm:$0x1] }
  0x43   : > { %v968_v7 = vrot.slane %v925_v61, 5  ;;  %v314_v61 = vld [vmem:[%s6097_s26 + $0x8] sm:$0xf] }
  0x44   : > { %892 = vrot.lane.b32.xlu0 %v865_v63, %s6044_s28  ;;  %v636_v63 = vshll.u32 %v600_v57, 16  ;;  %325 = vst.msk [vmem:[#allocation2 + $0x14] sm:$0xf] %vm323_vm6, %v314_v61  ;;  %v317_v61 = vld [vmem:[%s6097_s26 + $0x20] sm:$0xf] }
  0x45   : > { %572 = vrot.lane.b32.xlu1 %v529_v3, %s6045_s29  ;;  %v1343_v3 = vshll.u32 %v5074_v58, 16  ;;  %v969_v19 = vsel %vm6099_vm2, %v5023_v6, %v968_v7  ;;  %v5174_v58 = vld [vmem:[%s6097_s26 + $0x18] sm:$0xf]  ;;  %v5124_v7 = vld [vmem:[%s6204_s8 + $0x10] sm:$0xe] }
  0x46   : > { %v5143_v18 = vrot.slane %v5124_v7, 9  ;;  %328 = vst.msk [vmem:[#allocation2 + $0x50] sm:$0xf] %vm323_vm6, %v317_v61  ;;  %v603_v7 = vld [vmem:[%s6204_s8 + $0x14] sm:$0x1] }
  0x47   : > { %v1345_v14 = vrot.slane %v1343_v3, 5  ;;  %v1902_v3 = vshrl.u32 %v5174_v58, 16  ;;  %v5127_v61 = vld [vmem:[%s6204_s8 + $0x1c] sm:$0x1] }
  0x49   : > { %v1346_v26 = vor.u32 %v1345_v14, %v1342_v13  ;;  %v5698_v13 = vld [vmem:[%s8016_s4 + $0x8] sm:$0xff]  ;;  %v1904_v14 = vrot.slane %v1902_v3, 4 }
  0x4a   : > { %1078 = vrot.lane.b32.xlu2 %v5039_v11, %s6043_s27  ;;  %v638_v11 = vrot.slane %v636_v63, 5  ;;  %v1547_v63 = vrot.slane %v5093_v56, 5  ;;  %v605_v56 = vld [vmem:[%s6204_s8 + $0x1c] sm:$0x1] }
  0x4b   : > { %v1347_v38 = vrot.slane %v1346_v26, 4 }
  0x4c   : > { %570 = vrot.lane.b32.xlu0 %v515_v15, %s6045_s29  ;;  %v5703_v15 = vld [vmem:[%s8016_s4 + $0x30] sm:$0xff]  ;;  %v639_v23 = vor.u32 %v638_v11, %v635_v10  ;;  %v1548_v10 = vsel %vm6099_vm2, %v5112_v62, %v1547_v63  ;;  %v1888_v11 = vshrl.u32 %v5172_v5, 16 }
  0x4d   : > { %1076 = vrot.lane.b32.xlu1 %v5038_v16, %s6043_s27  ;;  %v5022_v16 = vrot.slane %v922_v8, 9  ;;  %2937 = vmatpush.bf16.msra.mxu0 %v5703_v15  ;;  %v1352_v51 = vsel %vm6122_vm5, %v1347_v38, %v1351_v42  ;;  %v5125_v8 = vld [vmem:[%s6204_s8 + $0x14] sm:$0x1] }
  0x4e   : > { %v640_v36 = vrot.slane %v639_v23, 4  ;;  %v1890_v21 = vrot.slane %v1888_v11, 4  ;;  %v5697_v23 = vld [vmem:[%s8016_s4] sm:$0xff]  ;;  %v5243_v11 = vld [vmem:[%s6204_s8 + $0x14] sm:$0x1] }
  0x4f   : > { %v965_v30 = vsel %vm6099_vm2, %v5022_v16, %v964_v17  ;;  %v5175_v17 = vld [vmem:[%s6097_s26 + $0x1c] sm:$0x1] }
  0x50   : > { %v1911_v26 = vshll.u32 %v5175_v17, 16 }
  0x51   : > { %2938 = vmatpush.bf16.msra.mxu0 %v5702_v32  ;;  %v1897_v32 = vshll.u32 %v5173_v27, 16 }
  0x52   : > { %898 = vrot.lane.b32.xlu2 %v877_v34, %s6044_s28  ;;  %v1667_v34 = vrot.slane %v5123_v22, 5  ;;  %v1893_v22 = vrot.slane %v1891_v12, 5 }
  0x54   : > { %896 = vrot.lane.b32.xlu0 %v873_v37, %s6044_s28  ;;  %v644_v37 = vrot.slane %v642_v24, 5  ;;  %v1668_v45 = vsel %vm6099_vm2, %v5142_v33, %v1667_v34  ;;  %v5152_v24 = vld [vmem:[%s6097_s26 + $0x10] sm:$0xf]  ;;  %v1894_v31 = vor.u32 %v1893_v22, %v1890_v21  ;;  %v1913_v34 = vrot.slane %v1911_v26, 5 }
  0x55   : > { %576 = vrot.lane.b32.xlu1 %v557_v40, %s6045_s29  ;;  %v1331_v40 = vrot.slane %v1329_v29, 5  ;;  %2939 = vmatpush.bf16.msra.mxu0 %v5701_v44  ;;  %v602_v44 = vld [vmem:[%s6204_s8 + $0x10] sm:$0xf]  ;;  %v2389_v21 = vrot.slane %v5243_v11, 5 }
  0x56   : > { %v645_v48 = vsel %vm6122_vm5, %v640_v36, %v644_v37  ;;  %v604_v37 = vld [vmem:[%s6204_s8 + $0x18] sm:$0xf]  ;;  %v1895_v38 = vrot.slane %v1894_v31, 4 }
  0x57   : > { %v661_v42 = vshrl.u32 %v604_v37, 16 }
  0x59   : > { %2940 = vmatpush.bf16.msra.mxu0 %v5700_v52  ;;  %v663_v52 = vrot.slane %v661_v42, 4 }
  0x5a   : > { %1082 = vrot.lane.b32.xlu2 %v5041_v46, %s6043_s27  ;;  %v5094_v46 = vld [vmem:[%s6097_s26 + $0x10] sm:$0xe] }
  0x5b   : > { %v5113_v53 = vrot.slane %v5094_v46, 9  ;;  %v5162_v46 = vld [vmem:[%s6204_s8 + $0x10] sm:$0xf] }
  0x5c   : > { %574 = vrot.lane.b32.xlu0 %v543_v49, %s6045_s29  ;;  %v1332_v49 = vor.u32 %v1331_v40, %v1328_v39  ;;  %v1899_v39 = vrot.slane %v1897_v32, 5 }
  0x5d   : > { %1080 = vrot.lane.b32.xlu1 %v5040_v50, %s6043_s27  ;;  %v1335_v50 = vshll.u32 %v5073_v43, 16  ;;  %v1552_v2 = vsel %vm6099_vm2, %v5113_v53, %v1551_v54  ;;  %v664_v43 = vshll.u32 %v604_v37, 16  ;;  %v5076_v54 = vld [vmem:[%s6204_s8 + $0x18] sm:$0xf] }
  0x5e   : > { %v1900_v47 = vsel %vm6122_vm5, %v1895_v38, %v1899_v39  ;;  %v1357_v3 = vshll.u32 %v5076_v54, 16  ;;  %v928_v37 = vld [vmem:[%s6204_s8 + $0x18] sm:$0xe]  ;;  %v929_v38 = vld [vmem:[%s6204_s8 + $0x1c] sm:$0x1] }
  0x5f   : > { %v1337_v60 = vrot.slane %v1335_v50, 5  ;;  %v647_v50 = vshrl.u32 %v602_v44, 16  ;;  %v666_v53 = vrot.slane %v664_v43, 5  ;;  %v319_v39 = vld [vmem:[%s6097_s26 + $0x30] sm:$0xf]  ;;  %v976_v42 = vrot.slane %v929_v38, 5 }
  0x60   : > { %v5078_v43 = vld [vmem:[%s6204_s8 + $0x20] sm:$0xf]  ;;  %330 = vst.msk [vmem:[#allocation2 + $0x78] sm:$0xf] %vm323_vm6, %v319_v39 }
  0x61   : > { %v649_v63 = vrot.slane %v647_v50, 4  ;;  %v667_v5 = vor.u32 %v666_v53, %v663_v52  ;;  %v1368_v52 = vshrl.u32 %v5078_v43, 16  ;;  %v1371_v53 = vshll.u32 %v5078_v43, 16  ;;  %v5176_v43 = vld [vmem:[%s6097_s26 + $0x20] sm:$0xf] }
  0x62   : > { %758 = vrot.lane.b32.xlu2 %v631_v59, %s6044_s28  ;;  %v1333_v59 = vrot.slane %v1332_v49, 4  ;;  %v5245_v49 = vld [vmem:[%s6204_s8 + $0x1c] sm:$0x1] }
  0x63   : > { %v668_v17 = vrot.slane %v667_v5, 4 }
  0x64   : > { %900 = vrot.lane.b32.xlu0 %v881_v1, %s6044_s28  ;;  %v5699_v1 = vld [vmem:[%s8016_s4 + $0x10] sm:$0xff]  ;;  %v1338_v6 = vsel %vm6122_vm5, %v1333_v59, %v1337_v60  ;;  %v2393_v60 = vrot.slane %v5245_v49, 5 }
  0x65   : > { %356 = vrot.lane.b32.xlu1 %v335_v4, %s6045_s29  ;;  %v1905_v4 = vshll.u32 %v5174_v58, 16  ;;  %2941 = vmatpush.bf16.msra.mxu0 %v5699_v1  ;;  %v336_v58 = vld [vmem:[%s6204_s8 + $0x10] sm:$0xf] }
  0x67   : > { %v1907_v15 = vrot.slane %v1905_v4, 5 }
  0x69   : > { %2942 = vmatpush.bf16.msra.mxu0 %v5698_v13  ;;  %v656_v13 = vshll.u32 %v603_v7, 16  ;;  %v5079_v7 = vld [vmem:[%s6204_s8 + $0x24] sm:$0x1] }
  0x6a   : > { %1004 = vrot.lane.b32.xlu2 %v969_v19, %s6043_s27  ;;  %v1671_v19 = vrot.slane %v5125_v8, 5  ;;  %v5153_v8 = vld [vmem:[%s6097_s26 + $0x18] sm:$0xf] }
  0x6c   : > { %354 = vrot.lane.b32.xlu0 %v334_v25, %s6045_s29  ;;  %v6270_v35 = vpop.permute.xlu2 %1064  ;;  %v1908_v25 = vor.u32 %v1907_v15, %v1904_v14  ;;  %v1672_v29 = vsel %vm6099_vm2, %v5143_v18, %v1671_v19  ;;  %v1359_v15 = vrot.slane %v1357_v3, 5  ;;  %v5077_v19 = vld [vmem:[%s6204_s8 + $0x1c] sm:$0x1]  ;;  %v1373_v3 = vrot.slane %v1371_v53, 5  ;;  %v5179_v53 = vld [vmem:[%s6097_s26 + $0x2c] sm:$0x1] }
  0x6d   : > { %1002 = vrot.lane.b32.xlu1 %v965_v30, %s6043_s27  ;;  %2943 = vmatpush.bf16.msra.mxu0 %v5697_v23  ;;  %v5163_v30 = vld [vmem:[%s6204_s8 + $0x18] sm:$0xf]  ;;  %v1363_v26 = vshll.u32 %v5077_v19, 16 }
  0x6e   : > { %v1909_v33 = vrot.slane %v1908_v25, 4 }
  0x70   : > { %v1914_v41 = vsel %vm6122_vm5, %v1909_v33, %v1913_v34  ;;  %v1365_v34 = vrot.slane %v1363_v26, 5 }
  0x72   : > { %1705 = vrot.lane.b32.xlu2 %v1668_v45, %s6044_s28  ;;  %v318_v45 = vld [vmem:[%s6097_s26 + $0x28] sm:$0xf] }
  0x73   : > { %329 = vst.msk [vmem:[#allocation2 + $0x64] sm:$0xf] %vm323_vm6, %v318_v45 }
  0x74   : > { %760 = vrot.lane.b32.xlu0 %v645_v48, %s6044_s28  ;;  %v6294_v57 = vpop.permute.xlu2 %1066  ;;  %v5244_v48 = vld [vmem:[%s6204_s8 + $0x18] sm:$0xe] }
  0x75   : > { %1467 = vrot.lane.b32.xlu1 %v1352_v51, %s6045_s29  ;;  %v650_v51 = vshll.u32 %v602_v44, 16  ;;  %v5263_v59 = vrot.slane %v5244_v48, 9 }
  0x77   : > { %v652_v1 = vrot.slane %v650_v51, 5  ;;  %v2394_v9 = vsel %vm6099_vm2, %v5263_v59, %v2393_v60  ;;  %v337_v51 = vld [vmem:[%s6204_s8 + $0x18] sm:$0xf] }
  0x78   : > { %v5126_v60 = vld [vmem:[%s6204_s8 + $0x18] sm:$0xe] }
  0x79   : > { %v653_v12 = vor.u32 %v652_v1, %v649_v63  ;;  %v5144_v5 = vrot.slane %v5126_v60, 9 }
  0x7a   : > { %1587 = vrot.lane.b32.xlu2 %v1552_v2, %s6045_s29  ;;  %v1354_v2 = vshrl.u32 %v5076_v54, 16 }
  0x7b   : > { %v654_v23 = vrot.slane %v653_v12, 4 }
  0x7c   : > { %1465 = vrot.lane.b32.xlu0 %v1338_v6, %s6045_s29  ;;  %v6319_v16 = vpop.permute.xlu2 %886  ;;  %v670_v6 = vshll.u32 %v605_v56, 16  ;;  %v1356_v14 = vrot.slane %v1354_v2, 4  ;;  %v926_v56 = vld [vmem:[%s6204_s8 + $0x10] sm:$0xe]  ;;  %v1370_v2 = vrot.slane %v1368_v52, 4 }
  0x7d   : > { %1585 = vrot.lane.b32.xlu1 %v1548_v10, %s6045_s29  ;;  %v5242_v10 = vld [vmem:[%s6204_s8 + $0x10] sm:$0xe]  ;;  %v5024_v63 = vrot.slane %v926_v56, 9 }
  0x7e   : > { %v672_v18 = vrot.slane %v670_v6, 5  ;;  %v1360_v25 = vor.u32 %v1359_v15, %v1356_v14  ;;  %v1675_v6 = vrot.slane %v5127_v61, 5  ;;  %v1374_v12 = vor.u32 %v1373_v3, %v1370_v2  ;;  %v5098_v15 = vld [vmem:[%s6097_s26 + $0x20] sm:$0xe] }
  0x7f   : > { %v1939_v3 = vshll.u32 %v5179_v53, 16 }
  0x80   : > { %v1361_v33 = vrot.slane %v1360_v25, 4  ;;  %v1676_v14 = vsel %vm6099_vm2, %v5144_v5, %v1675_v6  ;;  %v1375_v19 = vrot.slane %v1374_v12, 4 }
  0x82   : > { %1766 = vrot.lane.b32.xlu2 %v5152_v24, %s6044_s28  ;;  %v658_v24 = vrot.slane %v656_v13, 5  ;;  %v1366_v45 = vsel %vm6122_vm5, %v1361_v33, %v1365_v34  ;;  %v1377_v13 = vshll.u32 %v5079_v7, 16  ;;  %v5097_v34 = vld [vmem:[%s6097_s26 + $0x1c] sm:$0x1] }
  0x84   : > { %1707 = vrot.lane.b32.xlu0 %v1672_v29, %s6044_s28  ;;  %v6335_v36 = vpop.permute.xlu2 %1070  ;;  %v673_v29 = vsel %vm6122_vm5, %v668_v17, %v672_v18  ;;  %v659_v32 = vsel %vm6122_vm5, %v654_v23, %v658_v24  ;;  %v5099_v17 = vld [vmem:[%s6097_s26 + $0x24] sm:$0x1]  ;;  %v5164_v23 = vld [vmem:[%s6204_s8 + $0x20] sm:$0xf]  ;;  %v5115_v24 = vrot.slane %v5098_v15, 9  ;;  %v1941_v15 = vrot.slane %v1939_v3, 5 }
  0x85   : > { %1829 = vrot.lane.b32.xlu1 %v5163_v30, %s6043_s27  ;;  %v320_v30 = vld [vmem:[%s6097_s26 + $0x38] sm:$0xf]  ;;  %v1559_v25 = vrot.slane %v5099_v17, 5 }
  0x86   : > { %331 = vst.msk [vmem:[#allocation2 + $0x8c] sm:$0xf] %vm323_vm6, %v320_v30 }
  0x87   : > { %v883_v40 = vpop.permute.xlu1 %882  ;;  %v1560_v33 = vsel %vm6099_vm2, %v5115_v24, %v1559_v25  ;;  %v5165_v25 = vld [vmem:[%s6204_s8 + $0x28] sm:$0xf] }
  0x8a   : > { %2029 = vrot.lane.b32.xlu2 %v1914_v41, %s6043_s27  ;;  %v5025_v41 = vrot.slane %v928_v37, 9 }
  0x8c   : > { %1827 = vrot.lane.b32.xlu0 %v5162_v46, %s6043_s27  ;;  %v6352_v55 = vpop.permute.xlu2 %890  ;;  %v5128_v46 = vld [vmem:[%s6204_s8 + $0x20] sm:$0xe]  ;;  %v977_v54 = vsel %vm6099_vm2, %v5025_v41, %v976_v42  ;;  %v5055_v41 = vld [vmem:[%s6097_s26 + $0x14] sm:$0x1]  ;;  %v1555_v42 = vrot.slane %v5097_v34, 5 }
  0x8d   : > { %2027 = vrot.lane.b32.xlu1 %v1900_v47, %s6043_s27  ;;  %v5129_v47 = vld [vmem:[%s6204_s8 + $0x24] sm:$0x1]  ;;  %v5145_v59 = vrot.slane %v5128_v46, 9  ;;  %v1169_v46 = vshll.u32 %v5055_v41, 16  ;;  %v339_v34 = vld [vmem:[%s6204_s8 + $0x28] sm:$0xf] }
  0x8e   : > { %v559_v62 = vpop.permute.xlu0 %558  ;;  %v5248_v41 = vld [vmem:[%s6204_s8 + $0x28] sm:$0xe] }
  0x8f   : > { %588 = vst.msk [vmem:[#allocation2] sm:$0xf] %vm384_vm7, %v559_v62  ;;  %v885_v4 = vpop.permute.xlu1 %884 }
  0x90   : > { %912 = vst.msk [vmem:[#allocation2] sm:$0xf] %vm788_vm8, %v883_v40 }
  0x91   : > { %1094 = vst.msk [vmem:[#allocation2] sm:$0xf] %vm1032_vm9, %v6270_v35  ;;  %v5262_v35 = vrot.slane %v5242_v10, 9  ;;  %v322_v10 = vld [vmem:[%s6097_s26 + $0x48] sm:$0xf] }
  0x92   : > { %358 = vrot.lane.b32.xlu2 %v336_v58, %s6045_s29  ;;  %v927_v58 = vld [vmem:[%s6204_s8 + $0x14] sm:$0x1]  ;;  %333 = vst.msk [vmem:[#allocation2 + $0xb4] sm:$0xf] %vm323_vm6, %v322_v10 }
  0x93   : > { %v2390_v31 = vsel %vm6099_vm2, %v5262_v35, %v2389_v21  ;;  %v972_v1 = vrot.slane %v927_v58, 5  ;;  %v1379_v35 = vrot.slane %v1377_v13, 5  ;;  %v321_v21 = vld [vmem:[%s6097_s26 + $0x40] sm:$0xf]  ;;  %v5247_v58 = vld [vmem:[%s6204_s8 + $0x24] sm:$0x1] }
  0x94   : > { %1768 = vrot.lane.b32.xlu0 %v5153_v8, %s6044_s28  ;;  %v6372_v20 = vpop.permute.xlu2 %1074  ;;  %332 = vst.msk [vmem:[#allocation2 + $0xa0] sm:$0xf] %vm323_vm6, %v321_v21  ;;  %v2397_v5 = vrot.slane %v5247_v58, 5  ;;  %v5043_v58 = vld [vmem:[%s6204_s8 + $0x10] sm:$0xf] }
  0x95   : > { %2429 = vrot.lane.b32.xlu1 %v2394_v9, %s6045_s29  ;;  %v973_v11 = vsel %vm6099_vm2, %v5024_v63, %v972_v1  ;;  %v1171_v63 = vrot.slane %v1169_v46, 5  ;;  %v5154_v1 = vld [vmem:[%s6097_s26 + $0x20] sm:$0xf]  ;;  %1116 = vst.msk [vmem:[#allocation2 + $0x20] sm:$0xf] %vm323_vm6, %v5043_v58 }
  0x96   : > { %v561_v22 = vpop.permute.xlu0 %560 }
  0x97   : > { %589 = vst.msk [vmem:[#allocation2 + $0x14] sm:$0xf] %vm384_vm7, %v561_v22  ;;  %v565_v27 = vpop.permute.xlu1 %564 }
  0x98   : > { %913 = vst.msk [vmem:[#allocation2 + $0x14] sm:$0xf] %vm788_vm8, %v885_v4  ;;  %v5274_v48 = vld [vmem:[#allocation2] sm:$0xf] }
  0x99   : > { %1095 = vst.msk [vmem:[#allocation2 + $0x14] sm:$0xf] %vm1032_vm9, %v6294_v57 }
  0x9a   : > { %591 = vst.msk [vmem:[#allocation2 + $0x3c] sm:$0xf] %vm384_vm7, %v565_v27  ;;  %764 = vrot.lane.b32.xlu2 %v673_v29, %s6044_s28  ;;  %v5178_v29 = vld [vmem:[%s6097_s26 + $0x28] sm:$0xf] }
  0x9b   : > { %v1930_v37 = vshrl.u32 %v5178_v29, 16  ;;  %v1933_v38 = vshll.u32 %v5178_v29, 16 }
  0x9c   : > { %2427 = vrot.lane.b32.xlu0 %v2390_v31, %s6045_s29  ;;  %v6392_v57 = vpop.permute.xlu2 %894  ;;  %v1380_v31 = vsel %vm6122_vm5, %v1375_v19, %v1379_v35 }
  0x9d   : > { %762 = vrot.lane.b32.xlu1 %v659_v32, %s6044_s28  ;;  %v5096_v32 = vld [vmem:[%s6097_s26 + $0x18] sm:$0xe] }
  0x9e   : > { %v563_v40 = vpop.permute.xlu0 %562  ;;  %v5114_v39 = vrot.slane %v5096_v32, 9 }
  0x9f   : > { %590 = vst.msk [vmem:[#allocation2 + $0x28] sm:$0xf] %vm384_vm7, %v563_v40  ;;  %v1069_v44 = vpop.permute.xlu1 %1068  ;;  %v5054_v40 = vld [vmem:[%s6097_s26 + $0x10] sm:$0xf] }
  0xa0   : > { %914 = vst.msk [vmem:[#allocation2 + $0x28] sm:$0xf] %vm788_vm8, %v6319_v16  ;;  %v5674_v49 = vld [vmem:[#allocation2 + $0x10] sm:$0xf0]  ;;  %v1679_v16 = vrot.slane %v5129_v47, 5  ;;  %v1556_v60 = vsel %vm6099_vm2, %v5114_v39, %v1555_v42 }
  0xa1   : > { %1096 = vst.msk [vmem:[#allocation2 + $0x28] sm:$0xf] %vm1032_vm9, %v1069_v44  ;;  %v5275_v50 = vor.u32 %v5674_v49, %v5274_v48  ;;  %v1160_v44 = vshrl.u32 %v5054_v40, 16  ;;  %v5155_v48 = vld [vmem:[%s6097_s26 + $0x28] sm:$0xf] }
  0xa2   : > { %1469 = vrot.lane.b32.xlu2 %v1366_v45, %s6045_s29  ;;  %v1680_v9 = vsel %vm6099_vm2, %v5145_v59, %v1679_v16  ;;  %v1163_v45 = vshll.u32 %v5054_v40, 16  ;;  %v5246_v49 = vld [vmem:[%s6204_s8 + $0x20] sm:$0xe]  ;;  %v1916_v59 = vshrl.u32 %v5176_v43, 16  ;;  %v1919_v16 = vshll.u32 %v5176_v43, 16 }
  0xa3   : > { %2944 = vmatmul.bf16.vlgmr.msra.gmra.mxu0 %v5275_v50  ;;  %v1932_v50 = vrot.slane %v1930_v37, 4  ;;  %v930_v37 = vld [vmem:[%s6204_s8 + $0x20] sm:$0xe]  ;;  %v5249_v42 = vld [vmem:[%s6204_s8 + $0x2c] sm:$0x1] }
  0xa4   : > { %360 = vrot.lane.b32.xlu0 %v337_v51, %s6045_s29  ;;  %v6415_v62 = vpop.permute.xlu2 %1078  ;;  %v1935_v51 = vrot.slane %v1933_v38, 5  ;;  %v1165_v56 = vrot.slane %v1163_v45, 5  ;;  %v1918_v7 = vrot.slane %v1916_v59, 4  ;;  %v931_v38 = vld [vmem:[%s6204_s8 + $0x24] sm:$0x1]  ;;  %v5265_v59 = vrot.slane %v5248_v41, 9 }
  0xa5   : > { %1008 = vrot.lane.b32.xlu1 %v977_v54, %s6043_s27  ;;  %v1162_v54 = vrot.slane %v1160_v44, 4  ;;  %v606_v39 = vld [vmem:[%s6204_s8 + $0x20] sm:$0xf] }
  0xa6   : > { %v889_v4 = vpop.permute.xlu0 %888  ;;  %v1936_v2 = vor.u32 %v1935_v51, %v1932_v50  ;;  %v6509_v50 = vld [vmem:[%s6204_s8 + $0x34] sm:$0x1]  ;;  %v675_v51 = vshrl.u32 %v606_v39, 16 }
  0xa7   : > { %915 = vst.msk [vmem:[#allocation2 + $0x3c] sm:$0xf] %vm788_vm8, %v889_v4  ;;  %v569_v8 = vpop.permute.xlu1 %568  ;;  %v1166_v61 = vor.u32 %v1165_v56, %v1162_v54  ;;  %v5264_v4 = vrot.slane %v5246_v49, 9  ;;  %v338_v49 = vld [vmem:[%s6204_s8 + $0x20] sm:$0xf]  ;;  %v5026_v54 = vrot.slane %v930_v37, 9 }
  0xa8   : > { %1097 = vst.msk [vmem:[#allocation2 + $0x3c] sm:$0xf] %vm1032_vm9, %v6335_v36  ;;  %v5294_v18 = vld [vmem:[#allocation2 + $0x28] sm:$0xf]  ;;  %v678_v56 = vshll.u32 %v606_v39, 16 }
  0xa9   : > { %593 = vst.msk [vmem:[#allocation2 + $0x64] sm:$0xf] %vm384_vm7, %v569_v8  ;;  %v1921_v8 = vrot.slane %v1919_v16, 5 }
  0xaa   : > { %1711 = vrot.lane.b32.xlu2 %v1680_v9, %s6044_s28  ;;  %v608_v9 = vld [vmem:[%s6204_s8 + $0x28] sm:$0xf] }
  0xab   : > { %v689_v35 = vshrl.u32 %v608_v9, 16  ;;  %v692_v21 = vshll.u32 %v608_v9, 16 }
  0xac   : > { %1006 = vrot.lane.b32.xlu0 %v973_v11, %s6043_s27  ;;  %v6435_v36 = vpop.permute.xlu2 %898  ;;  %v5177_v11 = vld [vmem:[%s6097_s26 + $0x24] sm:$0x1] }
  0xad   : > { %1709 = vrot.lane.b32.xlu1 %v1676_v14, %s6044_s28  ;;  %v1937_v14 = vrot.slane %v1936_v2, 4  ;;  %v1925_v24 = vshll.u32 %v5177_v11, 16  ;;  %v694_v29 = vrot.slane %v692_v21, 5  ;;  %v5081_v11 = vld [vmem:[%s6204_s8 + $0x2c] sm:$0x1] }
  0xae   : > { %v567_v22 = vpop.permute.xlu0 %566  ;;  %v1391_v39 = vshll.u32 %v5081_v11, 16 }
  0xaf   : > { %592 = vst.msk [vmem:[#allocation2 + $0x50] sm:$0xf] %vm384_vm7, %v567_v22  ;;  %v1073_v26 = vpop.permute.xlu1 %1072  ;;  %v5679_v27 = vld [vmem:[#allocation2 + $0x38] sm:$0xf0]  ;;  %v1927_v32 = vrot.slane %v1925_v24, 5 }
  0xb0   : > { %916 = vst.msk [vmem:[#allocation2 + $0x50] sm:$0xf] %vm788_vm8, %v6352_v55  ;;  %v5295_v30 = vor.u32 %v5679_v27, %v5294_v18  ;;  %v2398_v18 = vsel %vm6099_vm2, %v5264_v4, %v2397_v5  ;;  %v691_v27 = vrot.slane %v689_v35, 4  ;;  %v1405_v5 = vshll.u32 %v6509_v50, 16 }
  0xb1   : > { %1098 = vst.msk [vmem:[#allocation2 + $0x50] sm:$0xf] %vm1032_vm9, %v1073_v26  ;;  %v1942_v26 = vsel %vm6122_vm5, %v1937_v14, %v1941_v15  ;;  %v1393_v58 = vrot.slane %v1391_v39, 5  ;;  %v5722_v39 = vld [vmem:[%s8016_s4 + $0xc8] sm:$0xff] }
  0xb2   : > { %1831 = vrot.lane.b32.xlu2 %v5164_v23, %s6043_s27  ;;  %v1922_v23 = vor.u32 %v1921_v8, %v1918_v7  ;;  %v695_v45 = vor.u32 %v694_v29, %v691_v27  ;;  %v677_v7 = vrot.slane %v675_v51, 4  ;;  %v5727_v8 = vld [vmem:[%s8016_s4 + $0xf0] sm:$0xff]  ;;  %v5053_v27 = vld [vmem:[%s6097_s26 + $0xc] sm:$0x1] }
  0xb3   : > { %2949 = vmatmul.bf16.gmra.mxu0 %v5295_v30  ;;  %v5726_v29 = vld [vmem:[%s8016_s4 + $0xe8] sm:$0xff] }
  0xb4   : > { %1471 = vrot.lane.b32.xlu0 %v1380_v31, %s6045_s29  ;;  %v6454_v55 = vpop.permute.xlu2 %1082  ;;  %v1923_v31 = vrot.slane %v1922_v23, 4 }
  0xb5   : > { %1591 = vrot.lane.b32.xlu1 %v1560_v33, %s6045_s29  ;;  %v5082_v33 = vld [vmem:[%s6204_s8 + $0x30] sm:$0xf] }
  0xb6   : > { %v893_v47 = vpop.permute.xlu0 %892  ;;  %v1396_v46 = vshrl.u32 %v5082_v33, 16  ;;  %v1928_v53 = vsel %vm6122_vm5, %v1923_v31, %v1927_v32 }
  0xb7   : > { %917 = vst.msk [vmem:[#allocation2 + $0x64] sm:$0xf] %vm788_vm8, %v893_v47  ;;  %v573_v52 = vpop.permute.xlu1 %572  ;;  %v1399_v47 = vshll.u32 %v5082_v33, 16 }
  0xb8   : > { %1099 = vst.msk [vmem:[#allocation2 + $0x64] sm:$0xf] %vm1032_vm9, %v6372_v20  ;;  %v1167_v20 = vrot.slane %v1166_v61, 4  ;;  %v5314_v10 = vld [vmem:[#allocation2 + $0x50] sm:$0xf]  ;;  %v2401_v61 = vrot.slane %v5249_v42, 5 }
  0xb9   : > { %595 = vst.msk [vmem:[#allocation2 + $0x8c] sm:$0xf] %vm384_vm7, %v573_v52  ;;  %v5728_v52 = vld [vmem:[%s8016_s4 + $0xf8] sm:$0xff]  ;;  %v1401_v2 = vrot.slane %v1399_v47, 5  ;;  %v1407_v42 = vrot.slane %v1405_v5, 5  ;;  %v5710_v5 = vld [vmem:[%s8016_s4 + $0x68] sm:$0xff] }
  0xba   : > { %1772 = vrot.lane.b32.xlu2 %v5155_v48, %s6044_s28  ;;  %v1172_v12 = vsel %vm6122_vm5, %v1167_v20, %v1171_v63  ;;  %v5080_v48 = vld [vmem:[%s6204_s8 + $0x28] sm:$0xf]  ;;  %3038 = vmatpush.bf16.msra.mxu3 %v5728_v52  ;;  %v696_v63 = vrot.slane %v695_v45, 4  ;;  %v607_v20 = vld [vmem:[%s6204_s8 + $0x24] sm:$0x1]  ;;  %v5711_v52 = vld [vmem:[%s8016_s4 + $0x70] sm:$0xff] }
  0xbb   : > { %1296 = vst.msk [vmem:[#allocation2 + $0x18] sm:$0xf] %vm323_vm6, %v1172_v12  ;;  %v1382_v16 = vshrl.u32 %v5080_v48, 16  ;;  %v5042_v12 = vld [vmem:[%s6204_s8 + $0x8] sm:$0xf] }
  0xbc   : > { %1589 = vrot.lane.b32.xlu0 %v1556_v60, %s6045_s29  ;;  %v6473_v6 = vpop.permute.xlu2 %758  ;;  %v1385_v60 = vshll.u32 %v5080_v48, 16  ;;  %1115 = vst.msk [vmem:[#allocation2 + $0xc] sm:$0xf] %vm323_vm6, %v5042_v12  ;;  %v6559_v47 = vld [vmem:[%s6097_s26 + $0x10] sm:$0xe] }
  0xbd   : > { %1770 = vrot.lane.b32.xlu1 %v5154_v1, %s6044_s28  ;;  %v1398_v1 = vrot.slane %v1396_v46, 4  ;;  %v1384_v15 = vrot.slane %v1382_v16, 4  ;;  %v6562_v48 = vld [vmem:[%s6097_s26 + $0x14] sm:$0x1]  ;;  %v5132_v12 = vld [vmem:[%s6204_s8 + $0x30] sm:$0xe] }
  0xbe   : > { %v571_v13 = vpop.permute.xlu0 %570  ;;  %3039 = vmatpush.bf16.msra.mxu3 %v5727_v8  ;;  %v5717_v8 = vld [vmem:[%s8016_s4 + $0xa0] sm:$0xff] }
  0xbf   : > { %594 = vst.msk [vmem:[#allocation2 + $0x78] sm:$0xf] %vm384_vm7, %v571_v13  ;;  %v1077_v17 = vpop.permute.xlu1 %1076  ;;  %v5684_v19 = vld [vmem:[#allocation2 + $0x60] sm:$0xf0]  ;;  %v5720_v13 = vld [vmem:[%s8016_s4 + $0xb8] sm:$0xff] }
  0xc0   : > { %918 = vst.msk [vmem:[#allocation2 + $0x78] sm:$0xf] %vm788_vm8, %v6392_v57  ;;  %v5315_v22 = vor.u32 %v5684_v19, %v5314_v10  ;;  %v609_v57 = vld [vmem:[%s6204_s8 + $0x2c] sm:$0x1]  ;;  %v680_v10 = vrot.slane %v678_v56, 5  ;;  %3004 = vmatpush.bf16.msra.mxu2 %v5720_v13 }
  0xc1   : > { %1100 = vst.msk [vmem:[#allocation2 + $0x78] sm:$0xf] %vm1032_vm9, %v1077_v17  ;;  %v698_v43 = vshll.u32 %v609_v57, 16  ;;  %v1387_v17 = vrot.slane %v1385_v60, 5  ;;  %v684_v57 = vshll.u32 %v607_v20, 16 }
  0xc2   : > { %2431 = vrot.lane.b32.xlu2 %v2398_v18, %s6045_s29  ;;  %v5052_v18 = vld [vmem:[%s6097_s26 + $0x8] sm:$0xf]  ;;  %v681_v31 = vor.u32 %v680_v10, %v677_v7  ;;  %3040 = vmatpush.bf16.msra.mxu3 %v5726_v29  ;;  %v5101_v60 = vld [vmem:[%s6097_s26 + $0x2c] sm:$0x1]  ;;  %v5133_v13 = vld [vmem:[%s6204_s8 + $0x34] sm:$0x1] }
  0xc3   : > { %2954 = vmatmul.bf16.gmra.mxu0 %v5315_v22  ;;  %v700_v4 = vrot.slane %v698_v43, 5  ;;  %v1402_v22 = vor.u32 %v1401_v2, %v1398_v1  ;;  %v1146_v23 = vshrl.u32 %v5052_v18, 16  ;;  %v1149_v24 = vshll.u32 %v5052_v18, 16  ;;  %v933_v7 = vld [vmem:[%s6204_s8 + $0x2c] sm:$0x1] }
  0xc4   : > { %1833 = vrot.lane.b32.xlu0 %v5165_v25, %s6043_s27  ;;  %v6493_v30 = vpop.permute.xlu2 %1004  ;;  %v686_v46 = vrot.slane %v684_v57, 5  ;;  %v682_v50 = vrot.slane %v681_v31, 4  ;;  %v5232_v1 = vrot.slane %v6559_v47, 9  ;;  %v2289_v2 = vrot.slane %v6562_v48, 5  ;;  %v5181_v47 = vld [vmem:[%s6097_s26 + $0x34] sm:$0x1] }
  0xc5   : > { %2033 = vrot.lane.b32.xlu1 %v1942_v26, %s6043_s27  ;;  %v2402_v26 = vsel %vm6099_vm2, %v5265_v59, %v2401_v61  ;;  %v1148_v32 = vrot.slane %v1146_v23, 4  ;;  %v1151_v33 = vrot.slane %v1149_v24, 5  ;;  %v701_v37 = vsel %vm6122_vm5, %v696_v63, %v700_v4  ;;  %v932_v61 = vld [vmem:[%s6204_s8 + $0x28] sm:$0xe]  ;;  %v5724_v4 = vld [vmem:[%s8016_s4 + $0xd8] sm:$0xff]  ;;  %v5709_v23 = vld [vmem:[%s8016_s4 + $0x60] sm:$0xff] }
  0xc6   : > { %v897_v40 = vpop.permute.xlu0 %896  ;;  %v1403_v41 = vrot.slane %v1402_v22, 4  ;;  %v1563_v10 = vrot.slane %v5101_v60, 5  ;;  %v5027_v11 = vrot.slane %v932_v61, 9  ;;  %v984_v18 = vrot.slane %v933_v7, 5  ;;  %v5716_v24 = vld [vmem:[%s8016_s4 + $0x98] sm:$0xff] }
  0xc7   : > { %919 = vst.msk [vmem:[#allocation2 + $0x8c] sm:$0xf] %vm788_vm8, %v897_v40  ;;  %v577_v44 = vpop.permute.xlu1 %576  ;;  %v5719_v40 = vld [vmem:[%s8016_s4 + $0xb0] sm:$0xff]  ;;  %v1152_v43 = vor.u32 %v1151_v33, %v1148_v32  ;;  %v1687_v57 = vrot.slane %v5133_v13, 5  ;;  %v2290_v31 = vsel %vm6099_vm2, %v5232_v1, %v2289_v2  ;;  %v5167_v60 = vld [vmem:[%s6204_s8 + $0x38] sm:$0xf] }
  0xc8   : > { %1101 = vst.msk [vmem:[#allocation2 + $0x8c] sm:$0xf] %vm1032_vm9, %v6415_v62  ;;  %v980_v62 = vrot.slane %v931_v38, 5  ;;  %v5334_v9 = vld [vmem:[#allocation2 + $0x78] sm:$0xf]  ;;  %v1388_v38 = vor.u32 %v1387_v17, %v1384_v15  ;;  %3005 = vmatpush.bf16.msra.mxu2 %v5719_v40  ;;  %v1408_v16 = vsel %vm6122_vm5, %v1403_v41, %v1407_v42  ;;  %v5715_v41 = vld [vmem:[%s8016_s4 + $0x90] sm:$0xff] }
  0xc9   : > { %597 = vst.msk [vmem:[#allocation2 + $0xb4] sm:$0xf] %vm384_vm7, %v577_v44  ;;  %v1153_v51 = vrot.slane %v1152_v43, 4  ;;  %v5180_v15 = vld [vmem:[%s6097_s26 + $0x30] sm:$0xf]  ;;  %v5708_v40 = vld [vmem:[%s8016_s4 + $0x58] sm:$0xff] }
  0xca   : > { %364 = vrot.lane.b32.xlu2 %v339_v34, %s6045_s29  ;;  %v981_v35 = vsel %vm6099_vm2, %v5026_v54, %v980_v62  ;;  %v1155_v34 = vshll.u32 %v5053_v27, 16  ;;  %v1389_v56 = vrot.slane %v1388_v38, 4  ;;  %v5100_v62 = vld [vmem:[%s6097_s26 + $0x28] sm:$0xe]  ;;  %v1944_v27 = vshrl.u32 %v5180_v15, 16 }
  0xcb   : > { %v5116_v20 = vrot.slane %v5100_v62, 9  ;;  %v1947_v29 = vshll.u32 %v5180_v15, 16  ;;  %v5130_v42 = vld [vmem:[%s6204_s8 + $0x28] sm:$0xe]  ;;  %v5131_v43 = vld [vmem:[%s6204_s8 + $0x2c] sm:$0x1] }
  0xcc   : > { %2031 = vrot.lane.b32.xlu0 %v1928_v53, %s6043_s27  ;;  %v6521_v3 = vpop.permute.xlu2 %1705  ;;  %v1157_v44 = vrot.slane %v1155_v34, 5  ;;  %v5718_v53 = vld [vmem:[%s8016_s4 + $0xa8] sm:$0xff] }
  0xcd   : > { %362 = vrot.lane.b32.xlu1 %v338_v49, %s6045_s29  ;;  %v5725_v49 = vld [vmem:[%s8016_s4 + $0xe0] sm:$0xff]  ;;  %3006 = vmatpush.bf16.msra.mxu2 %v5718_v53  ;;  %v1564_v33 = vsel %vm6099_vm2, %v5116_v20, %v1563_v10 }
  0xce   : > { %v575_v14 = vpop.permute.xlu0 %574  ;;  %3041 = vmatpush.bf16.msra.mxu3 %v5725_v49  ;;  %v1158_v63 = vsel %vm6122_vm5, %v1153_v51, %v1157_v44  ;;  %v5146_v49 = vrot.slane %v5130_v42, 9  ;;  %v5721_v51 = vld [vmem:[%s8016_s4 + $0xc0] sm:$0xff] }
  0xcf   : > { %596 = vst.msk [vmem:[#allocation2 + $0xa0] sm:$0xf] %vm384_vm7, %v575_v14  ;;  %v1081_v19 = vpop.permute.xlu1 %1080  ;;  %v5689_v21 = vld [vmem:[#allocation2 + $0x88] sm:$0xf0]  ;;  %v5214_v14 = vld [vmem:[%s6097_s26 + $0x18] sm:$0xe] }
  0xd0   : > { %920 = vst.msk [vmem:[#allocation2 + $0xa0] sm:$0xf] %vm788_vm8, %v6435_v36  ;;  %v5335_v25 = vor.u32 %v5689_v21, %v5334_v9  ;;  %v5712_v36 = vld [vmem:[%s8016_s4 + $0x78] sm:$0xff]  ;;  %v1394_v9 = vsel %vm6122_vm5, %v1389_v56, %v1393_v58  ;;  %v5723_v21 = vld [vmem:[%s8016_s4 + $0xd0] sm:$0xff]  ;;  %v5714_v56 = vld [vmem:[%s8016_s4 + $0x88] sm:$0xff] }
  0xd1   : > { %1102 = vst.msk [vmem:[#allocation2 + $0xa0] sm:$0xf] %vm1032_vm9, %v1081_v19  ;;  %2970 = vmatpush.bf16.msra.mxu1 %v5712_v36  ;;  %v5215_v19 = vld [vmem:[%s6097_s26 + $0x1c] sm:$0x1]  ;;  %3007 = vmatpush.bf16.msra.mxu2 %v5717_v8  ;;  %v5233_v36 = vrot.slane %v5214_v14, 9  ;;  %v5706_v14 = vld [vmem:[%s8016_s4 + $0x48] sm:$0xff] }
  0xd2   : > { %1010 = vrot.lane.b32.xlu2 %v981_v35, %s6043_s27  ;;  %1295 = vst.msk [vmem:[#allocation2 + $0x4] sm:$0xf] %vm323_vm6, %v1158_v63  ;;  %3042 = vmatpush.bf16.msra.mxu3 %v5724_v4  ;;  %v5044_v35 = vld [vmem:[%s6204_s8 + $0x18] sm:$0xf]  ;;  %v2293_v38 = vrot.slane %v5215_v19, 5  ;;  %v1953_v63 = vshll.u32 %v5181_v47, 16 }
  0xd3   : > { %2959 = vmatmul.bf16.gmra.mxu0 %v5335_v25  ;;  %1117 = vst.msk [vmem:[#allocation2 + $0x34] sm:$0xf] %vm323_vm6, %v5044_v35  ;;  %v5195_v8 = vld [vmem:[%s6204_s8 + $0x1c] sm:$0x1] }
  0xd4   : > { %2433 = vrot.lane.b32.xlu0 %v2402_v26, %s6045_s29  ;;  %v1588_v45 = vpop.permute.xlu2 %1587  ;;  %v5147_v26 = vrot.slane %v5132_v12, 9  ;;  %v2294_v53 = vsel %vm6099_vm2, %v5233_v36, %v2293_v38  ;;  %v2111_v13 = vshll.u32 %v5195_v8, 16  ;;  %v1955_v35 = vrot.slane %v1953_v63, 5  ;;  %v5193_v38 = vld [vmem:[%s6204_s8 + $0x14] sm:$0x1] }
  0xd5   : > { %1616 = vst.msk [vmem:[#allocation2 + $0x18] sm:$0xf] %vm384_vm7, %v1588_v45  ;;  %768 = vrot.lane.b32.xlu1 %v701_v37, %s6044_s28  ;;  %2971 = vmatpush.bf16.msra.mxu1 %v5711_v52  ;;  %v1946_v45 = vrot.slane %v1944_v27, 4  ;;  %v5194_v52 = vld [vmem:[%s6204_s8 + $0x18] sm:$0xf] }
  0xd6   : > { %v901_v54 = vpop.permute.xlu0 %900  ;;  %3043 = vmatpush.bf16.msra.mxu3 %v5723_v21  ;;  %3008 = vmatpush.bf16.msra.mxu2 %v5716_v24  ;;  %v1688_v44 = vsel %vm6099_vm2, %v5147_v26, %v1687_v57  ;;  %v2102_v58 = vshrl.u32 %v5194_v52, 16  ;;  %v2105_v62 = vshll.u32 %v5194_v52, 16  ;;  %v610_v26 = vld [vmem:[%s6204_s8 + $0x30] sm:$0xf] }
  0xd7   : > { %921 = vst.msk [vmem:[#allocation2 + $0xb4] sm:$0xf] %vm788_vm8, %v901_v54  ;;  %v357_v59 = vpop.permute.xlu1 %356  ;;  %v5707_v54 = vld [vmem:[%s8016_s4 + $0x50] sm:$0xff] }
  0xd8   : > { %1103 = vst.msk [vmem:[#allocation2 + $0xb4] sm:$0xf] %vm1032_vm9, %v6454_v55  ;;  %v687_v55 = vsel %vm6122_vm5, %v682_v50, %v686_v46  ;;  %v5354_v22 = vld [vmem:[#allocation2 + $0xa0] sm:$0xf]  ;;  %v1949_v46 = vrot.slane %v1947_v29, 5  ;;  %v1683_v50 = vrot.slane %v5131_v43, 5 }
  0xd9   : > { %386 = vst.msk [vmem:[#allocation2 + $0x1c] sm:$0xf] %vm384_vm7, %v357_v59  ;;  %2972 = vmatpush.bf16.msra.mxu1 %v5710_v5  ;;  %v5192_v59 = vld [vmem:[%s6204_s8 + $0x10] sm:$0xf]  ;;  %v2104_v20 = vrot.slane %v2102_v58, 4  ;;  %v2107_v7 = vrot.slane %v2105_v62, 5 }
  0xda   : > { %1475 = vrot.lane.b32.xlu2 %v1408_v16, %s6045_s29  ;;  %3044 = vmatpush.bf16.msra.mxu3 %v5722_v39  ;;  %v1950_v61 = vor.u32 %v1949_v46, %v1946_v45  ;;  %v2088_v1 = vshrl.u32 %v5192_v59, 16  ;;  %v2091_v2 = vshll.u32 %v5192_v59, 16  ;;  %v5102_v5 = vld [vmem:[%s6097_s26 + $0x30] sm:$0xe]  ;;  %v5252_v29 = vld [vmem:[%s6204_s8 + $0x38] sm:$0xe] }
  0xdb   : > { %3009 = vmatpush.bf16.msra.mxu2 %v5715_v41  ;;  %v2108_v12 = vor.u32 %v2107_v7, %v2104_v20  ;;  %v5117_v24 = vrot.slane %v5102_v5, 9  ;;  %v5731_v57 = vld [vmem:[%s8016_s4 + $0x110] sm:$0xff]  ;;  %v5705_v39 = vld [vmem:[%s8016_s4 + $0x40] sm:$0xff]  ;;  %v703_v41 = vshrl.u32 %v610_v26, 16  ;;  %v2097_v43 = vshll.u32 %v5193_v38, 16  ;;  %v5730_v46 = vld [vmem:[%s8016_s4 + $0x108] sm:$0xff] }
  0xdc   : > { %766 = vrot.lane.b32.xlu0 %v687_v55, %s6044_s28  ;;  %v6609_v17 = vpop.permute.xlu2 %1766  ;;  %v5103_v55 = vld [vmem:[%s6097_s26 + $0x34] sm:$0x1]  ;;  %v2090_v10 = vrot.slane %v2088_v1, 4  ;;  %v2093_v15 = vrot.slane %v2091_v2, 5  ;;  %v1951_v19 = vrot.slane %v1950_v61, 4  ;;  %v5267_v52 = vrot.slane %v5252_v29, 9 }
  0xdd   : > { %1473 = vrot.lane.b32.xlu1 %v1394_v9, %s6045_s29  ;;  %2973 = vmatpush.bf16.msra.mxu1 %v5709_v23  ;;  %v5732_v9 = vld [vmem:[%s8016_s4 + $0x118] sm:$0xff]  ;;  %v2109_v21 = vrot.slane %v2108_v12, 4  ;;  %v705_v58 = vrot.slane %v703_v41, 4 }
  0xde   : > { %v355_v25 = vpop.permute.xlu0 %354  ;;  %3045 = vmatpush.bf16.msra.mxu3 %v5721_v51  ;;  %3076 = vmatpush.bf16.msrb.mxu0 %v5732_v9  ;;  %v2094_v27 = vor.u32 %v2093_v15, %v2090_v10  ;;  %v2099_v51 = vrot.slane %v2097_v43, 5  ;;  %v5183_v61 = vld [vmem:[%s6097_s26 + $0x3c] sm:$0x1]  ;;  %v5156_v10 = vld [vmem:[%s6097_s26 + $0x30] sm:$0xf] }
  0xdf   : > { %385 = vst.msk [vmem:[#allocation2 + $0x8] sm:$0xf] %vm384_vm7, %v355_v25  ;;  %v1003_v32 = vpop.permute.xlu1 %1002  ;;  %v5694_v34 = vld [vmem:[#allocation2 + $0xb0] sm:$0xf0]  ;;  %3010 = vmatpush.bf16.msra.mxu2 %v5714_v56  ;;  %v1567_v25 = vrot.slane %v5103_v55, 5  ;;  %v1967_v9 = vshll.u32 %v5183_v61, 16 }
  0xe0   : > { %789 = vst.msk [vmem:[#allocation2 + $0x8] sm:$0xf] %vm788_vm8, %v6473_v6  ;;  %v5355_v37 = vor.u32 %v5694_v34, %v5354_v22  ;;  %v985_v6 = vsel %vm6099_vm2, %v5027_v11, %v984_v18  ;;  %v1684_v11 = vsel %vm6099_vm2, %v5146_v49, %v1683_v50  ;;  %v5166_v18 = vld [vmem:[%s6204_s8 + $0x30] sm:$0xf]  ;;  %v2113_v22 = vrot.slane %v2111_v13, 5 }
  0xe1   : > { %1033 = vst.msk [vmem:[#allocation2 + $0x8] sm:$0xf] %vm1032_vm9, %v1003_v32  ;;  %2974 = vmatpush.bf16.msra.mxu1 %v5708_v40  ;;  %v5182_v32 = vld [vmem:[%s6097_s26 + $0x38] sm:$0xf]  ;;  %v2095_v42 = vrot.slane %v2094_v27, 4  ;;  %v1969_v15 = vrot.slane %v1967_v9, 5 }
  0xe2   : > { %2337 = vst.msk [vmem:[#allocation2 + $0x8] sm:$0xf] %vm323_vm6, %v2290_v31  ;;  %1593 = vrot.lane.b32.xlu2 %v1564_v33, %s6045_s29  ;;  %v5253_v31 = vld [vmem:[%s6204_s8 + $0x3c] sm:$0x1]  ;;  %v2114_v33 = vsel %vm6122_vm5, %v2109_v21, %v2113_v22  ;;  %3077 = vmatpush.bf16.msrb.mxu0 %v5731_v57  ;;  %v1958_v47 = vshrl.u32 %v5182_v32, 16  ;;  %v1961_v49 = vshll.u32 %v5182_v32, 16 }
  0xe3   : > { %2964 = vmatmul.bf16.gmra.mxu0 %v5355_v37  ;;  %v1956_v37 = vsel %vm6122_vm5, %v1951_v19, %v1955_v35  ;;  %2238 = vst.msk [vmem:[#allocation2 + $0x24] sm:$0xf] %vm323_vm6, %v2114_v33  ;;  %v5251_v56 = vld [vmem:[%s6204_s8 + $0x34] sm:$0x1]  ;;  %v2100_v59 = vsel %vm6122_vm5, %v2095_v42, %v2099_v51  ;;  %v5197_v19 = vld [vmem:[%s6204_s8 + $0x24] sm:$0x1] }
  0xe4   : > { %1012 = vrot.lane.b32.xlu0 %v985_v6, %s6043_s27  ;;  %v6651_v48 = vpop.permute.xlu2 %2029  ;;  %v706_v6 = vshll.u32 %v610_v26, 16  ;;  %2237 = vst.msk [vmem:[#allocation2 + $0x10] sm:$0xf] %vm323_vm6, %v2100_v59  ;;  %v1960_v63 = vrot.slane %v1958_v47, 4  ;;  %v1963_v1 = vrot.slane %v1961_v49, 5  ;;  %v2405_v5 = vrot.slane %v5251_v56, 5 }
  0xe5   : > { %1715 = vrot.lane.b32.xlu1 %v1688_v44, %s6044_s28  ;;  %2975 = vmatpush.bf16.msra.mxu1 %v5707_v54  ;;  %v1568_v44 = vsel %vm6099_vm2, %v5117_v24, %v1567_v25  ;;  %v5250_v54 = vld [vmem:[%s6204_s8 + $0x30] sm:$0xe]  ;;  %v936_v21 = vld [vmem:[%s6204_s8 + $0x38] sm:$0xe]  ;;  %v937_v25 = vld [vmem:[%s6204_s8 + $0x3c] sm:$0x1] }
  0xe6   : > { %v761_v16 = vpop.permute.xlu0 %760  ;;  %3078 = vmatpush.bf16.msrb.mxu0 %v5730_v46  ;;  %v708_v62 = vrot.slane %v706_v6, 5  ;;  %v612_v22 = vld [vmem:[%s6204_s8 + $0x38] sm:$0xf]  ;;  %v5086_v26 = vld [vmem:[%s6204_s8 + $0x40] sm:$0xf]  ;;  %v2125_v33 = vshll.u32 %v5197_v19, 16 }
  0xe7   : > { %790 = vst.msk [vmem:[#allocation2 + $0x1c] sm:$0xf] %vm788_vm8, %v761_v16  ;;  %v1468_v4 = vpop.permute.xlu1 %1467  ;;  %v1424_v41 = vshrl.u32 %v5086_v26, 16  ;;  %v1427_v6 = vshll.u32 %v5086_v26, 16  ;;  %v5029_v42 = vrot.slane %v936_v21, 9  ;;  %v992_v43 = vrot.slane %v937_v25, 5 }
  0xe8   : > { %1034 = vst.msk [vmem:[#allocation2 + $0x1c] sm:$0xf] %vm1032_vm9, %v6493_v30  ;;  %v5713_v30 = vld [vmem:[%s8016_s4 + $0x80] sm:$0xff]  ;;  %v709_v7 = vor.u32 %v708_v62, %v705_v58  ;;  %v2127_v49 = vrot.slane %v2125_v33, 5  ;;  %v6771_v56 = vld [vmem:[%s6204_s8 + $0x38] sm:$0xe] }
  0xe9   : > { %2338 = vst.msk [vmem:[#allocation2 + $0x1c] sm:$0xf] %vm323_vm6, %v2294_v53  ;;  %2976 = vmatpush.bf16.msra.mxu1 %v5706_v14  ;;  %3011 = vmatpush.bf16.msra.mxu2 %v5713_v30  ;;  %v5282_v34 = vld [vmem:[#allocation2 + $0x8] sm:$0xf]  ;;  %v2409_v53 = vrot.slane %v5253_v31, 5  ;;  %v1426_v62 = vrot.slane %v1424_v41, 4 }
  0xea   : > { %1496 = vst.msk [vmem:[#allocation2 + $0x20] sm:$0xf] %vm384_vm7, %v1468_v4  ;;  %1837 = vrot.lane.b32.xlu2 %v5167_v60, %s6043_s27  ;;  %v5729_v60 = vld [vmem:[%s8016_s4 + $0x100] sm:$0xff]  ;;  %v5266_v4 = vrot.slane %v5250_v54, 9  ;;  %v710_v13 = vrot.slane %v709_v7, 4  ;;  %v1429_v59 = vrot.slane %v1427_v6, 5 }
  0xeb   : > { %3079 = vmatpush.bf16.msrb.mxu0 %v5729_v60  ;;  %v2410_v20 = vsel %vm6099_vm2, %v5267_v52, %v2409_v53  ;;  %v934_v31 = vld [vmem:[%s6204_s8 + $0x30] sm:$0xe]  ;;  %v5045_v60 = vld [vmem:[%s6204_s8 + $0x20] sm:$0xf]  ;;  %v5087_v7 = vld [vmem:[%s6204_s8 + $0x44] sm:$0x1] }
  0xec   : > { %1713 = vrot.lane.b32.xlu0 %v1684_v11, %s6044_s28  ;;  %v359_v23 = vpop.permute.xlu2 %358  ;;  %v1964_v11 = vor.u32 %v1963_v1, %v1960_v63  ;;  %v2406_v12 = vsel %vm6099_vm2, %v5266_v4, %v2405_v5  ;;  %v5028_v47 = vrot.slane %v934_v31, 9  ;;  %v993_v1 = vsel %vm6099_vm2, %v5029_v42, %v992_v43  ;;  %1118 = vst.msk [vmem:[#allocation2 + $0x48] sm:$0xf] %vm323_vm6, %v5045_v60  ;;  %v5058_v4 = vld [vmem:[%s6097_s26 + $0x20] sm:$0xf] }
  0xed   : > { %387 = vst.msk [vmem:[#allocation2 + $0x30] sm:$0xf] %vm384_vm7, %v359_v23  ;;  %1835 = vrot.lane.b32.xlu1 %v5166_v18, %s6043_s27  ;;  %2977 = vmatpush.bf16.msra.mxu1 %v5705_v39  ;;  %v5196_v18 = vld [vmem:[%s6204_s8 + $0x20] sm:$0xf]  ;;  %v341_v39 = vld [vmem:[%s6204_s8 + $0x38] sm:$0xf] }
  0xee   : > { %v1466_v36 = vpop.permute.xlu0 %1465  ;;  %v1965_v35 = vrot.slane %v1964_v11, 4  ;;  %v2116_v23 = vshrl.u32 %v5196_v18, 16  ;;  %v2119_v57 = vshll.u32 %v5196_v18, 16  ;;  %v1188_v9 = vshrl.u32 %v5058_v4, 16  ;;  %v5057_v26 = vld [vmem:[%s6097_s26 + $0x1c] sm:$0x1] }
  0xef   : > { %1495 = vst.msk [vmem:[#allocation2 + $0xc] sm:$0xf] %vm384_vm7, %v1466_v36  ;;  %v1586_v40 = vpop.permute.xlu1 %1585  ;;  %v720_v36 = vshll.u32 %v612_v22, 16  ;;  %v1433_v21 = vshll.u32 %v5087_v7, 16  ;;  %v5085_v31 = vld [vmem:[%s6204_s8 + $0x3c] sm:$0x1] }
  0xf0   : > { %1735 = vst.msk [vmem:[#allocation2 + $0xc] sm:$0xf] %vm788_vm8, %v6521_v3  ;;  %v5675_v45 = vld [vmem:[#allocation2 + $0x18] sm:$0xf0]  ;;  %v5157_v3 = vld [vmem:[%s6097_s26 + $0x38] sm:$0xf]  ;;  %v1970_v38 = vsel %vm6122_vm5, %v1965_v35, %v1969_v15  ;;  %v1430_v35 = vor.u32 %v1429_v59, %v1426_v62 }
  0xf1   : > { %1615 = vst.msk [vmem:[#allocation2 + $0x4] sm:$0xf] %vm384_vm7, %v1586_v40  ;;  %v5283_v50 = vor.u32 %v5675_v45, %v5282_v34  ;;  %v2118_v32 = vrot.slane %v2116_v23, 4  ;;  %v717_v34 = vshrl.u32 %v612_v22, 16  ;;  %v935_v40 = vld [vmem:[%s6204_s8 + $0x34] sm:$0x1] }
  0xf2   : > { %1796 = vst.msk [vmem:[#allocation2 + $0x4] sm:$0xf] %vm788_vm8, %v6609_v17  ;;  %2035 = vrot.lane.b32.xlu2 %v1956_v37, %s6043_s27  ;;  %v611_v17 = vld [vmem:[%s6204_s8 + $0x34] sm:$0x1]  ;;  %v2121_v37 = vrot.slane %v2119_v57, 5  ;;  %v722_v53 = vrot.slane %v720_v36, 5 }
  0xf3   : > { %3012 = vmatmul.bf16.vlgmr.msra.gmra.mxu2 %v5283_v50  ;;  %v712_v8 = vshll.u32 %v611_v17, 16  ;;  %v6764_v45 = vld [vmem:[%s6204_s8 + $0x38] sm:$0xf]  ;;  %v719_v52 = vrot.slane %v717_v34, 4  ;;  %v5106_v34 = vld [vmem:[%s6097_s26 + $0x40] sm:$0xe] }
  0xf4   : > { %1595 = vrot.lane.b32.xlu0 %v1568_v44, %s6045_s29  ;;  %v6726_v16 = vpop.permute.xlu2 %764  ;;  %v613_v44 = vld [vmem:[%s6204_s8 + $0x3c] sm:$0x1]  ;;  %v2122_v46 = vor.u32 %v2121_v37, %v2118_v32  ;;  %v1410_v17 = vshrl.u32 %v6764_v45, 16  ;;  %v1431_v41 = vrot.slane %v1430_v35, 4  ;;  %v1435_v6 = vrot.slane %v1433_v21, 5 }
  0xf5   : > { %1776 = vrot.lane.b32.xlu1 %v5157_v3, %s6044_s28  ;;  %v714_v14 = vrot.slane %v712_v8, 5  ;;  %v988_v3 = vrot.slane %v935_v40, 5  ;;  %v726_v58 = vshll.u32 %v613_v44, 16  ;;  %v723_v11 = vor.u32 %v722_v53, %v719_v52  ;;  %v5219_v42 = vld [vmem:[%s6097_s26 + $0x2c] sm:$0x1] }
  0xf6   : > { %v1708_v2 = vpop.permute.xlu0 %1707  ;;  %v2123_v54 = vrot.slane %v2122_v46, 4  ;;  %v1412_v36 = vrot.slane %v1410_v17, 4  ;;  %v1183_v44 = vshll.u32 %v5057_v26, 16  ;;  %v1436_v17 = vsel %vm6122_vm5, %v1431_v41, %v1435_v6 }
  0xf7   : > { %1736 = vst.msk [vmem:[#allocation2 + $0x20] sm:$0xf] %vm788_vm8, %v1708_v2  ;;  %v1830_v55 = vpop.permute.xlu1 %1829  ;;  %v715_v29 = vsel %vm6122_vm5, %v710_v13, %v714_v14  ;;  %v5135_v2 = vld [vmem:[%s6204_s8 + $0x3c] sm:$0x1]  ;;  %v5056_v13 = vld [vmem:[%s6097_s26 + $0x18] sm:$0xf]  ;;  %v989_v19 = vsel %vm6099_vm2, %v5028_v47, %v988_v3 }
  0xf8   : > { %1858 = vst.msk [vmem:[#allocation2 + $0x20] sm:$0xf] %vm1032_vm9, %v1830_v55  ;;  %v2128_v8 = vsel %vm6122_vm5, %v2123_v54, %v2127_v49  ;;  %v1413_v14 = vshll.u32 %v6764_v45, 16  ;;  %v1691_v22 = vrot.slane %v5135_v2, 5  ;;  %v728_v23 = vrot.slane %v726_v58, 5 }
  0xf9   : > { %2239 = vst.msk [vmem:[#allocation2 + $0x38] sm:$0xf] %vm323_vm6, %v2128_v8  ;;  %v1174_v32 = vshrl.u32 %v5056_v13, 16  ;;  %v5107_v54 = vld [vmem:[%s6097_s26 + $0x44] sm:$0x1]  ;;  %v1419_v58 = vshll.u32 %v5085_v31, 16 }
  0xfa   : > { %2437 = vrot.lane.b32.xlu2 %v2410_v20, %s6045_s29  ;;  %v340_v20 = vld [vmem:[%s6204_s8 + $0x30] sm:$0xf]  ;;  %v1415_v37 = vrot.slane %v1413_v14, 5  ;;  %v1185_v59 = vrot.slane %v1183_v44, 5  ;;  %v2301_v60 = vrot.slane %v5219_v42, 5  ;;  %v1575_v2 = vrot.slane %v5107_v54, 5 }
  0xfb   : > { %v1176_v43 = vrot.slane %v1174_v32, 4  ;;  %v5186_v8 = vld [vmem:[%s6097_s26 + $0x48] sm:$0xf]  ;;  %v5137_v31 = vld [vmem:[%s6204_s8 + $0x44] sm:$0x1] }
  0xfc   : > { %1774 = vrot.lane.b32.xlu0 %v5156_v10, %s6044_s28  ;;  %v1470_v30 = vpop.permute.xlu2 %1469  ;;  %v1191_v10 = vshll.u32 %v5058_v4, 16  ;;  %v5216_v4 = vld [vmem:[%s6097_s26 + $0x20] sm:$0xe]  ;;  %v1695_v41 = vrot.slane %v5137_v31, 5  ;;  %v5060_v42 = vld [vmem:[%s6097_s26 + $0x28] sm:$0xf] }
  0xfd   : > { %1497 = vst.msk [vmem:[#allocation2 + $0x34] sm:$0xf] %vm384_vm7, %v1470_v30  ;;  %2435 = vrot.lane.b32.xlu1 %v2406_v12, %s6045_s29  ;;  %v5059_v12 = vld [vmem:[%s6097_s26 + $0x24] sm:$0x1]  ;;  %v1190_v30 = vrot.slane %v1188_v9, 4 }
  0xfe   : > { %v1828_v24 = vpop.permute.xlu0 %1827  ;;  %v1193_v15 = vrot.slane %v1191_v10, 5  ;;  %v1197_v18 = vshll.u32 %v5059_v12, 16  ;;  %v5047_v9 = vld [vmem:[%s6204_s8 + $0x30] sm:$0xf]  ;;  %v5184_v12 = vld [vmem:[%s6097_s26 + $0x40] sm:$0xf] }
  0xff   : > { %1857 = vst.msk [vmem:[#allocation2 + $0xc] sm:$0xf] %vm1032_vm9, %v1828_v24  ;;  %v2028_v27 = vpop.permute.xlu1 %2027  ;;  %v5284_v51 = vld [vmem:[#allocation2 + $0x1c] sm:$0xf0]  ;;  %v1975_v32 = vshll.u32 %v5184_v12, 16 }
 0x100   : > { %2057 = vst.msk [vmem:[#allocation2 + $0x4] sm:$0xf] %vm1032_vm9, %v2028_v27  ;;  %v1194_v24 = vor.u32 %v1193_v15, %v1190_v30  ;;  %v1199_v25 = vrot.slane %v1197_v18, 5  ;;  %v724_v27 = vrot.slane %v723_v11, 4  ;;  %v1421_v11 = vrot.slane %v1419_v58, 5 }
 0x101   : > { %1120 = vst.msk [vmem:[#allocation2 + $0x70] sm:$0xf] %vm323_vm6, %v5047_v9  ;;  %v1977_v44 = vrot.slane %v1975_v32, 5  ;;  %v617_v32 = vld [vmem:[%s6204_s8 + $0x4c] sm:$0x1] }
 0x102   : > { %770 = vrot.lane.b32.xlu2 %v715_v29, %s6044_s28  ;;  %v5218_v29 = vld [vmem:[%s6097_s26 + $0x28] sm:$0xe]  ;;  %v729_v52 = vsel %vm6122_vm5, %v724_v27, %v728_v23  ;;  %v1986_v23 = vshrl.u32 %v5186_v8, 16  ;;  %v1972_v27 = vshrl.u32 %v5184_v12, 16 }
 0x103   : > { %v5235_v53 = vrot.slane %v5218_v29, 9 }
 0x104   : > { %2037 = vrot.lane.b32.xlu0 %v1970_v38, %s6043_s27  ;;  %v6767_v50 = vpop.permute.xlu2 %1711  ;;  %v1195_v38 = vrot.slane %v1194_v24, 4  ;;  %v1989_v24 = vshll.u32 %v5186_v8, 16  ;;  %v1974_v6 = vrot.slane %v1972_v27, 4 }
 0x105   : > { %368 = vrot.lane.b32.xlu1 %v341_v39, %s6045_s29  ;;  %v1177_v39 = vshll.u32 %v5056_v13, 16  ;;  %v2302_v30 = vsel %vm6099_vm2, %v5235_v53, %v2301_v60 }
 0x106   : > { %v1769_v61 = vpop.permute.xlu0 %1768  ;;  %v5673_v63 = vld [vmem:[#allocation2 + $0xc] sm:$0xf]  ;;  %v1200_v49 = vsel %vm6122_vm5, %v1195_v38, %v1199_v25  ;;  %v5234_v25 = vrot.slane %v5216_v4, 9  ;;  %v5185_v38 = vld [vmem:[%s6097_s26 + $0x44] sm:$0x1]  ;;  %v1978_v60 = vor.u32 %v1977_v44, %v1974_v6 }
 0x107   : > { %1797 = vst.msk [vmem:[#allocation2 + $0x18] sm:$0xf] %vm788_vm8, %v1769_v61  ;;  %v2430_v5 = vpop.permute.xlu1 %2429  ;;  %v5287_v55 = vor.u32 %v5673_v63, %v5284_v51  ;;  %v5672_v33 = vld [vmem:[#allocation2 + $0x4] sm:$0xf]  ;;  %v1179_v51 = vrot.slane %v1177_v39, 5  ;;  %v5119_v61 = vrot.slane %v5106_v34, 9 }
 0x108   : > { %2058 = vst.msk [vmem:[#allocation2 + $0x18] sm:$0xf] %vm1032_vm9, %v6651_v48  ;;  %v5148_v48 = vrot.slane %v6771_v56, 9  ;;  %v1416_v56 = vor.u32 %v1415_v37, %v1412_v36  ;;  %v5104_v63 = vld [vmem:[%s6097_s26 + $0x38] sm:$0xe]  ;;  %v1988_v36 = vrot.slane %v1986_v23, 4 }
 0x109   : > { %2458 = vst.msk [vmem:[#allocation2 + $0x24] sm:$0xf] %vm384_vm7, %v2430_v5  ;;  %3046 = vmatmul.bf16.vlgmr.msra.gmra.mxu3 %v5287_v55  ;;  %v1180_v62 = vor.u32 %v1179_v51, %v1176_v43  ;;  %v5217_v5 = vld [vmem:[%s6097_s26 + $0x24] sm:$0x1]  ;;  %v5118_v18 = vrot.slane %v5104_v63, 9  ;;  %v1576_v21 = vsel %vm6099_vm2, %v5119_v61, %v1575_v2  ;;  %v1991_v37 = vrot.slane %v1989_v24, 5 }
 0x10a   : > { %1016 = vrot.lane.b32.xlu2 %v993_v1, %s6043_s27  ;;  %v1692_v47 = vsel %vm6099_vm2, %v5148_v48, %v1691_v22  ;;  %1298 = vst.msk [vmem:[#allocation2 + $0x40] sm:$0xf] %vm323_vm6, %v1200_v49  ;;  %v5105_v1 = vld [vmem:[%s6097_s26 + $0x3c] sm:$0x1]  ;;  %v1417_v10 = vrot.slane %v1416_v56, 4  ;;  %v2297_v26 = vrot.slane %v5217_v5, 5 }
 0x10b   : > { %v1181_v55 = vrot.slane %v1180_v62, 4  ;;  %v5136_v22 = vld [vmem:[%s6204_s8 + $0x40] sm:$0xe]  ;;  %v5187_v34 = vld [vmem:[%s6097_s26 + $0x4c] sm:$0x1]  ;;  %v1992_v53 = vor.u32 %v1991_v37, %v1988_v36 }
 0x10c   : > { %366 = vrot.lane.b32.xlu0 %v340_v20, %s6045_s29  ;;  %v6798_v57 = vpop.permute.xlu2 %1831  ;;  %v1422_v29 = vsel %vm6122_vm5, %v1417_v10, %v1421_v11  ;;  %v5061_v43 = vld [vmem:[%s6097_s26 + $0x2c] sm:$0x1]  ;;  %v5158_v51 = vld [vmem:[%s6097_s26 + $0x40] sm:$0xf]  ;;  %v1995_v54 = vshll.u32 %v5187_v34, 16 }
 0x10d   : > { %1014 = vrot.lane.b32.xlu1 %v989_v19, %s6043_s27  ;;  %v1186_v13 = vsel %vm6122_vm5, %v1181_v55, %v1185_v59  ;;  %v1571_v19 = vrot.slane %v5105_v1, 5  ;;  %v1981_v59 = vshll.u32 %v5185_v38, 16  ;;  %v5199_v63 = vld [vmem:[%s6204_s8 + $0x2c] sm:$0x1]  ;;  %v5169_v4 = vld [vmem:[%s6204_s8 + $0x48] sm:$0xf] }
 0x10e   : > { %v2428_v40 = vpop.permute.xlu0 %2427  ;;  %1297 = vst.msk [vmem:[#allocation2 + $0x2c] sm:$0xf] %vm323_vm6, %v1186_v13  ;;  %v616_v5 = vld [vmem:[%s6204_s8 + $0x48] sm:$0xf]  ;;  %v1993_v55 = vrot.slane %v1992_v53, 4  ;;  %v2139_v13 = vshll.u32 %v5199_v63, 16 }
 0x10f   : > { %2457 = vst.msk [vmem:[#allocation2 + $0x10] sm:$0xf] %vm384_vm7, %v2428_v40  ;;  %v763_v45 = vpop.permute.xlu1 %762  ;;  %v5276_v46 = vld [vmem:[#allocation2 + $0x14] sm:$0xf0]  ;;  %v2298_v40 = vsel %vm6099_vm2, %v5234_v25, %v2297_v26  ;;  %v1983_v11 = vrot.slane %v1981_v59, 5 }
 0x110   : > { %791 = vst.msk [vmem:[#allocation2 + $0x30] sm:$0xf] %vm788_vm8, %v763_v45  ;;  %v5279_v3 = vor.u32 %v5672_v33, %v5276_v46  ;;  %v5676_v7 = vld [vmem:[#allocation2 + $0x20] sm:$0xf0]  ;;  %v5149_v33 = vrot.slane %v5136_v22, 9  ;;  %v1202_v45 = vshrl.u32 %v5060_v42, 16 }
 0x111   : > { %v1205_v46 = vshll.u32 %v5060_v42, 16  ;;  %v5168_v24 = vld [vmem:[%s6204_s8 + $0x40] sm:$0xf]  ;;  %v5256_v26 = vld [vmem:[%s6204_s8 + $0x48] sm:$0xe] }
 0x112   : > { %2978 = vmatmul.bf16.vlgmr.msra.gmra.mxu1 %v5279_v3  ;;  %1717 = vrot.lane.b32.xlu2 %v1692_v47, %s6044_s28  ;;  %v1211_v47 = vshll.u32 %v5061_v43, 16  ;;  %v5198_v3 = vld [vmem:[%s6204_s8 + $0x28] sm:$0xf]  ;;  %v1204_v56 = vrot.slane %v1202_v45, 4  ;;  %v1696_v62 = vsel %vm6099_vm2, %v5149_v33, %v1695_v41  ;;  %v5257_v37 = vld [vmem:[%s6204_s8 + $0x4c] sm:$0x1] }
 0x113   : > { %v1207_v58 = vrot.slane %v1205_v46, 5  ;;  %v2130_v1 = vshrl.u32 %v5198_v3, 16  ;;  %v2133_v2 = vshll.u32 %v5198_v3, 16  ;;  %v342_v6 = vld [vmem:[%s6204_s8 + $0x40] sm:$0xf]  ;;  %v2417_v42 = vrot.slane %v5257_v37, 5 }
 0x114   : > { %772 = vrot.lane.b32.xlu0 %v729_v52, %s6044_s28  ;;  %v6823_v20 = vpop.permute.xlu2 %1772  ;;  %v5254_v3 = vld [vmem:[%s6204_s8 + $0x40] sm:$0xe] }
 0x115   : > { %1479 = vrot.lane.b32.xlu1 %v1436_v17, %s6045_s29  ;;  %v1213_v17 = vrot.slane %v1211_v47, 5  ;;  %v1208_v61 = vor.u32 %v1207_v58, %v1204_v56  ;;  %v2132_v9 = vrot.slane %v2130_v1, 4  ;;  %v2135_v12 = vrot.slane %v2133_v2, 5  ;;  %v615_v47 = vld [vmem:[%s6204_s8 + $0x44] sm:$0x1] }
 0x116   : > { %v361_v14 = vpop.permute.xlu0 %360  ;;  %v5290_v15 = vld [vmem:[#allocation2 + $0x10] sm:$0xf] }
 0x117   : > { %388 = vst.msk [vmem:[#allocation2 + $0x44] sm:$0xf] %vm384_vm7, %v361_v14  ;;  %v1009_v48 = vpop.permute.xlu1 %1008  ;;  %v5291_v35 = vor.u32 %v5676_v7, %v5290_v15  ;;  %v1997_v7 = vrot.slane %v1995_v54, 5  ;;  %v1209_v8 = vrot.slane %v1208_v61, 4  ;;  %v745_v14 = vshrl.u32 %v616_v5, 16 }
 0x118   : > { %792 = vst.msk [vmem:[#allocation2 + $0x44] sm:$0xf] %vm788_vm8, %v6726_v16  ;;  %v1572_v16 = vsel %vm6099_vm2, %v5118_v18, %v1571_v19  ;;  %v748_v19 = vshll.u32 %v616_v5, 16  ;;  %v5046_v54 = vld [vmem:[%s6204_s8 + $0x28] sm:$0xf] }
 0x119   : > { %1036 = vst.msk [vmem:[#allocation2 + $0x44] sm:$0xf] %vm1032_vm9, %v1009_v48  ;;  %5516 = vmatmul.msk.bf16.vlgmr.msrb.gmra.mxu0 %vm2920_vm10, %v5291_v35  ;;  %v614_v48 = vld [vmem:[%s6204_s8 + $0x40] sm:$0xf]  ;;  %v2136_v35 = vor.u32 %v2135_v12, %v2132_v9  ;;  %v1998_v23 = vsel %vm6122_vm5, %v1993_v55, %v1997_v7  ;;  %v747_v33 = vrot.slane %v745_v14, 4 }
 0x11a   : > { %2340 = vst.msk [vmem:[#allocation2 + $0x44] sm:$0xf] %vm323_vm6, %v2302_v30  ;;  %1599 = vrot.lane.b32.xlu2 %v1576_v21, %s6045_s29  ;;  %v1214_v30 = vsel %vm6122_vm5, %v1209_v8, %v1213_v17  ;;  %v2141_v21 = vrot.slane %v2139_v13, 5  ;;  %v750_v34 = vrot.slane %v748_v19, 5  ;;  %v740_v17 = vshll.u32 %v615_v47, 16 }
 0x11b   : > { %1299 = vst.msk [vmem:[#allocation2 + $0x54] sm:$0xf] %vm323_vm6, %v1214_v30  ;;  %v5202_v5 = vld [vmem:[%s6204_s8 + $0x38] sm:$0xf]  ;;  %v5203_v55 = vld [vmem:[%s6204_s8 + $0x3c] sm:$0x1] }
 0x11c   : > { %1477 = vrot.lane.b32.xlu0 %v1422_v29, %s6045_s29  ;;  %v2432_v39 = vpop.permute.xlu2 %2431  ;;  %v2137_v29 = vrot.slane %v2136_v35, 4  ;;  %v751_v43 = vor.u32 %v750_v34, %v747_v33  ;;  %1119 = vst.msk [vmem:[#allocation2 + $0x5c] sm:$0xf] %vm323_vm6, %v5046_v54  ;;  %v2158_v8 = vshrl.u32 %v5202_v5, 16  ;;  %v2161_v9 = vshll.u32 %v5202_v5, 16 }
 0x11d   : > { %2459 = vst.msk [vmem:[#allocation2 + $0x38] sm:$0xf] %vm384_vm7, %v2432_v39  ;;  %1597 = vrot.lane.b32.xlu1 %v1572_v16, %s6045_s29  ;;  %v731_v16 = vshrl.u32 %v614_v48, 16  ;;  %v5088_v39 = vld [vmem:[%s6204_s8 + $0x48] sm:$0xf] }
 0x11e   : > { %v1007_v49 = vpop.permute.xlu0 %1006  ;;  %v2142_v36 = vsel %vm6122_vm5, %v2137_v29, %v2141_v21  ;;  %v752_v58 = vrot.slane %v751_v43, 4  ;;  %v2163_v19 = vrot.slane %v2161_v9, 5  ;;  %v5090_v33 = vld [vmem:[%s6204_s8 + $0x50] sm:$0xf]  ;;  %v343_v43 = vld [vmem:[%s6204_s8 + $0x48] sm:$0xf] }
 0x11f   : > { %1035 = vst.msk [vmem:[#allocation2 + $0x30] sm:$0xf] %vm1032_vm9, %v1007_v49  ;;  %v1710_v52 = vpop.permute.xlu1 %1709  ;;  %v733_v44 = vrot.slane %v731_v16, 4  ;;  %v1438_v49 = vshrl.u32 %v5088_v39, 16  ;;  %v939_v47 = vld [vmem:[%s6204_s8 + $0x44] sm:$0x1] }
 0x120   : > { %2339 = vst.msk [vmem:[#allocation2 + $0x30] sm:$0xf] %vm323_vm6, %v2298_v40  ;;  %v754_v40 = vshll.u32 %v617_v32, 16  ;;  %v6914_v1 = vpop.f32.mrf.mxu0  ;;  %v5062_v32 = vld [vmem:[%s6097_s26 + $0x30] sm:$0xf] }
 0x121   : > { %1737 = vst.msk [vmem:[#allocation2 + $0x34] sm:$0xf] %vm788_vm8, %v1710_v52  ;;  %v5680_v15 = vld [vmem:[#allocation2 + $0x40] sm:$0xf0]  ;;  %v5159_v52 = vld [vmem:[%s6097_s26 + $0x48] sm:$0xf] }
 0x122   : > { %1859 = vst.msk [vmem:[#allocation2 + $0x34] sm:$0xf] %vm1032_vm9, %v6798_v57  ;;  %1778 = vrot.lane.b32.xlu2 %v5158_v51, %s6044_s28  ;;  %v1979_v57 = vrot.slane %v1978_v60, 4  ;;  %v1441_v51 = vshll.u32 %v5088_v39, 16  ;;  %v756_v53 = vrot.slane %v754_v40, 5  ;;  %v5268_v60 = vrot.slane %v5254_v3, 9 }
 0x123   : > { %2240 = vst.msk [vmem:[#allocation2 + $0x4c] sm:$0xf] %vm323_vm6, %v2142_v36  ;;  %v1440_v61 = vrot.slane %v1438_v49, 4  ;;  %v1216_v40 = vshrl.u32 %v5062_v32, 16  ;;  %v5138_v49 = vld [vmem:[%s6204_s8 + $0x48] sm:$0xe] }
 0x124   : > { %1719 = vrot.lane.b32.xlu0 %v1696_v62, %s6044_s28  ;;  %v365_v10 = vpop.permute.xlu2 %364  ;;  %v1984_v31 = vsel %vm6122_vm5, %v1979_v57, %v1983_v11  ;;  %v5255_v62 = vld [vmem:[%s6204_s8 + $0x44] sm:$0x1]  ;;  %v1443_v63 = vrot.slane %v1441_v51, 5  ;;  %v757_v12 = vsel %vm6122_vm5, %v752_v58, %v756_v53  ;;  %v742_v57 = vrot.slane %v740_v17, 5  ;;  %v5139_v51 = vld [vmem:[%s6204_s8 + $0x4c] sm:$0x1] }
 0x125   : > { %390 = vst.msk [vmem:[#allocation2 + $0x6c] sm:$0xf] %vm384_vm7, %v365_v10  ;;  %1841 = vrot.lane.b32.xlu1 %v5169_v4, %s6043_s27  ;;  %v5089_v4 = vld [vmem:[%s6204_s8 + $0x4c] sm:$0x1]  ;;  %v2413_v7 = vrot.slane %v5255_v62, 5  ;;  %v2167_v10 = vshll.u32 %v5203_v55, 16 }
 0x126   : > { %v1472_v18 = vpop.permute.xlu0 %1471  ;;  %v1444_v30 = vor.u32 %v1443_v63, %v1440_v61  ;;  %v1452_v3 = vshrl.u32 %v5090_v33, 16  ;;  %v5063_v54 = vld [vmem:[%s6097_s26 + $0x34] sm:$0x1]  ;;  %v1699_v5 = vrot.slane %v5139_v51, 5  ;;  %v5220_v55 = vld [vmem:[%s6097_s26 + $0x30] sm:$0xe] }
 0x127   : > { %1498 = vst.msk [vmem:[#allocation2 + $0x48] sm:$0xf] %vm384_vm7, %v1472_v18  ;;  %v1592_v22 = vpop.permute.xlu1 %1591  ;;  %v5302_v25 = vld [vmem:[#allocation2 + $0x30] sm:$0xf]  ;;  %v2160_v18 = vrot.slane %v2158_v8, 4  ;;  %v2169_v21 = vrot.slane %v2167_v10, 5 }
 0x128   : > { %1738 = vst.msk [vmem:[#allocation2 + $0x48] sm:$0xf] %vm788_vm8, %v6767_v50  ;;  %v5303_v27 = vor.u32 %v5680_v15, %v5302_v25  ;;  %v734_v50 = vshll.u32 %v614_v48, 16  ;;  %v1447_v15 = vshll.u32 %v5089_v4, 16  ;;  %v2414_v48 = vsel %vm6099_vm2, %v5268_v60, %v2413_v7  ;;  %v5201_v51 = vld [vmem:[%s6204_s8 + $0x34] sm:$0x1] }
 0x129   : > { %1618 = vst.msk [vmem:[#allocation2 + $0x40] sm:$0xf] %vm384_vm7, %v1592_v22  ;;  %v2164_v35 = vor.u32 %v2163_v19, %v2160_v18  ;;  %v1225_v17 = vshll.u32 %v5063_v54, 16  ;;  %v5150_v4 = vrot.slane %v5138_v49, 9  ;;  %v1454_v7 = vrot.slane %v1452_v3, 4 }
 0x12a   : > { %1799 = vst.msk [vmem:[#allocation2 + $0x40] sm:$0xf] %vm788_vm8, %v6823_v20  ;;  %2041 = vrot.lane.b32.xlu2 %v1998_v23, %s6043_s27  ;;  %3017 = vmatmul.bf16.gmra.mxu2 %v5303_v27  ;;  %v5269_v20 = vrot.slane %v5256_v26, 9  ;;  %v736_v45 = vrot.slane %v734_v50, 5  ;;  %v940_v23 = vld [vmem:[%s6204_s8 + $0x48] sm:$0xe]  ;;  %v6940_v50 = vpop.f32.mrf.mxu0 }
 0x12b   : > { %v1449_v25 = vrot.slane %v1447_v15, 5  ;;  %v941_v26 = vld [vmem:[%s6204_s8 + $0x4c] sm:$0x1]  ;;  %v2165_v27 = vrot.slane %v2164_v35, 4  ;;  %v5031_v16 = vrot.slane %v940_v23, 9  ;;  %v1227_v10 = vrot.slane %v1225_v17, 5 }
 0x12c   : > { %1839 = vrot.lane.b32.xlu0 %v5168_v24, %s6043_s27  ;;  %v6898_v38 = vpop.permute.xlu2 %1010  ;;  %v2418_v56 = vsel %vm6099_vm2, %v5269_v20, %v2417_v42  ;;  %v737_v59 = vor.u32 %v736_v45, %v733_v44  ;;  %v1445_v24 = vrot.slane %v1444_v30, 4  ;;  %v1000_v39 = vrot.slane %v941_v26, 5  ;;  %v5140_v20 = vld [vmem:[%s6204_s8 + $0x50] sm:$0xe]  ;;  %v5141_v44 = vld [vmem:[%s6204_s8 + $0x54] sm:$0x1] }
 0x12d   : > { %2039 = vrot.lane.b32.xlu1 %v1984_v31, %s6043_s27  ;;  %v5678_v31 = vld [vmem:[#allocation2 + $0x34] sm:$0xf]  ;;  %v2170_v34 = vsel %vm6122_vm5, %v2165_v27, %v2169_v21  ;;  %v1219_v45 = vshll.u32 %v5062_v32, 16  ;;  %v5151_v58 = vrot.slane %v5140_v20, 9  ;;  %v1703_v62 = vrot.slane %v5141_v44, 5 }
 0x12e   : > { %v1590_v41 = vpop.permute.xlu0 %1589  ;;  %v738_v13 = vrot.slane %v737_v59, 4  ;;  %2242 = vst.msk [vmem:[#allocation2 + $0x74] sm:$0xf] %vm323_vm6, %v2170_v34  ;;  %v1450_v42 = vsel %vm6122_vm5, %v1445_v24, %v1449_v25  ;;  %v1001_v53 = vsel %vm6099_vm2, %v5031_v16, %v1000_v39  ;;  %v5236_v35 = vrot.slane %v5220_v55, 9  ;;  %v5110_v26 = vld [vmem:[%s6097_s26 + $0x50] sm:$0xe] }
 0x12f   : > { %1617 = vst.msk [vmem:[#allocation2 + $0x2c] sm:$0xf] %vm384_vm7, %v1590_v41  ;;  %v1771_v46 = vpop.permute.xlu1 %1770  ;;  %v1221_v59 = vrot.slane %v1219_v45, 5  ;;  %v1704_v15 = vsel %vm6099_vm2, %v5151_v58, %v1703_v62  ;;  %v1700_v25 = vsel %vm6099_vm2, %v5150_v4, %v1699_v5  ;;  %v5111_v27 = vld [vmem:[%s6097_s26 + $0x54] sm:$0x1]  ;;  %v2153_v54 = vshll.u32 %v5201_v51, 16 }
 0x130   : > { %1798 = vst.msk [vmem:[#allocation2 + $0x2c] sm:$0xf] %vm788_vm8, %v1771_v46  ;;  %v743_v22 = vsel %vm6122_vm5, %v738_v13, %v742_v57  ;;  %v938_v46 = vld [vmem:[%s6204_s8 + $0x40] sm:$0xe]  ;;  %v5221_v13 = vld [vmem:[%s6097_s26 + $0x34] sm:$0x1] }
 0x131   : > { %v5030_v63 = vrot.slane %v938_v46, 9  ;;  %v5091_v57 = vld [vmem:[%s6204_s8 + $0x54] sm:$0x1]  ;;  %v2305_v21 = vrot.slane %v5221_v13, 5  ;;  %v5310_v16 = vld [vmem:[#allocation2 + $0x38] sm:$0xf] }
 0x132   : > { %370 = vrot.lane.b32.xlu2 %v342_v6, %s6045_s29  ;;  %v6968_v19 = vpop.f32.mrf.mxu0  ;;  %v1461_v23 = vshll.u32 %v5091_v57, 16  ;;  %v1583_v39 = vrot.slane %v5111_v27, 5  ;;  %v5109_v46 = vld [vmem:[%s6097_s26 + $0x4c] sm:$0x1]  ;;  %v5200_v49 = vld [vmem:[%s6204_s8 + $0x30] sm:$0xf] }
 0x133   : > { %v2306_v20 = vsel %vm6099_vm2, %v5236_v35, %v2305_v21  ;;  %v5188_v17 = vld [vmem:[%s6097_s26 + $0x50] sm:$0xf]  ;;  %v1579_v5 = vrot.slane %v5109_v46, 5  ;;  %v2155_v55 = vrot.slane %v2153_v54, 5  ;;  %v5189_v46 = vld [vmem:[%s6097_s26 + $0x54] sm:$0x1] }
 0x134   : > { %1780 = vrot.lane.b32.xlu0 %v5159_v52, %s6044_s28  ;;  %v1476_v2 = vpop.permute.xlu2 %1475  ;;  %v1455_v52 = vshll.u32 %v5090_v33, 16  ;;  %v5170_v33 = vld [vmem:[%s6204_s8 + $0x50] sm:$0xf] }
 0x135   : > { %1500 = vst.msk [vmem:[#allocation2 + $0x70] sm:$0xf] %vm384_vm7, %v1476_v2  ;;  %2441 = vrot.lane.b32.xlu1 %v2418_v56, %s6045_s29  ;;  %v1218_v56 = vrot.slane %v1216_v40, 4  ;;  %v996_v2 = vrot.slane %v939_v47, 5  ;;  %v5190_v47 = vld [vmem:[%s6097_s26 + $0x58] sm:$0xf] }
 0x136   : > { %v1834_v11 = vpop.permute.xlu0 %1833  ;;  %v1457_v8 = vrot.slane %v1455_v52, 5  ;;  %v2144_v52 = vshrl.u32 %v5200_v49, 16  ;;  %v2014_v58 = vshrl.u32 %v5190_v47, 16  ;;  %v2017_v62 = vshll.u32 %v5190_v47, 16 }
 0x137   : > { %1860 = vst.msk [vmem:[#allocation2 + $0x48] sm:$0xf] %vm1032_vm9, %v1834_v11  ;;  %v2034_v14 = vpop.permute.xlu1 %2033  ;;  %v1222_v9 = vor.u32 %v1221_v59, %v1218_v56 }
 0x138   : > { %2060 = vst.msk [vmem:[#allocation2 + $0x40] sm:$0xf] %vm1032_vm9, %v2034_v14 }
 0x139   : > { %v1223_v18 = vrot.slane %v1222_v9, 4  ;;  %v5161_v9 = vld [vmem:[%s6097_s26 + $0x58] sm:$0xf] }
 0x13a   : > { %776 = vrot.lane.b32.xlu2 %v757_v12, %s6044_s28  ;;  %v7002_v56 = vpop.f32.mrf.mxu0 }
 0x13b   : > { %v1228_v24 = vsel %vm6122_vm5, %v1223_v18, %v1227_v10  ;;  %v2019_v18 = vrot.slane %v2017_v62, 5 }
 0x13c   : > { %2439 = vrot.lane.b32.xlu0 %v2414_v48, %s6045_s29  ;;  %v1594_v29 = vpop.permute.xlu2 %1593  ;;  %v997_v48 = vsel %vm6099_vm2, %v5030_v63, %v996_v2  ;;  %1300 = vst.msk [vmem:[#allocation2 + $0x68] sm:$0xf] %vm323_vm6, %v1228_v24  ;;  %v5259_v24 = vld [vmem:[%s6204_s8 + $0x54] sm:$0x1] }
 0x13d   : > { %1619 = vst.msk [vmem:[#allocation2 + $0x54] sm:$0xf] %vm384_vm7, %v1594_v29  ;;  %774 = vrot.lane.b32.xlu1 %v743_v22, %s6044_s28  ;;  %v1458_v22 = vor.u32 %v1457_v8, %v1454_v7  ;;  %v5222_v29 = vld [vmem:[%s6097_s26 + $0x38] sm:$0xe]  ;;  %v5066_v7 = vld [vmem:[%s6097_s26 + $0x40] sm:$0xf] }
 0x13e   : > { %v2032_v36 = vpop.permute.xlu0 %2031  ;;  %v5304_v37 = vld [vmem:[#allocation2 + $0x44] sm:$0xf0]  ;;  %v5067_v8 = vld [vmem:[%s6097_s26 + $0x44] sm:$0x1] }
 0x13f   : > { %2059 = vst.msk [vmem:[#allocation2 + $0x2c] sm:$0xf] %vm1032_vm9, %v2032_v36  ;;  %v363_v41 = vpop.permute.xlu1 %362  ;;  %v5307_v6 = vor.u32 %v5678_v31, %v5304_v37  ;;  %v5296_v61 = vld [vmem:[#allocation2 + $0x3c] sm:$0xf0]  ;;  %v5223_v31 = vld [vmem:[%s6097_s26 + $0x3c] sm:$0x1] }
 0x140   : > { %389 = vst.msk [vmem:[#allocation2 + $0x58] sm:$0xf] %vm384_vm7, %v363_v41  ;;  %v1459_v34 = vrot.slane %v1458_v22, 4  ;;  %v1463_v36 = vrot.slane %v1461_v23, 5  ;;  %v5121_v37 = vrot.slane %v5110_v26, 9  ;;  %v1253_v13 = vshll.u32 %v5067_v8, 16 }
 0x141   : > { %3051 = vmatmul.bf16.gmra.mxu3 %v5307_v6  ;;  %v5237_v6 = vrot.slane %v5222_v29, 9  ;;  %v2003_v26 = vshll.u32 %v5188_v17, 16  ;;  %v3893_v54 = vld [vmem:[#allocation2 + $0x40] sm:$0xf] }
 0x142   : > { %1481 = vrot.lane.b32.xlu2 %v1450_v42, %s6045_s29  ;;  %v2309_v42 = vrot.slane %v5223_v31, 5  ;;  %v1464_v3 = vsel %vm6122_vm5, %v1459_v34, %v1463_v36  ;;  %v1255_v31 = vrot.slane %v1253_v13, 5 }
 0x144   : > { %372 = vrot.lane.b32.xlu0 %v343_v43, %s6045_s29  ;;  %v6959_v60 = vpop.permute.xlu2 %1837  ;;  %v5108_v43 = vld [vmem:[%s6097_s26 + $0x48] sm:$0xe]  ;;  %v2310_v4 = vsel %vm6099_vm2, %v5237_v6, %v2309_v42 }
 0x145   : > { %1020 = vrot.lane.b32.xlu1 %v1001_v53, %s6043_s27  ;;  %v2147_v53 = vshll.u32 %v5200_v49, 16  ;;  %v5120_v59 = vrot.slane %v5108_v43, 9 }
 0x146   : > { %v2434_v11 = vpop.permute.xlu0 %2433  ;;  %v5677_v12 = vld [vmem:[#allocation2 + $0x2c] sm:$0xf] }
 0x147   : > { %2460 = vst.msk [vmem:[#allocation2 + $0x4c] sm:$0xf] %vm384_vm7, %v2434_v11  ;;  %v769_v14 = vpop.permute.xlu1 %768  ;;  %v5299_v30 = vor.u32 %v5677_v12, %v5296_v61  ;;  %v2146_v61 = vrot.slane %v2144_v52, 4  ;;  %v2149_v63 = vrot.slane %v2147_v53, 5  ;;  %v1244_v11 = vshrl.u32 %v5066_v7, 16 }
 0x148   : > { %794 = vst.msk [vmem:[#allocation2 + $0x6c] sm:$0xf] %vm788_vm8, %v769_v14  ;;  %v1247_v12 = vshll.u32 %v5066_v7, 16  ;;  %v5258_v14 = vld [vmem:[%s6204_s8 + $0x50] sm:$0xe]  ;;  %v1580_v23 = vsel %vm6099_vm2, %v5120_v59, %v1579_v5 }
 0x149   : > { %2983 = vmatmul.bf16.gmra.mxu1 %v5299_v30  ;;  %v2150_v10 = vor.u32 %v2149_v63, %v2146_v61  ;;  %v5191_v30 = vld [vmem:[%s6097_s26 + $0x5c] sm:$0x1]  ;;  %v1246_v21 = vrot.slane %v1244_v11, 4  ;;  %v5270_v36 = vrot.slane %v5258_v14, 9  ;;  %v3892_v53 = vld [vmem:[#allocation2 + $0x2c] sm:$0xf]  ;;  %v3913_v61 = vunpack.c.l.bf16 %v3893_v54 }
 0x14a   : > { %1723 = vrot.lane.b32.xlu2 %v1704_v15, %s6044_s28  ;;  %v2016_v15 = vrot.slane %v2014_v58, 4  ;;  %v1249_v22 = vrot.slane %v1247_v12, 5  ;;  %v2023_v34 = vshll.u32 %v5191_v30, 16  ;;  %v2009_v58 = vshll.u32 %v5189_v46, 16  ;;  %v3890_v63 = vld [vmem:[#allocation2 + $0x4] sm:$0xf] }
 0x14b   : > { %v2151_v35 = vrot.slane %v2150_v10, 4  ;;  %v3910_v11 = vunpack.c.l.bf16 %v3890_v63  ;;  %v5049_v30 = vld [vmem:[%s6204_s8 + $0x40] sm:$0xf] }
 0x14c   : > { %1018 = vrot.lane.b32.xlu0 %v997_v48, %s6043_s27  ;;  %v6984_v32 = vpop.permute.xlu2 %2035  ;;  %v1250_v29 = vor.u32 %v1249_v22, %v1246_v21  ;;  %1122 = vst.msk [vmem:[#allocation2 + $0x98] sm:$0xf] %vm323_vm6, %v5049_v30 }
 0x14d   : > { %1721 = vrot.lane.b32.xlu1 %v1700_v25, %s6044_s28  ;;  %v2000_v25 = vshrl.u32 %v5188_v17, 16  ;;  %v2156_v27 = vsel %vm6122_vm5, %v2151_v35, %v2155_v55  ;;  %v3912_v17 = vunpack.c.l.bf16 %v3892_v53  ;;  %v2011_v55 = vrot.slane %v2009_v58, 5 }
 0x14e   : > { %v767_v40 = vpop.permute.xlu0 %766  ;;  %v5681_v41 = vld [vmem:[#allocation2 + $0x48] sm:$0xf0]  ;;  %2241 = vst.msk [vmem:[#allocation2 + $0x60] sm:$0xf] %vm323_vm6, %v2156_v27  ;;  %v5064_v27 = vld [vmem:[%s6097_s26 + $0x38] sm:$0xf] }
 0x14f   : > { %793 = vst.msk [vmem:[#allocation2 + $0x58] sm:$0xf] %vm788_vm8, %v767_v40  ;;  %v1474_v44 = vpop.permute.xlu1 %1473  ;;  %v5311_v45 = vor.u32 %v5681_v41, %v5310_v16  ;;  %v5160_v16 = vld [vmem:[%s6097_s26 + $0x50] sm:$0xf]  ;;  %v2005_v41 = vrot.slane %v2003_v26, 5  ;;  %v5784_v13 = vpack.i.bf16 %v3913_v61, %v3912_v17 }
 0x150   : > { %1037 = vst.msk [vmem:[#allocation2 + $0x58] sm:$0xf] %vm1032_vm9, %v6898_v38  ;;  %v1584_v38 = vsel %vm6099_vm2, %v5121_v37, %v1583_v39  ;;  %v2421_v37 = vrot.slane %v5259_v24, 5  ;;  %v1251_v39 = vrot.slane %v1250_v29, 4  ;;  %v5065_v29 = vld [vmem:[%s6097_s26 + $0x3c] sm:$0x1] }
 0x151   : > { %2341 = vst.msk [vmem:[#allocation2 + $0x58] sm:$0xf] %vm323_vm6, %v2306_v20  ;;  %5517 = vmatmul.msk.bf16.gmra.mxu0 %vm2920_vm10, %v5311_v45  ;;  %v7032_v20 = vpop.f32.mrf.mxu0  ;;  %v2025_v45 = vrot.slane %v2023_v34, 5  ;;  %v1239_v34 = vshll.u32 %v5065_v29, 16 }
 0x152   : > { %1499 = vst.msk [vmem:[#allocation2 + $0x5c] sm:$0xf] %vm384_vm7, %v1474_v44  ;;  %1843 = vrot.lane.b32.xlu2 %v5170_v33, %s6043_s27  ;;  %v2020_v33 = vor.u32 %v2019_v18, %v2016_v15  ;;  %v1256_v6 = vsel %vm6122_vm5, %v1251_v39, %v1255_v31  ;;  %v2422_v49 = vsel %vm6099_vm2, %v5270_v36, %v2421_v37  ;;  %v5260_v15 = vld [vmem:[%s6204_s8 + $0x58] sm:$0xe]  ;;  %v5261_v18 = vld [vmem:[%s6204_s8 + $0x5c] sm:$0x1] }
 0x153   : > { %1302 = vst.msk [vmem:[#allocation2 + $0x90] sm:$0xf] %vm323_vm6, %v1256_v6  ;;  %v5271_v21 = vrot.slane %v5260_v15, 9  ;;  %v2425_v22 = vrot.slane %v5261_v18, 5  ;;  %v1241_v6 = vrot.slane %v1239_v34, 5 }
 0x154   : > { %1483 = vrot.lane.b32.xlu0 %v1464_v3, %s6045_s29  ;;  %v2438_v2 = vpop.permute.xlu2 %2437  ;;  %v2021_v44 = vrot.slane %v2020_v33, 4  ;;  %v5171_v3 = vld [vmem:[%s6204_s8 + $0x58] sm:$0xf]  ;;  %v1233_v33 = vshll.u32 %v5064_v27, 16  ;;  %v5050_v18 = vld [vmem:[%s6204_s8 + $0x48] sm:$0xf] }
 0x155   : > { %2462 = vst.msk [vmem:[#allocation2 + $0x74] sm:$0xf] %vm384_vm7, %v2438_v2  ;;  %1603 = vrot.lane.b32.xlu1 %v1584_v38, %s6045_s29  ;;  %v3891_v2 = vld [vmem:[#allocation2 + $0x18] sm:$0xf]  ;;  %v2426_v31 = vsel %vm6099_vm2, %v5271_v21, %v2425_v22 }
 0x156   : > { %v1013_v57 = vpop.permute.xlu0 %1012  ;;  %v2026_v62 = vsel %vm6122_vm5, %v2021_v44, %v2025_v45  ;;  %v3911_v12 = vunpack.c.l.bf16 %v3891_v2  ;;  %v1235_v37 = vrot.slane %v1233_v33, 5  ;;  %v5225_v44 = vld [vmem:[%s6097_s26 + $0x44] sm:$0x1]  ;;  %1123 = vst.msk [vmem:[#allocation2 + $0xac] sm:$0xf] %vm323_vm6, %v5050_v18 }
 0x157   : > { %1038 = vst.msk [vmem:[#allocation2 + $0x6c] sm:$0xf] %vm1032_vm9, %v1013_v57  ;;  %v1716_v48 = vpop.permute.xlu1 %1715  ;;  %v2313_v53 = vrot.slane %v5225_v44, 5 }
 0x158   : > { %2342 = vst.msk [vmem:[#allocation2 + $0x6c] sm:$0xf] %vm323_vm6, %v2310_v4  ;;  %v5322_v42 = vld [vmem:[#allocation2 + $0x58] sm:$0xf] }
 0x159   : > { %1740 = vst.msk [vmem:[#allocation2 + $0x70] sm:$0xf] %vm788_vm8, %v1716_v48  ;;  %v7054_v7 = vpop.f32.mrf.mxu0  ;;  %v5779_v48 = vpack.i.bf16 %v3911_v12, %v3910_v11 }
 0x15a   : > { %1862 = vst.msk [vmem:[#allocation2 + $0x70] sm:$0xf] %vm1032_vm9, %v6959_v60  ;;  %1784 = vrot.lane.b32.xlu2 %v5161_v9, %s6044_s28  ;;  %v2002_v60 = vrot.slane %v2000_v25, 4 }
 0x15c   : > { %1601 = vrot.lane.b32.xlu0 %v1580_v23, %s6045_s29  ;;  %v7035_v40 = vpop.permute.xlu2 %770  ;;  %v2006_v38 = vor.u32 %v2005_v41, %v2002_v60  ;;  %v5048_v23 = vld [vmem:[%s6204_s8 + $0x38] sm:$0xf]  ;;  %v5686_v41 = vld [vmem:[#allocation2 + $0x70] sm:$0xf0] }
 0x15d   : > { %1782 = vrot.lane.b32.xlu1 %v5160_v16, %s6044_s28  ;;  %1121 = vst.msk [vmem:[#allocation2 + $0x84] sm:$0xf] %vm323_vm6, %v5048_v23  ;;  %v1230_v16 = vshrl.u32 %v5064_v27, 16  ;;  %v2570_v27 = vld [vmem:[%s7128_s16 + $0x8] sm:$0xff] }
 0x15e   : > { %v1714_v43 = vpop.permute.xlu0 %1713  ;;  %v2007_v5 = vrot.slane %v2006_v38, 4 }
 0x15f   : > { %1739 = vst.msk [vmem:[#allocation2 + $0x5c] sm:$0xf] %vm788_vm8, %v1714_v43  ;;  %v1836_v47 = vpop.permute.xlu1 %1835  ;;  %v5685_v51 = vld [vmem:[#allocation2 + $0x68] sm:$0xf0]  ;;  %v1232_v36 = vrot.slane %v1230_v16, 4 }
 0x160   : > { %1861 = vst.msk [vmem:[#allocation2 + $0x5c] sm:$0xf] %vm1032_vm9, %v1836_v47  ;;  %v5323_v52 = vor.u32 %v5685_v51, %v5322_v42  ;;  %v2012_v14 = vsel %vm6122_vm5, %v2007_v5, %v2011_v55  ;;  %v5224_v43 = vld [vmem:[%s6097_s26 + $0x40] sm:$0xe]  ;;  %v5226_v55 = vld [vmem:[%s6097_s26 + $0x48] sm:$0xe] }
 0x161   : > { %v5324_v4 = vld [vmem:[#allocation2 + $0x6c] sm:$0xf0]  ;;  %v7072_v26 = vpop.f32.mrf.mxu0 }
 0x162   : > { %2443 = vrot.lane.b32.xlu2 %v2422_v49, %s6045_s29  ;;  %3022 = vmatmul.bf16.gmra.mxu2 %v5323_v52  ;;  %v5238_v52 = vrot.slane %v5224_v43, 9 }
 0x164   : > { %1845 = vrot.lane.b32.xlu0 %v5171_v3, %s6043_s27  ;;  %v7051_v59 = vpop.permute.xlu2 %1016  ;;  %v2314_v63 = vsel %vm6099_vm2, %v5238_v52, %v2313_v53 }
 0x165   : > { %2045 = vrot.lane.b32.xlu1 %v2026_v62, %s6043_s27 }
 0x166   : > { %v1596_v8 = vpop.permute.xlu0 %1595 }
 0x167   : > { %1620 = vst.msk [vmem:[#allocation2 + $0x68] sm:$0xf] %vm384_vm7, %v1596_v8  ;;  %v1777_v9 = vpop.permute.xlu1 %1776  ;;  %v5683_v10 = vld [vmem:[#allocation2 + $0x5c] sm:$0xf]  ;;  %v5227_v8 = vld [vmem:[%s6097_s26 + $0x4c] sm:$0x1] }
 0x168   : > { %1801 = vst.msk [vmem:[#allocation2 + $0x68] sm:$0xf] %vm788_vm8, %v1777_v9  ;;  %v5327_v57 = vor.u32 %v5683_v10, %v5324_v4  ;;  %v5239_v10 = vrot.slane %v5226_v55, 9  ;;  %v2317_v11 = vrot.slane %v5227_v8, 5  ;;  %v5209_v55 = vld [vmem:[%s6204_s8 + $0x54] sm:$0x1] }
 0x169   : > { %v7087_v49 = vpop.f32.mrf.mxu0 }
 0x16a   : > { %5785 = vrot.lane.b32.xlu2 %v5784_v13, %s6045_s29  ;;  %3056 = vmatmul.bf16.gmra.mxu3 %v5327_v57  ;;  %v2318_v57 = vsel %vm6099_vm2, %v5239_v10, %v2317_v11  ;;  %v2209_v11 = vshll.u32 %v5209_v55, 16 }
 0x16c   : > { %2043 = vrot.lane.b32.xlu0 %v2012_v14, %s6043_s27  ;;  %v7066_v35 = vpop.permute.xlu2 %1717 }
 0x16d   : > { %5780 = vrot.lane.b32.xlu1 %v5779_v48, %s6045_s29 }
 0x16e   : > { %v1775_v24 = vpop.permute.xlu0 %1774 }
 0x16f   : > { %1800 = vst.msk [vmem:[#allocation2 + $0x54] sm:$0xf] %vm788_vm8, %v1775_v24  ;;  %v2436_v25 = vpop.permute.xlu1 %2435  ;;  %v5206_v24 = vld [vmem:[%s6204_s8 + $0x48] sm:$0xf] }
 0x170   : > { %2061 = vst.msk [vmem:[#allocation2 + $0x54] sm:$0xf] %vm1032_vm9, %v6984_v32  ;;  %v1236_v32 = vor.u32 %v1235_v37, %v1232_v36  ;;  %v2186_v29 = vshrl.u32 %v5206_v24, 16 }
 0x171   : > { %2461 = vst.msk [vmem:[#allocation2 + $0x60] sm:$0xf] %vm384_vm7, %v2436_v25  ;;  %v7103_v12 = vpop.f32.mrf.mxu0  ;;  %v5204_v25 = vld [vmem:[%s6204_s8 + $0x40] sm:$0xf] }
 0x172   : > { %v1237_v46 = vrot.slane %v1236_v32, 4  ;;  %v2172_v16 = vshrl.u32 %v5204_v25, 16  ;;  %v2188_v34 = vrot.slane %v2186_v29, 4 }
 0x174   : > { %2445 = vrot.lane.b32.xlu0 %v2426_v31, %s6045_s29  ;;  %v1600_v39 = vpop.permute.xlu2 %1599  ;;  %v1242_v3 = vsel %vm6122_vm5, %v1237_v46, %v1241_v6  ;;  %v2189_v31 = vshll.u32 %v5206_v24, 16  ;;  %v2174_v37 = vrot.slane %v2172_v16, 4 }
 0x175   : > { %1622 = vst.msk [vmem:[#allocation2 + $0x90] sm:$0xf] %vm384_vm7, %v1600_v39  ;;  %v2948_v39 = vadd.f32 %v6940_v50, %v2570_v27  ;;  %v2211_v27 = vrot.slane %v2209_v11, 5 }
 0x176   : > { %v2038_v60 = vpop.permute.xlu0 %2037  ;;  %1301 = vst.msk [vmem:[#allocation2 + $0x7c] sm:$0xf] %vm323_vm6, %v1242_v3  ;;  %v7114_v30 = vpop.f32.mrf.mxu2  ;;  %v2191_v36 = vrot.slane %v2189_v31, 5  ;;  %v2569_v3 = vld [vmem:[%s7128_s16] sm:$0xff] }
 0x177   : > { %2062 = vst.msk [vmem:[#allocation2 + $0x68] sm:$0xf] %vm1032_vm9, %v2038_v60  ;;  %v369_v42 = vpop.permute.xlu1 %368  ;;  %v3894_v51 = vld [vmem:[#allocation2 + $0x54] sm:$0xf]  ;;  %v5207_v60 = vld [vmem:[%s6204_s8 + $0x4c] sm:$0x1] }
 0x178   : > { %392 = vst.msk [vmem:[#allocation2 + $0x94] sm:$0xf] %vm384_vm7, %v369_v42  ;;  %v5330_v45 = vld [vmem:[#allocation2 + $0x60] sm:$0xf]  ;;  %v5682_v38 = vld [vmem:[#allocation2 + $0x54] sm:$0xf]  ;;  %v3914_v58 = vunpack.c.l.bf16 %v3894_v51  ;;  %v2192_v44 = vor.u32 %v2191_v36, %v2188_v34 }
 0x179   : > { %v5331_v47 = vor.u32 %v5686_v41, %v5330_v45  ;;  %v7119_v48 = vpop.f32.mrf.mxu0  ;;  %v2195_v45 = vshll.u32 %v5207_v60, 16  ;;  %v5051_v60 = vld [vmem:[%s6204_s8 + $0x50] sm:$0xf] }
 0x17a   : > { %1124 = vst.msk [vmem:[#allocation2 + $0xc0] sm:$0xf] %vm323_vm6, %v5051_v60  ;;  %v2571_v60 = vld [vmem:[%s7128_s16 + $0x10] sm:$0xff] }
 0x17b   : > { %5518 = vmatmul.msk.bf16.gmra.mxu0 %vm2920_vm10, %v5331_v47  ;;  %v5205_v47 = vld [vmem:[%s6204_s8 + $0x44] sm:$0x1] }
 0x17c   : > { %v1779_v54 = vpop.permute.xlu2 %1778 }
 0x17e   : > { %v367_v62 = vpop.permute.xlu0 %366  ;;  %v5316_v17 = vld [vmem:[#allocation2 + $0x64] sm:$0xf0]  ;;  %v3015_v32 = vpop.f32.mrf.mxu2 }
 0x17f   : > { %v3895_v61 = vld [vmem:[#allocation2 + $0x68] sm:$0xf]  ;;  %391 = vst.msk [vmem:[#allocation2 + $0x80] sm:$0xf] %vm384_vm7, %v367_v62  ;;  %v1015_v2 = vpop.permute.xlu1 %1014  ;;  %v5319_v4 = vor.u32 %v5682_v38, %v5316_v17  ;;  %v2193_v38 = vrot.slane %v2192_v44, 4 }
 0x180   : > { %v3915_v5 = vunpack.c.l.bf16 %v3895_v61  ;;  %795 = vst.msk [vmem:[#allocation2 + $0x80] sm:$0xf] %vm788_vm8, %v7035_v40  ;;  %v2946_v61 = vadd.f32 %v6914_v1, %v2569_v3 }
 0x181   : > { %1039 = vst.msk [vmem:[#allocation2 + $0x80] sm:$0xf] %vm1032_vm9, %v1015_v2  ;;  %2988 = vmatmul.bf16.gmra.mxu1 %v5319_v4 }
 0x182   : > { %v5789_v9 = vpack.i.bf16 %v3915_v5, %v3914_v58  ;;  %2343 = vst.msk [vmem:[#allocation2 + $0x80] sm:$0xf] %vm323_vm6, %v2314_v63  ;;  %v2197_v58 = vrot.slane %v2195_v45, 5  ;;  %v5208_v5 = vld [vmem:[%s6204_s8 + $0x50] sm:$0xf] }
 0x183   : > { %v2203_v10 = vshll.u32 %v5208_v5, 16 }
 0x184   : > { %5790 = vrot.lane.b32.xlu0 %v5789_v9, %s6045_s29  ;;  %v7105_v13 = vpop.permute.xlu2 %2041  ;;  %v2198_v2 = vsel %vm6122_vm5, %v2193_v38, %v2197_v58  ;;  %v2200_v9 = vshrl.u32 %v5208_v5, 16 }
 0x185   : > { %2244 = vst.msk [vmem:[#allocation2 + $0x9c] sm:$0xf] %vm323_vm6, %v2198_v2  ;;  %v2205_v18 = vrot.slane %v2203_v10, 5  ;;  %v5069_v2 = vld [vmem:[%s6097_s26 + $0x4c] sm:$0x1] }
 0x186   : > { %v773_v40 = vpop.permute.xlu0 %772  ;;  %v2202_v1 = vrot.slane %v2200_v9, 4  ;;  %v1267_v55 = vshll.u32 %v5069_v2, 16 }
 0x187   : > { %796 = vst.msk [vmem:[#allocation2 + $0x94] sm:$0xf] %vm788_vm8, %v773_v40  ;;  %v1480_v14 = vpop.permute.xlu1 %1479 }
 0x188   : > { %1040 = vst.msk [vmem:[#allocation2 + $0x94] sm:$0xf] %vm1032_vm9, %v7051_v59 }
 0x189   : > { %2344 = vst.msk [vmem:[#allocation2 + $0x94] sm:$0xf] %vm323_vm6, %v2318_v57  ;;  %v5342_v41 = vld [vmem:[#allocation2 + $0x80] sm:$0xf] }
 0x18a   : > { %1502 = vst.msk [vmem:[#allocation2 + $0x98] sm:$0xf] %vm384_vm7, %v1480_v14 }
 0x18c   : > { %v371_v15 = vpop.permute.xlu2 %370  ;;  %v7130_v23 = vpop.f32.mrf.mxu3 }
 0x18d   : > { %393 = vst.msk [vmem:[#allocation2 + $0xa8] sm:$0xf] %vm384_vm7, %v371_v15 }
 0x18e   : > { %v1478_v21 = vpop.permute.xlu0 %1477 }
 0x18f   : > { %1501 = vst.msk [vmem:[#allocation2 + $0x84] sm:$0xf] %vm384_vm7, %v1478_v21  ;;  %v2979_v59 = vpop.f32.mrf.mxu1  ;;  %v1598_v22 = vpop.permute.xlu1 %1597 }
 0x190   : > { %1741 = vst.msk [vmem:[#allocation2 + $0x84] sm:$0xf] %vm788_vm8, %v7066_v35  ;;  %v2175_v35 = vshll.u32 %v5204_v25, 16  ;;  %v5690_v6 = vld [vmem:[#allocation2 + $0x90] sm:$0xf0]  ;;  %v2980_v57 = vadd.f32 %v2979_v59, %v2946_v61  ;;  %v2206_v59 = vor.u32 %v2205_v18, %v2202_v1 }
 0x191   : > { %1621 = vst.msk [vmem:[#allocation2 + $0x7c] sm:$0xf] %vm384_vm7, %v1598_v22  ;;  %v5343_v46 = vor.u32 %v5690_v6, %v5342_v41  ;;  %v5070_v6 = vld [vmem:[%s6097_s26 + $0x50] sm:$0xf]  ;;  %v5068_v61 = vld [vmem:[%s6097_s26 + $0x48] sm:$0xf] }
 0x192   : > { %1802 = vst.msk [vmem:[#allocation2 + $0x7c] sm:$0xf] %vm788_vm8, %v1779_v54  ;;  %v2177_v51 = vrot.slane %v2175_v35, 5  ;;  %v2181_v54 = vshll.u32 %v5205_v47, 16  ;;  %v3014_v29 = vadd.f32 %v7114_v30, %v2980_v57  ;;  %v2207_v31 = vrot.slane %v2206_v59, 4 }
 0x193   : > { %3027 = vmatmul.bf16.gmra.mxu2 %v5343_v46  ;;  %v1275_v44 = vshll.u32 %v5070_v6, 16  ;;  %v1261_v5 = vshll.u32 %v5068_v61, 16 }
 0x194   : > { %v7137_v33 = vpop.permute.xlu2 %776  ;;  %v2178_v62 = vor.u32 %v2177_v51, %v2174_v37  ;;  %v2183_v17 = vrot.slane %v2181_v54, 5  ;;  %v3049_v8 = vpop.f32.mrf.mxu3  ;;  %v2212_v16 = vsel %vm6122_vm5, %v2207_v31, %v2211_v27  ;;  %v3048_v35 = vadd.f32 %v7130_v23, %v3014_v29  ;;  %v5230_v54 = vld [vmem:[%s6097_s26 + $0x58] sm:$0xe] }
 0x195   : > { %2245 = vst.msk [vmem:[#allocation2 + $0xb0] sm:$0xf] %vm323_vm6, %v2212_v16  ;;  %v1272_v23 = vshrl.u32 %v5070_v6, 16  ;;  %v1277_v47 = vrot.slane %v1275_v44, 5  ;;  %v1263_v11 = vrot.slane %v1261_v5, 5 }
 0x196   : > { %v1720_v42 = vpop.permute.xlu0 %1719  ;;  %v3081_v43 = vpop.f32.mrf.mxu0  ;;  %v2179_v4 = vrot.slane %v2178_v62, 4 }
 0x197   : > { %1742 = vst.msk [vmem:[#allocation2 + $0x98] sm:$0xf] %vm788_vm8, %v1720_v42  ;;  %v2981_v52 = vpop.f32.mrf.mxu1  ;;  %v1842_v53 = vpop.permute.xlu1 %1841  ;;  %v3082_v41 = vadd.f32 %v3081_v43, %v3048_v35  ;;  %v5071_v42 = vld [vmem:[%s6097_s26 + $0x54] sm:$0x1]  ;;  %v1274_v46 = vrot.slane %v1272_v23, 4 }
 0x198   : > { %v2982_v50 = vadd.f32 %v2981_v52, %v2948_v39  ;;  %1864 = vst.msk [vmem:[#allocation2 + $0x98] sm:$0xf] %vm1032_vm9, %v1842_v53  ;;  %v2184_v15 = vsel %vm6122_vm5, %v2179_v4, %v2183_v17  ;;  %v1281_v45 = vshll.u32 %v5071_v42, 16  ;;  %v5231_v17 = vld [vmem:[%s6097_s26 + $0x5c] sm:$0x1]  ;;  %v1258_v4 = vshrl.u32 %v5068_v61, 16 }
 0x199   : > { %2243 = vst.msk [vmem:[#allocation2 + $0x88] sm:$0xf] %vm323_vm6, %v2184_v15  ;;  %v5521_v51 = vmul.f32 -1.442695, %v3082_v41  ;;  %v2325_v9 = vrot.slane %v5231_v17, 5  ;;  %v1269_v15 = vrot.slane %v1267_v55, 5  ;;  %v2951_v42 = vadd.f32 %v6968_v19, %v2571_v60 }
 0x19a   : > { %v3016_v63 = vadd.f32 %v3015_v32, %v2982_v50  ;;  %v1283_v52 = vrot.slane %v1281_v45, 5  ;;  %v1260_v10 = vrot.slane %v1258_v4, 4 }
 0x19b   : > { %5979 = vpow2.f32 %v5521_v51 }
 0x19c   : > { %v1482_v40 = vpop.permute.xlu2 %1481  ;;  %v3050_v14 = vadd.f32 %v3049_v8, %v3016_v63  ;;  %v5241_v8 = vrot.slane %v5230_v54, 9 }
 0x19d   : > { %1503 = vst.msk [vmem:[#allocation2 + $0xac] sm:$0xf] %vm384_vm7, %v1482_v40 }
 0x19e   : > { %v1840_v21 = vpop.permute.xlu0 %1839  ;;  %v3083_v22 = vpop.f32.mrf.mxu0  ;;  %v2326_v59 = vsel %vm6099_vm2, %v5241_v8, %v2325_v9 }
 0x19f   : > { %1863 = vst.msk [vmem:[#allocation2 + $0x84] sm:$0xf] %vm1032_vm9, %v1840_v21  ;;  %v7156_v24 = vadd.f32 %v3083_v22, %v3050_v14  ;;  %v2040_v25 = vpop.permute.xlu1 %2039  ;;  %v5344_v36 = vld [vmem:[#allocation2 + $0x94] sm:$0xf0]  ;;  %v1264_v14 = vor.u32 %v1263_v11, %v1260_v10  ;;  %v5228_v22 = vld [vmem:[%s6097_s26 + $0x50] sm:$0xe] }
 0x1a0   : > { %2063 = vst.msk [vmem:[#allocation2 + $0x7c] sm:$0xf] %vm1032_vm9, %v2040_v25  ;;  %v5229_v25 = vld [vmem:[%s6097_s26 + $0x54] sm:$0x1]  ;;  %v5240_v35 = vrot.slane %v5228_v22, 9 }
 0x1a1   : > { %v5980_v1 = vpop.eup %5979  ;;  %v1265_v31 = vrot.slane %v1264_v14, 4 }
 0x1a2   : > { %v7190_v16 = vadd.f32 1.0, %v5980_v1 }
 0x1a4   : > { %v7163_v34 = vpop.permute.xlu2 %1723  ;;  %5981 = vrcp.f32 %v7190_v16  ;;  %v3157_v1 = vand.u32 2147483648, %v7190_v16  ;;  %vm3151_vm12 = vweird.f32 %v7190_v16 }
 0x1a6   : > { %v1781_v37 = vpop.permute.xlu0 %1780  ;;  %v5688_v39 = vld [vmem:[#allocation2 + $0x84] sm:$0xf] }
 0x1a7   : > { %1803 = vst.msk [vmem:[#allocation2 + $0x90] sm:$0xf] %vm788_vm8, %v1781_v37  ;;  %v2442_v30 = vpop.permute.xlu1 %2441  ;;  %v5347_v32 = vor.u32 %v5688_v39, %v5344_v36  ;;  %v5687_v3 = vld [vmem:[#allocation2 + $0x7c] sm:$0xf]  ;;  %v2321_v36 = vrot.slane %v5229_v25, 5  ;;  %v1270_v37 = vsel %vm6122_vm5, %v1265_v31, %v1269_v15 }
 0x1a8   : > { %2064 = vst.msk [vmem:[#allocation2 + $0x90] sm:$0xf] %vm1032_vm9, %v7105_v13  ;;  %v1278_v13 = vor.u32 %v1277_v47, %v1274_v46 }
 0x1a9   : > { %2464 = vst.msk [vmem:[#allocation2 + $0x9c] sm:$0xf] %vm384_vm7, %v2442_v30  ;;  %3061 = vmatmul.bf16.gmra.mxu3 %v5347_v32 }
 0x1aa   : > { %v1279_v58 = vrot.slane %v1278_v13, 4  ;;  %1303 = vst.msk [vmem:[#allocation2 + $0xa4] sm:$0xf] %vm323_vm6, %v1270_v37  ;;  %v7207_v41 = vpop.eup %5981 }
 0x1ab   : > { %v3147_v0 = vmul.f32 %v7207_v41, %v7190_v16  ;;  %vm3152_vm11 = vweird.f32 %v7207_v41 }
 0x1ac   : > { %v1844_v43 = vpop.permute.xlu2 %1843  ;;  %v1284_v63 = vsel %vm6122_vm5, %v1279_v58, %v1283_v52  ;;  %v5210_v52 = vld [vmem:[%s6204_s8 + $0x58] sm:$0xf]  ;;  %vm3153_vm13 = vmor %vm3151_vm12, %vm3152_vm11 }
 0x1ad   : > { %1304 = vst.msk [vmem:[#allocation2 + $0xb8] sm:$0xf] %vm323_vm6, %v1284_v63  ;;  %v3018_v6 = vpop.f32.mrf.mxu2  ;;  %v3148_v19 = vsub.f32 1.0, %v3147_v0  ;;  %v2214_v54 = vshrl.u32 %v5210_v52, 16 }
 0x1ae   : > { %v2440_v53 = vpop.permute.xlu0 %2439 }
 0x1af   : > { %2463 = vst.msk [vmem:[#allocation2 + $0x88] sm:$0xf] %vm384_vm7, %v2440_v53  ;;  %v775_v50 = vpop.permute.xlu1 %774  ;;  %v5336_v38 = vld [vmem:[#allocation2 + $0x8c] sm:$0xf0]  ;;  %v3149_v5 = vmul.f32 %v7207_v41, %v3148_v19 }
 0x1b0   : > { %797 = vst.msk [vmem:[#allocation2 + $0xa8] sm:$0xf] %vm788_vm8, %v775_v50  ;;  %v5339_v62 = vor.u32 %v5687_v3, %v5336_v38  ;;  %v5691_v40 = vld [vmem:[#allocation2 + $0x98] sm:$0xf0]  ;;  %v2217_v50 = vshll.u32 %v5210_v52, 16 }
 0x1b1   : > { %v5211_v38 = vld [vmem:[%s6204_s8 + $0x5c] sm:$0x1]  ;;  %v3150_v15 = vadd.f32 %v7207_v41, %v3149_v5 }
 0x1b2   : > { %2993 = vmatmul.bf16.gmra.mxu1 %v5339_v62  ;;  %v2219_v17 = vrot.slane %v2217_v50, 5  ;;  %v2223_v61 = vshll.u32 %v5211_v38, 16 }
 0x1b4   : > { %v1785_v57 = vpop.permute.xlu2 %1784  ;;  %v2225_v11 = vrot.slane %v2223_v61, 5 }
 0x1b5   : > { %v3020_v62 = vpop.f32.mrf.mxu2 }
 0x1b6   : > { %v373_v18 = vpop.permute.xlu0 %372  ;;  %v5350_v21 = vld [vmem:[#allocation2 + $0x88] sm:$0xf] }
 0x1b7   : > { %394 = vst.msk [vmem:[#allocation2 + $0xbc] sm:$0xf] %vm384_vm7, %v373_v18  ;;  %v1021_v27 = vpop.permute.xlu1 %1020  ;;  %v5351_v29 = vor.u32 %v5691_v40, %v5350_v21  ;;  %v3155_v21 = vand.u32 2147483647, %v7190_v16 }
 0x1b8   : > { %798 = vst.msk [vmem:[#allocation2 + $0xbc] sm:$0xf] %vm788_vm8, %v7137_v33  ;;  %v2322_v33 = vsel %vm6099_vm2, %v5240_v35, %v2321_v36  ;;  %v3158_v35 = vor.u32 1.1754944e-38, %v3157_v1 }
 0x1b9   : > { %1042 = vst.msk [vmem:[#allocation2 + $0xbc] sm:$0xf] %vm1032_vm9, %v1021_v27  ;;  %5519 = vmatmul.msk.bf16.gmra.mxu0 %vm2920_vm10, %v5351_v29  ;;  %v3154_v27 = vsel %vm3153_vm13, %v7207_v41, %v3150_v15  ;;  %vm3156_vm14 = vcmp.eq.f32.partialorder %v3155_v21, 8.507059e+37 }
 0x1ba   : > { %2346 = vst.msk [vmem:[#allocation2 + $0xbc] sm:$0xf] %vm323_vm6, %v2326_v59  ;;  %v7240_v36 = vsel %vm3156_vm14, %v3158_v35, %v3154_v27 }
 0x1bc   : > { %v2444_v39 = vpop.permute.xlu2 %2443 }
 0x1bd   : > { %2465 = vst.msk [vmem:[#allocation2 + $0xb0] sm:$0xf] %vm384_vm7, %v2444_v39 }
 0x1be   : > { %v1019_v30 = vpop.permute.xlu0 %1018 }
 0x1bf   : > { %1041 = vst.msk [vmem:[#allocation2 + $0xa8] sm:$0xf] %vm1032_vm9, %v1019_v30  ;;  %v1722_v32 = vpop.permute.xlu1 %1721 }
 0x1c0   : > { %2345 = vst.msk [vmem:[#allocation2 + $0xa8] sm:$0xf] %vm323_vm6, %v2322_v33  ;;  %v3880_v33 = vpack.c.bf16 %v7240_v36, %v7240_v36 }
 0x1c1   : > { %1743 = vst.msk [vmem:[#allocation2 + $0xac] sm:$0xf] %vm788_vm8, %v1722_v32  ;;  %v5695_v51 = vld [vmem:[#allocation2 + $0xb8] sm:$0xf0] }
 0x1c2   : > { %1865 = vst.msk [vmem:[#allocation2 + $0xac] sm:$0xf] %vm1032_vm9, %v1844_v43  ;;  %v2572_v43 = vld [vmem:[%s7128_s16 + $0x18] sm:$0xff]  ;;  %v3900_v0 = vunpack.c.l.bf16 %v3880_v33 }
 0x1c3   : > { %v2953_v58 = vadd.f32 %v7002_v56, %v2572_v43 }
 0x1c4   : > { %v3052_v53 = vpop.f32.mrf.mxu3  ;;  %v5370_v38 = vld [vmem:[#allocation2 + $0xb0] sm:$0xf] }
 0x1c6   : > { %v2984_v23 = vpop.f32.mrf.mxu1  ;;  %v1484_v44 = vpop.permute.xlu0 %1483 }
 0x1c7   : > { %v2985_v45 = vadd.f32 %v2984_v23, %v2951_v42  ;;  %1504 = vst.msk [vmem:[#allocation2 + $0xc0] sm:$0xf] %vm384_vm7, %v1484_v44  ;;  %v1604_v46 = vpop.permute.xlu1 %1603  ;;  %v5362_v47 = vld [vmem:[#allocation2 + $0xa8] sm:$0xf] }
 0x1c8   : > { %1744 = vst.msk [vmem:[#allocation2 + $0xc0] sm:$0xf] %vm788_vm8, %v7163_v34  ;;  %v5363_v13 = vor.u32 %v5695_v51, %v5362_v47  ;;  %v2216_v34 = vrot.slane %v2214_v54, 4 }
 0x1c9   : > { %1624 = vst.msk [vmem:[#allocation2 + $0xb8] sm:$0xf] %vm384_vm7, %v1604_v46  ;;  %v3019_v3 = vadd.f32 %v3018_v6, %v2985_v45  ;;  %v5693_v30 = vld [vmem:[#allocation2 + $0xac] sm:$0xf] }
 0x1ca   : > { %1805 = vst.msk [vmem:[#allocation2 + $0xb8] sm:$0xf] %vm788_vm8, %v1785_v57  ;;  %3032 = vmatmul.bf16.gmra.mxu2 %v5363_v13  ;;  %v2220_v10 = vor.u32 %v2219_v17, %v2216_v34 }
 0x1cb   : > { %v3053_v4 = vadd.f32 %v3052_v53, %v3019_v3 }
 0x1cc   : > { %v2221_v56 = vrot.slane %v2220_v10, 4  ;;  %v3054_v22 = vpop.f32.mrf.mxu3 }
 0x1ce   : > { %v2986_v63 = vpop.f32.mrf.mxu1  ;;  %v1602_v2 = vpop.permute.xlu0 %1601  ;;  %v2226_v18 = vsel %vm6122_vm5, %v2221_v56, %v2225_v11 }
 0x1cf   : > { %v2987_v55 = vadd.f32 %v2986_v63, %v2953_v58  ;;  %1623 = vst.msk [vmem:[#allocation2 + $0xa4] sm:$0xf] %vm384_vm7, %v1602_v2  ;;  %v3086_v8 = vpop.f32.mrf.mxu0  ;;  %v1783_v9 = vpop.permute.xlu1 %1782 }
 0x1d0   : > { %v7223_v57 = vadd.f32 %v3086_v8, %v3053_v4  ;;  %1804 = vst.msk [vmem:[#allocation2 + $0xa4] sm:$0xf] %vm788_vm8, %v1783_v9 }
 0x1d1   : > { %v3021_v14 = vadd.f32 %v3020_v62, %v2987_v55  ;;  %2246 = vst.msk [vmem:[#allocation2 + $0xc4] sm:$0xf] %vm323_vm6, %v2226_v18  ;;  %v2573_v18 = vld [vmem:[%s7128_s16 + $0x20] sm:$0xff] }
 0x1d2   : > { %v5523_v40 = vmul.f32 -1.442695, %v7223_v57 }
 0x1d3   : > { %v3055_v59 = vadd.f32 %v3054_v22, %v3021_v14 }
 0x1d4   : > { %5983 = vpow2.f32 %v5523_v40 }
 0x1d6   : > { %v1846_v25 = vpop.permute.xlu0 %1845 }
 0x1d7   : > { %1866 = vst.msk [vmem:[#allocation2 + $0xc0] sm:$0xf] %vm1032_vm9, %v1846_v25  ;;  %v3088_v29 = vpop.f32.mrf.mxu0  ;;  %v2046_v31 = vpop.permute.xlu1 %2045 }
 0x1d8   : > { %v7237_v28 = vadd.f32 %v3088_v29, %v3055_v59  ;;  %2066 = vst.msk [vmem:[#allocation2 + $0xb8] sm:$0xf] %vm1032_vm9, %v2046_v31  ;;  %v2956_v59 = vadd.f32 %v7032_v20, %v2573_v18 }
 0x1da   : > { %v5984_v16 = vpop.eup %5983  ;;  %v5524_v37 = vmul.f32 -1.442695, %v7237_v28 }
 0x1db   : > { %v3138_v39 = vadd.f32 1.0, %v5984_v16 }
 0x1dc   : > { %5985 = vpow2.f32 %v5524_v37  ;;  %v2574_v37 = vld [vmem:[%s7128_s16 + $0x28] sm:$0xff] }
 0x1dd   : > { %5987 = vrcp.f32 %v3138_v39  ;;  %vm3181_vm0 = vweird.f32 %v3138_v39  ;;  %v3187_v61 = vand.u32 2147483648, %v3138_v39  ;;  %v3185_v2 = vand.u32 2147483647, %v3138_v39 }
 0x1de   : > { %v2044_v32 = vpop.permute.xlu0 %2043  ;;  %v5364_v60 = vld [vmem:[#allocation2 + $0xbc] sm:$0xf0] }
 0x1df   : > { %2065 = vst.msk [vmem:[#allocation2 + $0xa4] sm:$0xf] %vm1032_vm9, %v2044_v32  ;;  %v7246_v41 = vpop.permute.xlu1 %5780  ;;  %v5367_v6 = vor.u32 %v5693_v30, %v5364_v60  ;;  %v5356_v43 = vld [vmem:[#allocation2 + $0xb4] sm:$0xf0]  ;;  %v3188_v9 = vor.u32 1.1754944e-38, %v3187_v61  ;;  %vm3186_vm5 = vcmp.eq.f32.partialorder %v3185_v2, 8.507059e+37  ;;  %v2958_v30 = vadd.f32 %v7054_v7, %v2574_v37 }
 0x1e0   : > { %v5782_v42 = vunpack.i.l.bf16 %v7246_v41  ;;  %v3899_v1 = vld [vmem:[#allocation2 + $0xb8] sm:$0xf] }
 0x1e1   : > { %3066 = vmatmul.bf16.gmra.mxu3 %v5367_v6  ;;  %v3919_v22 = vunpack.c.l.bf16 %v3899_v1 }
 0x1e2   : > { %v5986_v23 = vpop.eup %5985  ;;  %v3960_v44 = vmul.f32 %v5782_v42, %v3900_v0 }
 0x1e3   : > { %v5988_v45 = vpop.eup %5987  ;;  %v3139_v46 = vadd.f32 1.0, %v5986_v23 }
 0x1e4   : > { %v3177_v47 = vmul.f32 %v5988_v45, %v3138_v39  ;;  %v3970_v51 = vpack.c.bf16 %v3960_v44, %v3960_v44  ;;  %vm3182_vm15 = vweird.f32 %v5988_v45 }
 0x1e5   : > { %5989 = vrcp.f32 %v3139_v46  ;;  %v3202_v63 = vand.u32 2147483648, %v3139_v46  ;;  %v3200_v5 = vand.u32 2147483647, %v3139_v46  ;;  %vm3183_vm2 = vmor %vm3181_vm0, %vm3182_vm15  ;;  %vm3196_vm3 = vweird.f32 %v3139_v46  ;;  %v3023_v25 = vpop.f32.mrf.mxu2 }
 0x1e6   : > { %v2446_v19 = vpop.permute.xlu0 %2445  ;;  %3990 = vrot.lane.b32.xlu0 %v3970_v51, %s6043_s27  ;;  %v5692_v3 = vld [vmem:[#allocation2 + $0xa4] sm:$0xf]  ;;  %v3178_v13 = vsub.f32 1.0, %v3177_v47 }
 0x1e7   : > { %2466 = vst.msk [vmem:[#allocation2 + $0xc4] sm:$0xf] %vm384_vm7, %v2446_v19  ;;  %v5359_v52 = vor.u32 %v5692_v3, %v5356_v43  ;;  %v3203_v10 = vor.u32 1.1754944e-38, %v3202_v63  ;;  %vm3201_vm11 = vcmp.eq.f32.partialorder %v3200_v5, 8.507059e+37  ;;  %v3898_v15 = vld [vmem:[#allocation2 + $0xa4] sm:$0xf] }
 0x1e8   : > { %v3179_v53 = vmul.f32 %v5988_v45, %v3178_v13  ;;  %v3918_v21 = vunpack.c.l.bf16 %v3898_v15 }
 0x1e9   : > { %2998 = vmatmul.bf16.gmra.mxu1 %v5359_v52 }
 0x1ea   : > { %v3180_v62 = vadd.f32 %v5988_v45, %v3179_v53  ;;  %v5814_v29 = vpack.i.bf16 %v3919_v22, %v3918_v21 }
 0x1eb   : > { %v5990_v54 = vpop.eup %5989 }
 0x1ec   : > { %v3192_v50 = vmul.f32 %v5990_v54, %v3139_v46  ;;  %vm3197_vm1 = vweird.f32 %v5990_v54  ;;  %v3184_v55 = vsel %vm3183_vm2, %v5988_v45, %v3180_v62 }
 0x1ed   : > { %vm3198_vm4 = vmor %vm3196_vm3, %vm3197_vm1  ;;  %v7252_v56 = vsel %vm3186_vm5, %v3188_v9, %v3184_v55  ;;  %v3057_v35 = vpop.f32.mrf.mxu3  ;;  %v3025_v6 = vpop.f32.mrf.mxu2  ;;  %v2576_v55 = vld [vmem:[%s7128_s16 + $0x38] sm:$0xff] }
 0x1ee   : > { %v5696_v58 = vld [vmem:[#allocation2 + $0xc0] sm:$0xf0]  ;;  %v3193_v34 = vsub.f32 1.0, %v3192_v50 }
 0x1ef   : > { %v5371_v17 = vor.u32 %v5696_v58, %v5370_v38 }
 0x1f0   : > { %v3194_v4 = vmul.f32 %v5990_v54, %v3193_v34 }
 0x1f1   : > { %5520 = vmatmul.msk.bf16.gmra.mxu0 %vm2920_vm10, %v5371_v17 }
 0x1f2   : > { %v3195_v8 = vadd.f32 %v5990_v54, %v3194_v4 }
 0x1f4   : > { %v3199_v11 = vsel %vm3198_vm4, %v5990_v54, %v3195_v8  ;;  %v2963_v8 = vadd.f32 %v7087_v49, %v2576_v55  ;;  %v2577_v49 = vld [vmem:[%s7128_s16 + $0x40] sm:$0xff] }
 0x1f5   : > { %v7254_v40 = vsel %vm3201_vm11, %v3203_v10, %v3199_v11  ;;  %v3059_v23 = vpop.f32.mrf.mxu3 }
 0x1f6   : > { %8031 = vst [vmem:[#allocation3_spill] sm:$0xff] %v7254_v40  ;;  %v5809_v14 = vpack.i.bf16 %v7254_v40, %v7252_v56  ;;  %v7269_v38 = vpop.permute.xlu0 %5790 }
 0x1f7   : > { %v5793_v34 = vunpack.i.h.bf16 %v7269_v38 }
 0x1f8   : > { %5810 = vrot.lane.b32.xlu0 %v5809_v14, %s6043_s27  ;;  %v3091_v39 = vpop.f32.mrf.mxu0 }
 0x1fe   : > { %v2989_v27 = vpop.f32.mrf.mxu1 }
 0x1ff   : > { %v2990_v31 = vadd.f32 %v2989_v27, %v2956_v59  ;;  %v5522_v59 = vmul.f32 -1.442695, %v7156_v24 }
 0x200   : > { %5815 = vrot.lane.b32.xlu0 %v5814_v29, %s6045_s29  ;;  %v3093_v44 = vpop.f32.mrf.mxu0  ;;  %v3346_v29 = vlaneseq }
 0x201   : > { %v3024_v16 = vadd.f32 %v3023_v25, %v2990_v31  ;;  %v2966_v31 = vadd.f32 %v7103_v12, %v2577_v49 }
 0x203   : > { %v3058_v33 = vadd.f32 %v3057_v35, %v3024_v16 }
 0x205   : > { %v7264_v32 = vadd.f32 %v3091_v39, %v3058_v33  ;;  %v2575_v33 = vld [vmem:[%s7128_s16 + $0x30] sm:$0xff] }
 0x206   : > { %v2991_v60 = vpop.f32.mrf.mxu1 }
 0x207   : > { %v2992_v42 = vadd.f32 %v2991_v60, %v2958_v30  ;;  %v7294_v30 = vshrl.u32 %v3346_v29, 7  ;;  %v2578_v60 = vld [vmem:[%s7128_s16 + $0x48] sm:$0xff] }
 0x208   : > { %v2968_v12 = vadd.f32 %v7119_v48, %v2578_v60 }
 0x209   : > { %v3026_v0 = vadd.f32 %v3025_v6, %v2992_v42  ;;  %vm3348_vm15 = vcmp.lt.s32.totalorder %v7294_v30, 1  ;;  %vm3589_vm0 = vcmp.lt.s32.totalorder %v7294_v30, 7 }
 0x20b   : > { %v3060_v20 = vadd.f32 %v3059_v23, %v3026_v0  ;;  %v2961_v23 = vadd.f32 %v7072_v26, %v2575_v33 }
 0x20d   : > { %v7266_v45 = vadd.f32 %v3093_v44, %v3060_v20 }
 0x20f   : > { %v5526_v46 = vmul.f32 -1.442695, %v7266_v45 }
 0x211   : > { %5991 = vpow2.f32 %v5526_v46 }
 0x216   : > { %v7276_v17 = vpop.f32.mrf.mxu2 }
 0x217   : > { %v5992_v47 = vpop.eup %5991 }
 0x218   : > { %v3141_v51 = vadd.f32 1.0, %v5992_v47  ;;  %v4421_v47 = vld [vmem:[#allocation2 + $0x1c] sm:$0xf] }
 0x21a   : > { %5993 = vrcp.f32 %v3141_v51  ;;  %v3232_v3 = vand.u32 2147483648, %v3141_v51  ;;  %v3230_v52 = vand.u32 2147483647, %v3141_v51  ;;  %vm3226_vm12 = vweird.f32 %v3141_v51 }
 0x21b   : > { %5995 = vpow2.f32 %v5522_v59 }
 0x21c   : > { %v3233_v54 = vor.u32 1.1754944e-38, %v3232_v3  ;;  %vm3231_vm14 = vcmp.eq.f32.partialorder %v3230_v52, 8.507059e+37  ;;  %v3373_v52 = vld [vmem:[#allocation2 + $0x50] sm:$0xf] }
 0x21e   : > { %v3030_v11 = vpop.f32.mrf.mxu2 }
 0x220   : > { %v5994_v43 = vpop.eup %5993 }
 0x221   : > { %v3222_v19 = vmul.f32 %v5994_v43, %v3141_v51  ;;  %vm3227_vm10 = vweird.f32 %v5994_v43  ;;  %v5996_v27 = vpop.eup %5995 }
 0x222   : > { %vm3228_vm13 = vmor %vm3226_vm12, %vm3227_vm10  ;;  %v7291_v37 = vadd.f32 1.0, %v5996_v27 }
 0x223   : > { %v3223_v7 = vsub.f32 1.0, %v3222_v19 }
 0x224   : > { %5997 = vrcp.f32 %v7291_v37  ;;  %vm3166_vm2 = vweird.f32 %v7291_v37 }
 0x225   : > { %v3224_v13 = vmul.f32 %v5994_v43, %v3223_v7 }
 0x227   : > { %v3225_v53 = vadd.f32 %v5994_v43, %v3224_v13 }
 0x229   : > { %v3229_v50 = vsel %vm3228_vm13, %v5994_v43, %v3225_v53 }
 0x22a   : > { %v7271_v58 = vsel %vm3231_vm14, %v3233_v54, %v3229_v50 }
 0x22b   : > { %8032 = vst [vmem:[#allocation4_spill] sm:$0xff] %v7271_v58  ;;  %v3885_v62 = vpack.c.bf16 %v7271_v58, %v7271_v58 }
 0x22c   : > { %v7278_v4 = vpop.f32.mrf.mxu3 }
 0x22d   : > { %v3905_v61 = vunpack.c.l.bf16 %v3885_v62  ;;  %v4431_v62 = vunpack.c.l.bf16 %v4421_v47 }
 0x22f   : > { %v2994_v63 = vpop.f32.mrf.mxu1  ;;  %v3965_v2 = vmul.f32 %v5793_v34, %v3905_v61 }
 0x230   : > { %v2995_v7 = vadd.f32 %v2994_v63, %v2961_v23 }
 0x231   : > { %v3975_v5 = vpack.c.bf16 %v3965_v2, %v3965_v2  ;;  %v5998_v2 = vpop.eup %5997 }
 0x232   : > { %vm3167_vm1 = vweird.f32 %v5998_v2 }
 0x233   : > { %4000 = vrot.lane.b32.xlu0 %v3975_v5, %s6043_s27  ;;  %v5525_v5 = vmul.f32 -1.442695, %v7264_v32  ;;  %vm3168_vm3 = vmor %vm3166_vm2, %vm3167_vm1 }
 0x234   : > { %v3064_v1 = vpop.f32.mrf.mxu3 }
 0x236   : > { %v7283_v9 = vpop.f32.mrf.mxu0 }
 0x237   : > { %v2996_v10 = vpop.f32.mrf.mxu1 }
 0x238   : > { %v2997_v14 = vadd.f32 %v2996_v10, %v2963_v8  ;;  %v3393_v10 = vunpack.c.l.bf16 %v3373_v52 }
 0x23a   : > { %v3031_v15 = vadd.f32 %v3030_v11, %v2997_v14 }
 0x23c   : > { %v3065_v18 = vadd.f32 %v3064_v1, %v3031_v15  ;;  %v3029_v15 = vadd.f32 %v7276_v17, %v2995_v7  ;;  %v3162_v1 = vmul.f32 %v5998_v2, %v7291_v37  ;;  %v3170_v7 = vand.u32 2147483647, %v7291_v37 }
 0x23e   : > { %v3098_v21 = vpop.f32.mrf.mxu0  ;;  %vm3171_vm4 = vcmp.eq.f32.partialorder %v3170_v7, 8.507059e+37  ;;  %v7370_v7 = vld [vmem:[#allocation2 + $0x90] sm:$0xff]  }
 0x23f   : > { %v7285_v22 = vadd.f32 %v3098_v21, %v3065_v18 }
 0x24d   : > { %v3033_v35 = vpop.f32.mrf.mxu2 }
 0x255   : > { %v3035_v63 = vpop.f32.mrf.mxu2 }
 0x258   : > { %v3991_v25 = vpop.permute.xlu0 %3990 }
 0x259   : > { %4020 = vst.msk [vmem:[#allocation2 + $0x4] sm:$0xf] %vm323_vm6, %v3991_v25 }
 0x264   : > { %v3067_v42 = vpop.f32.mrf.mxu3 }
 0x266   : > { %v2999_v16 = vpop.f32.mrf.mxu1 }
 0x267   : > { %v3000_v39 = vadd.f32 %v2999_v16, %v2966_v31  ;;  %v3063_v31 = vadd.f32 %v7278_v4, %v3029_v15  ;;  %v3163_v16 = vsub.f32 1.0, %v3162_v1 }
 0x269   : > { %v3034_v6 = vadd.f32 %v3033_v35, %v3000_v39 }
 0x26a   : > { %v5811_v0 = vpop.permute.xlu0 %5810 }
 0x26b   : > { %v7299_v20 = vunpack.i.h.bf16 %v5811_v0  ;;  %v7301_v44 = vunpack.i.l.bf16 %v5811_v0  ;;  %v3068_v46 = vadd.f32 %v3067_v42, %v3034_v6  ;;  %v7338_v6 = vadd.f32 %v7283_v9, %v3063_v31 }
 0x26c   : > { %v3069_v25 = vpop.f32.mrf.mxu3  ;;  %v3164_v42 = vmul.f32 %v5998_v2, %v3163_v16  ;;  %v3882_v16 = vpack.c.bf16 %v7252_v56, %v7252_v56 }
 0x26d   : > { %v3339_v51 = vrot.slane %v7299_v20, 7  ;;  %v3582_v43 = vrot.slane %v7299_v20, 1  ;;  %v3338_v26 = vrot.slane %v7301_v44, 7  ;;  %v3581_v19 = vrot.slane %v7301_v44, 1 }
 0x26e   : > { %v3001_v3 = vpop.f32.mrf.mxu1  ;;  %v3101_v13 = vpop.f32.mrf.mxu0  ;;  %v5527_v4 = vmul.f32 -1.442695, %v7338_v6  ;;  %v3165_v23 = vadd.f32 %v5998_v2, %v3164_v42 }
 0x26f   : > { %v3355_v48 = vsel %vm3348_vm15, %v3338_v26, %v3339_v51  ;;  %v3596_v53 = vsel %vm3589_vm0, %v3581_v19, %v3582_v43  ;;  %v3002_v54 = vadd.f32 %v3001_v3, %v2968_v12  ;;  %v7322_v50 = vadd.f32 %v3101_v13, %v3068_v46 }
 0x270   : > { %v3363_v34 = vpack.c.bf16 %v3355_v48, %v3355_v48  ;;  %v3603_v61 = vpack.c.bf16 %v3596_v53, %v3596_v53  ;;  %v3172_v46 = vand.u32 2147483648, %v7291_v37  ;;  %v3169_v13 = vsel %vm3168_vm3, %v5998_v2, %v3165_v23 }
 0x271   : > { %v3036_v55 = vadd.f32 %v3035_v63, %v3002_v54  ;;  %v5529_v8 = vmul.f32 -1.442695, %v7322_v50  ;;  %v3902_v23 = vunpack.c.l.bf16 %v3882_v16 }
 0x272   : > { %v7326_v11 = vunpack.c.l.bf16 %v3363_v34  ;;  %v7328_v14 = vunpack.c.l.bf16 %v3603_v61  ;;  %v3173_v52 = vor.u32 1.1754944e-38, %v3172_v46  ;;  %v7367_v42 = vpop.permute.xlu0 %5815 }
 0x273   : > { %5999 = vpow2.f32 %v5529_v8  ;;  %v3070_v59 = vadd.f32 %v3069_v25, %v3036_v55 }
 0x274   : > { %v3403_v18 = vmul.f32 %v3393_v10, %v7326_v11  ;;  %v4441_v21 = vmul.f32 %v4431_v62, %v7328_v14  ;;  %6001 = vpow2.f32 %v5525_v5  ;;  %v7347_v54 = vsel %vm3171_vm4, %v3173_v52, %v3169_v13 }
 0x275   : > { %v3881_v55 = vpack.c.bf16 %v7347_v54, %v7347_v54 }
 0x276   : > { %v3413_v49 = vpack.c.bf16 %v3403_v18, %v3403_v18  ;;  %v4451_v27 = vpack.c.bf16 %v4441_v21, %v4441_v21  ;;  %v3103_v29 = vpop.f32.mrf.mxu0  ;;  %v5783_v21 = vunpack.i.h.bf16 %v7246_v41 }
 0x277   : > { %v3104_v35 = vadd.f32 %v3103_v29, %v3070_v59 }
 0x278   : > { %3423 = vst.msk [vmem:[#allocation2 + $0x50] sm:$0xf] %vm323_vm6, %v3413_v49  ;;  %v3901_v49 = vunpack.c.l.bf16 %v3881_v55 }
 0x279   : > { %v6000_v17 = vpop.eup %5999  ;;  %4461 = vst.msk [vmem:[#allocation2 + $0x1c] sm:$0xf] %vm323_vm6, %v4451_v27  ;;  %v5530_v39 = vmul.f32 -1.442695, %v3104_v35 }
 0x27a   : > { %v3144_v33 = vadd.f32 1.0, %v6000_v17  ;;  %v6002_v60 = vpop.eup %6001  ;;  %v3961_v17 = vmul.f32 %v5783_v21, %v3901_v49 }
 0x27b   : > { %6003 = vpow2.f32 %v5530_v39  ;;  %v7340_v0 = vadd.f32 1.0, %v6002_v60 }
 0x27c   : > { %6005 = vrcp.f32 %v3144_v33  ;;  %v3277_v53 = vand.u32 2147483648, %v3144_v33  ;;  %v3275_v34 = vand.u32 2147483647, %v3144_v33  ;;  %vm3271_vm11 = vweird.f32 %v3144_v33 }
 0x27d   : > { %6007 = vrcp.f32 %v7340_v0  ;;  %vm3211_vm4 = vweird.f32 %v7340_v0  ;;  %v3215_v55 = vand.u32 2147483647, %v7340_v0 }
 0x27e   : > { %6009 = vpow2.f32 %v5527_v4  ;;  %v3278_v2 = vor.u32 1.1754944e-38, %v3277_v53  ;;  %vm3276_vm12 = vcmp.eq.f32.partialorder %v3275_v34, 8.507059e+37  ;;  %v7377_v53 = vld [vmem:[#allocation2 + $0x78] sm:$0xff]  }
 0x281   : > { %v6004_v12 = vpop.eup %6003 }
 0x282   : > { %v6006_v47 = vpop.eup %6005  ;;  %v3145_v9 = vadd.f32 1.0, %v6004_v12 }
 0x283   : > { %v3267_v3 = vmul.f32 %v6006_v47, %v3144_v33  ;;  %vm3272_vm5 = vweird.f32 %v6006_v47  ;;  %v7349_v61 = vpop.eup %6007 }
 0x284   : > { %6011 = vrcp.f32 %v3145_v9  ;;  %v6010_v37 = vpop.eup %6009  ;;  %vm3273_vm10 = vmor %vm3271_vm11, %vm3272_vm5  ;;  %v3207_v15 = vmul.f32 %v7349_v61, %v7340_v0  ;;  %v3292_v27 = vand.u32 2147483648, %v3145_v9  ;;  %v3290_v31 = vand.u32 2147483647, %v3145_v9 }
 0x285   : > { %v3268_v48 = vsub.f32 1.0, %v3267_v3  ;;  %v7355_v1 = vadd.f32 1.0, %v6010_v37  ;;  %vm3286_vm14 = vweird.f32 %v3145_v9  ;;  %vm3212_vm3 = vweird.f32 %v7349_v61 }
 0x286   : > { %v3208_v35 = vsub.f32 1.0, %v3207_v15  ;;  %v3293_v41 = vor.u32 1.1754944e-38, %v3292_v27  ;;  %vm3291_vm2 = vcmp.eq.f32.partialorder %v3290_v31, 8.507059e+37  ;;  %v3883_v37 = vpack.c.bf16 %v7254_v40, %v7254_v40  ;;  %vm3213_vm5 = vmor %vm3211_vm4, %vm3212_vm3 }
 0x287   : > { %v3269_v62 = vmul.f32 %v6006_v47, %v3268_v48  ;;  %6013 = vrcp.f32 %v7355_v1  ;;  %vm3216_vm11 = vcmp.eq.f32.partialorder %v3215_v55, 8.507059e+37  ;;  %v5765_v55 = vld [vmem:[%s8017_s5 + $0x88] sm:$0xff] }
 0x288   : > { %v3209_v60 = vmul.f32 %v7349_v61, %v3208_v35  ;;  %v3903_v15 = vunpack.c.l.bf16 %v3883_v37  ;;  %4795 = vmatpush.bf16.msrb.mxu3 %v5765_v55  ;;  %v3369_v55 = vld [vmem:[#allocation2] sm:$0xf] }
 0x289   : > { %v3270_v63 = vadd.f32 %v6006_v47, %v3269_v62  ;;  %v3917_v62 = vunpack.c.l.bf16 %v7370_v7 }
 0x28a   : > { %v6012_v5 = vpop.eup %6011  ;;  %v3210_v48 = vadd.f32 %v7349_v61, %v3209_v60  ;;  %v5792_v60 = vunpack.i.l.bf16 %v7269_v38 }
 0x28b   : > { %v3274_v8 = vsel %vm3273_vm10, %v6006_v47, %v3270_v63  ;;  %v3282_v10 = vmul.f32 %v6012_v5, %v3145_v9  ;;  %vm3287_vm13 = vweird.f32 %v6012_v5  ;;  %v3971_v47 = vpack.c.bf16 %v3961_v17, %v3961_v17 }
 0x28c   : > { %v7357_v18 = vsel %vm3276_vm12, %v3278_v2, %v3274_v8  ;;  %vm3288_vm1 = vmor %vm3286_vm14, %vm3287_vm13  ;;  %v5818_v9 = vunpack.i.h.bf16 %v7367_v42  ;;  %v3217_v63 = vand.u32 2147483648, %v7340_v0  ;;  %v3916_v8 = vunpack.c.h.bf16 %v7377_v53 }
 0x28d   : > { %8033 = vst [vmem:[#allocation5_spill] sm:$0xff] %v7357_v18  ;;  %v5794_v25 = vpack.i.bf16 %v7357_v18, %v7240_v36  ;;  %v3283_v59 = vsub.f32 1.0, %v3282_v10  ;;  %v5786_v36 = vpop.permute.xlu2 %5785  ;;  %v6014_v3 = vpop.eup %6013  ;;  %v3214_v10 = vsel %vm3213_vm5, %v7349_v61, %v3210_v48  ;;  %vm3241_vm12 = vweird.f32 %v7355_v1 }
 0x28e   : > { %v5787_v13 = vunpack.i.l.bf16 %v5786_v36  ;;  %v3218_v21 = vor.u32 1.1754944e-38, %v3217_v63  ;;  %v5788_v27 = vunpack.i.h.bf16 %v5786_v36  ;;  %vm3242_vm10 = vweird.f32 %v6014_v3 }
 0x28f   : > { %5795 = vrot.lane.b32.xlu1 %v5794_v25, %s6043_s27  ;;  %v3284_v29 = vmul.f32 %v6012_v5, %v3283_v59  ;;  %v5804_v25 = vpack.i.bf16 %v3917_v62, %v3916_v8  ;;  %v3247_v36 = vand.u32 2147483648, %v7355_v1  ;;  %vm3243_vm13 = vmor %vm3241_vm12, %vm3242_vm10  ;;  %vm4709_vm5 = vcmask 261120  }
 0x290   : > { %v3962_v34 = vmul.f32 %v5787_v13, %v3902_v23  ;;  %v3963_v0 = vmul.f32 %v5788_v27, %v3903_v15 }
 0x291   : > { %v3285_v39 = vadd.f32 %v6012_v5, %v3284_v29  ;;  %v7390_v29 = vsel %vm3216_vm11, %v3218_v21, %v3214_v10 }
 0x292   : > { %v3972_v59 = vpack.c.bf16 %v3962_v34, %v3962_v34  ;;  %8034 = vst [vmem:[#allocation6_spill] sm:$0xff] %v7390_v29  ;;  %v3884_v31 = vpack.c.bf16 %v7390_v29, %v7390_v29  ;;  %v3973_v16 = vpack.c.bf16 %v3963_v0, %v3963_v0  ;;  %v5819_v17 = vpack.i.bf16 %v7271_v58, %v7390_v29 }
 0x293   : > { %v3289_v33 = vsel %vm3288_vm1, %v6012_v5, %v3285_v39  ;;  %v3237_v5 = vmul.f32 %v6014_v3, %v7355_v1 }
 0x294   : > { %v3294_v4 = vsel %vm3291_vm2, %v3293_v41, %v3289_v33  ;;  %v3904_v39 = vunpack.c.l.bf16 %v3884_v31  ;;  %v7400_v33 = vld [vmem:[#allocation2 + $0x4] sm:$0xff]   ;;  %v3372_v31 = vld [vmem:[#allocation2 + $0x3c] sm:$0xf] }
 0x295   : > { %v3889_v12 = vpack.c.bf16 %v3294_v4, %v3294_v4  ;;  %v5799_v46 = vpack.i.bf16 %v7347_v54, %v3294_v4  ;;  %v3238_v49 = vsub.f32 1.0, %v3237_v5  ;;  %v3245_v4 = vand.u32 2147483647, %v7355_v1 }
 0x296   : > { %v3964_v23 = vmul.f32 %v5792_v60, %v3904_v39  ;;  %v3888_v60 = vpack.c.bf16 %v7357_v18, %v7357_v18 }
 0x297   : > { %v3909_v52 = vunpack.c.l.bf16 %v3889_v12  ;;  %5800 = vrot.lane.b32.xlu2 %v5799_v46, %s6043_s27  ;;  %3992 = vrot.lane.b32.xlu1 %v3971_v47, %s6043_s27  ;;  %v3239_v35 = vmul.f32 %v6014_v3, %v3238_v49  ;;  %v4040_v46 = vunpack.c.l.bf16 %v7400_v33  ;;  %v3248_v47 = vor.u32 1.1754944e-38, %v3247_v36 }
 0x298   : > { %vm3246_vm14 = vcmp.eq.f32.partialorder %v3245_v4, 8.507059e+37  ;;  %v3392_v36 = vunpack.c.l.bf16 %v3372_v31  ;;  %v3371_v31 = vld [vmem:[#allocation2 + $0x28] sm:$0xf] }
 0x299   : > { %v7386_v2 = vmul.f32 %v5818_v9, %v3909_v52  ;;  %v3240_v41 = vadd.f32 %v6014_v3, %v3239_v35  ;;  %v3974_v9 = vpack.c.bf16 %v3964_v23, %v3964_v23  ;;  %v5528_v52 = vmul.f32 -1.442695, %v7285_v22 }
 0x29b   : > { %v3244_v12 = vsel %vm3243_vm13, %v6014_v3, %v3240_v41  ;;  %6015 = vpow2.f32 %v5528_v52 }
 0x29c   : > { %v7408_v13 = vsel %vm3246_vm14, %v3248_v47, %v3244_v12 }
 0x29d   : > { %8035 = vst [vmem:[#allocation7_spill] sm:$0xff] %v7408_v13  ;;  %v5824_v38 = vpack.i.bf16 %v4040_v46, %v7408_v13 }
 0x29f   : > { %5805 = vrot.lane.b32.xlu2 %v5804_v25, %s6045_s29  ;;  %3994 = vrot.lane.b32.xlu1 %v3972_v59, %s6043_s27  ;;  %v5764_v25 = vld [vmem:[%s8017_s5 + $0x80] sm:$0xff] }
 0x2a0   : > { %4796 = vmatpush.bf16.msrb.mxu3 %v5764_v25  ;;  %v3370_v25 = vld [vmem:[#allocation2 + $0x14] sm:$0xf] }
 0x2a1   : > { %v6016_v1 = vpop.eup %6015 }
 0x2a2   : > { %v3143_v48 = vadd.f32 1.0, %v6016_v1 }
 0x2a4   : > { %6017 = vrcp.f32 %v3143_v48  ;;  %v3262_v5 = vand.u32 2147483648, %v3143_v48  ;;  %vm3256_vm2 = vweird.f32 %v3143_v48  ;;  %v3260_v8 = vand.u32 2147483647, %v3143_v48 }
 0x2a5   : > { %v4001_v61 = vpop.permute.xlu0 %4000 }
 0x2a6   : > { %4025 = vst.msk [vmem:[#allocation2 + $0x68] sm:$0xf] %vm323_vm6, %v4001_v61  ;;  %v3263_v21 = vor.u32 1.1754944e-38, %v3262_v5  ;;  %vm3261_vm4 = vcmp.eq.f32.partialorder %v3260_v8, 8.507059e+37  ;;  %v3886_v61 = vpack.c.bf16 %v7408_v13, %v7408_v13 }
 0x2a7   : > { %3996 = vrot.lane.b32.xlu2 %v3973_v16, %s6043_s27  ;;  %5820 = vrot.lane.b32.xlu1 %v5819_v17, %s6043_s27 }
 0x2aa   : > { %v6018_v3 = vpop.eup %6017 }
 0x2ab   : > { %v3252_v62 = vmul.f32 %v6018_v3, %v3143_v48  ;;  %vm3257_vm1 = vweird.f32 %v6018_v3 }
 0x2ac   : > { %vm3258_vm3 = vmor %vm3256_vm2, %vm3257_vm1 }
 0x2ad   : > { %v3253_v34 = vsub.f32 1.0, %v3252_v62 }
 0x2af   : > { %3998 = vrot.lane.b32.xlu2 %v3974_v9, %s6043_s27  ;;  %5825 = vrot.lane.b32.xlu1 %v5824_v38, %s6043_s27  ;;  %v3254_v37 = vmul.f32 %v6018_v3, %v3253_v34 }
 0x2b1   : > { %v3255_v63 = vadd.f32 %v6018_v3, %v3254_v37 }
 0x2b3   : > { %v3259_v10 = vsel %vm3258_vm3, %v6018_v3, %v3255_v63  ;;  %v3908_v3 = vunpack.c.l.bf16 %v3888_v60  ;;  %v5817_v63 = vunpack.i.l.bf16 %v7367_v42 }
 0x2b4   : > { %v7422_v49 = vsel %vm3261_vm4, %v3263_v21, %v3259_v10 }
 0x2b5   : > { %8036 = vst [vmem:[#allocation8_spill] sm:$0xff] %v7422_v49  ;;  %v3887_v17 = vpack.c.bf16 %v7422_v49, %v7422_v49  ;;  %v3968_v8 = vmul.f32 %v5817_v63, %v3908_v3 }
 0x2b7   : > { %v3907_v46 = vunpack.c.l.bf16 %v3887_v17  ;;  %v3978_v60 = vpack.c.bf16 %v3968_v8, %v3968_v8 }
 0x2f1   : > { %v5801_v15 = vpop.permute.xlu2 %5800 }
 0x2f2   : > { %v7420_v59 = vunpack.i.h.bf16 %v5801_v15  ;;  %v7450_v5 = vunpack.i.l.bf16 %v5801_v15 }
 0x2f4   : > { %v3337_v27 = vrot.slane %v7420_v59, 7  ;;  %v3580_v0 = vrot.slane %v7420_v59, 1  ;;  %v3345_v15 = vrot.slane %v7450_v5, 7 }
 0x2f6   : > { %v3356_v35 = vsel %vm3348_vm15, %v3337_v27, %v3338_v26  ;;  %v3597_v16 = vsel %vm3589_vm0, %v3580_v0, %v3581_v19  ;;  %v4430_v26 = vunpack.c.h.bf16 %v7400_v33  ;;  %v3906_v19 = vunpack.c.l.bf16 %v3886_v61 }
 0x2f7   : > { %v3362_v39 = vpack.c.bf16 %v3356_v35, %v3356_v35  ;;  %v3602_v41 = vpack.c.bf16 %v3597_v16, %v3597_v16  ;;  %v3588_v16 = vrot.slane %v7450_v5, 1  ;;  %v3389_v61 = vunpack.c.l.bf16 %v3369_v55 }
 0x2f9   : > { %v7443_v4 = vunpack.c.l.bf16 %v3362_v39  ;;  %v7445_v23 = vunpack.c.l.bf16 %v3602_v41  ;;  %v5806_v12 = vpop.permute.xlu2 %5805 }
 0x2fa   : > { %v5808_v47 = vunpack.i.h.bf16 %v5806_v12  ;;  %v5807_v9 = vunpack.i.l.bf16 %v5806_v12  ;;  %v3391_v12 = vunpack.c.l.bf16 %v3371_v31 }
 0x2fb   : > { %v3402_v38 = vmul.f32 %v3392_v36, %v7443_v4  ;;  %v4440_v52 = vmul.f32 %v4430_v26, %v7445_v23  ;;  %v3390_v26 = vunpack.c.l.bf16 %v3370_v25 }
 0x2fc   : > { %v3967_v1 = vmul.f32 %v5808_v47, %v3907_v46  ;;  %v3966_v48 = vmul.f32 %v5807_v9, %v3906_v19 }
 0x2fd   : > { %v3412_v62 = vpack.c.bf16 %v3402_v38, %v3402_v38  ;;  %v4450_v34 = vpack.c.bf16 %v4440_v52, %v4440_v52  ;;  %v5735_v38 = vld [vmem:[#allocation2 + $0x18] sm:$0xf0]  ;;  %v4428_v52 = vld [vmem:[#allocation2 + $0xa8] sm:$0xf] }
 0x2fe   : > { %v3977_v37 = vpack.c.bf16 %v3967_v1, %v3967_v1  ;;  %v3976_v33 = vpack.c.bf16 %v3966_v48, %v3966_v48 }
 0x2ff   : > { %3422 = vst.msk [vmem:[#allocation2 + $0x3c] sm:$0xf] %vm323_vm6, %v3412_v62 }
 0x300   : > { %4460 = vst.msk [vmem:[#allocation2 + $0x8] sm:$0xf] %vm323_vm6, %v4450_v34  ;;  %4002 = vrot.lane.b32.xlu2 %v3976_v33, %s6043_s27  ;;  %4004 = vrot.lane.b32.xlu0 %v3977_v37, %s6043_s27  ;;  %v4429_v37 = vld [vmem:[#allocation2 + $0xbc] sm:$0xf]  ;;  %v4437_v33 = vunpack.c.h.bf16 %v7370_v7 }
 0x301   : > { %v3997_v10 = vpop.permute.xlu2 %3996  ;;  %v5796_v21 = vpop.permute.xlu1 %5795 }
 0x302   : > { %4023 = vst.msk [vmem:[#allocation2 + $0x40] sm:$0xf] %vm323_vm6, %v3997_v10  ;;  %v7457_v35 = vunpack.i.h.bf16 %v5796_v21  ;;  %v7459_v42 = vunpack.i.l.bf16 %v5796_v21 }
 0x304   : > { %v8020_v17 = vrot.slane %v7457_v35, 7  ;;  %v8019_v39 = vrot.slane %v7457_v35, 1  ;;  %v3336_v41 = vrot.slane %v7459_v42, 7  ;;  %v3579_v36 = vrot.slane %v7459_v42, 1 }
 0x306   : > { %v3349_v19 = vsel %vm3348_vm15, %v8020_v17, %v3345_v15  ;;  %v3590_v46 = vsel %vm3589_vm0, %v8019_v39, %v3588_v16  ;;  %v3357_v47 = vsel %vm3348_vm15, %v3336_v41, %v3337_v27  ;;  %v3358_v9 = vsel %vm3348_vm15, %v3345_v15, %v3336_v41 }
 0x307   : > { %v3359_v1 = vpack.c.bf16 %v3349_v19, %v3349_v19  ;;  %v3609_v48 = vpack.c.bf16 %v3590_v46, %v3590_v46  ;;  %v3360_v3 = vpack.c.bf16 %v3358_v9, %v3358_v9  ;;  %v3361_v62 = vpack.c.bf16 %v3357_v47, %v3357_v47  ;;  %v5541_v34 = vld [vmem:[#allocation2 + $0x8] sm:$0xf] }
 0x308   : > { %v3599_v63 = vsel %vm3589_vm0, %v3588_v16, %v3579_v36  ;;  %4006 = vrot.lane.b32.xlu0 %v3978_v60, %s6043_s27  ;;  %v5542_v55 = vor.u32 %v5735_v38, %v5541_v34  ;;  %v3598_v27 = vsel %vm3589_vm0, %v3579_v36, %v3580_v0  ;;  %v4438_v15 = vunpack.c.l.bf16 %v4428_v52 }
 0x309   : > { %v7487_v8 = vunpack.c.l.bf16 %v3359_v1  ;;  %v7489_v10 = vunpack.c.l.bf16 %v3609_v48  ;;  %v7491_v21 = vunpack.c.l.bf16 %v3360_v3  ;;  %v7493_v25 = vunpack.c.l.bf16 %v3361_v62  ;;  %v3999_v7 = vpop.permute.xlu2 %3998  ;;  %v3993_v31 = vpop.permute.xlu1 %3992 }
 0x30a   : > { %v3600_v16 = vpack.c.bf16 %v3599_v63, %v3599_v63  ;;  %4024 = vst.msk [vmem:[#allocation2 + $0x54] sm:$0xf] %vm323_vm6, %v3999_v7  ;;  %5663 = vmatmul.msk.bf16.vlgmr.msrb.gmra.mxu3 %vm4709_vm5, %v5542_v55  ;;  %v3601_v41 = vpack.c.bf16 %v3598_v27, %v3598_v27  ;;  %v4439_v60 = vunpack.c.l.bf16 %v4429_v37 }
 0x30b   : > { %v3399_v0 = vmul.f32 %v3389_v61, %v7487_v8  ;;  %v4447_v36 = vmul.f32 %v4437_v33, %v7489_v10  ;;  %v3400_v19 = vmul.f32 %v3390_v26, %v7491_v21  ;;  %v3401_v46 = vmul.f32 %v3391_v12, %v7493_v25  ;;  %4021 = vst.msk [vmem:[#allocation2 + $0x18] sm:$0xf] %vm323_vm6, %v3993_v31  ;;  %v4422_v33 = vld [vmem:[#allocation2 + $0x30] sm:$0xf]  ;;  %v4423_v31 = vld [vmem:[#allocation2 + $0x44] sm:$0xf] }
 0x30c   : > { %v7502_v47 = vunpack.c.l.bf16 %v3600_v16  ;;  %v7504_v9 = vunpack.c.l.bf16 %v3601_v41  ;;  %v3442_v41 = vld [vmem:[#allocation2 + $0x3c] sm:$0xff]  }
 0x30d   : > { %v3409_v38 = vpack.c.bf16 %v3399_v0, %v3399_v0  ;;  %v4457_v52 = vpack.c.bf16 %v4447_v36, %v4447_v36  ;;  %v3410_v1 = vpack.c.bf16 %v3400_v19, %v3400_v19  ;;  %v3411_v48 = vpack.c.bf16 %v3401_v46, %v3401_v46 }
 0x30e   : > { %v4448_v3 = vmul.f32 %v4438_v15, %v7502_v47  ;;  %v4449_v61 = vmul.f32 %v4439_v60, %v7504_v9  ;;  %v4432_v60 = vunpack.c.l.bf16 %v4422_v33 }
 0x30f   : > { %3419 = vst.msk [vmem:[#allocation2] sm:$0xf] %vm323_vm6, %v3409_v38 }
 0x310   : > { %4467 = vst.msk [vmem:[#allocation2 + $0x94] sm:$0xf] %vm323_vm6, %v4457_v52  ;;  %v4458_v26 = vpack.c.bf16 %v4448_v3, %v4448_v3  ;;  %v4459_v62 = vpack.c.bf16 %v4449_v61, %v4449_v61  ;;  %v4433_v3 = vunpack.c.l.bf16 %v4423_v31 }
 0x311   : > { %3420 = vst.msk [vmem:[#allocation2 + $0x14] sm:$0xf] %vm323_vm6, %v3410_v1  ;;  %v3995_v12 = vpop.permute.xlu1 %3994 }
 0x312   : > { %3421 = vst.msk [vmem:[#allocation2 + $0x28] sm:$0xf] %vm323_vm6, %v3411_v48  ;;  %v7524_v48 = vld [vmem:[#allocation2 + $0x64] sm:$0xff]  }
 0x313   : > { %4468 = vst.msk [vmem:[#allocation2 + $0xa8] sm:$0xf] %vm323_vm6, %v4458_v26  ;;  %v3462_v26 = vunpack.c.l.bf16 %v3442_v41  ;;  %v3394_v31 = vunpack.c.l.bf16 %v7524_v48 }
 0x314   : > { %4022 = vst.msk [vmem:[#allocation2 + $0x2c] sm:$0xf] %vm323_vm6, %v3995_v12 }
 0x315   : > { %4469 = vst.msk [vmem:[#allocation2 + $0xbc] sm:$0xf] %vm323_vm6, %v4459_v62 }
 0x316   : > { %v3439_v34 = vld [vmem:[#allocation2] sm:$0xf] }
 0x317   : > { %v3459_v37 = vunpack.c.l.bf16 %v3439_v34 }
 0x318   : > { %v3440_v63 = vld [vmem:[#allocation2 + $0x14] sm:$0xff]  }
 0x319   : > { %v5821_v55 = vpop.permute.xlu1 %5820  ;;  %v3460_v27 = vunpack.c.l.bf16 %v3440_v63  ;;  %v4041_v7 = vunpack.c.h.bf16 %v3440_v63 }
 0x31a   : > { %v7515_v15 = vunpack.i.h.bf16 %v5821_v55  ;;  %v7517_v16 = vunpack.i.l.bf16 %v5821_v55 }
 0x31b   : > { %v5834_v0 = vpack.i.bf16 %v7422_v49, %v3460_v27  ;;  %v5829_v36 = vpack.i.bf16 %v3459_v37, %v4041_v7  ;;  %v3441_v19 = vld [vmem:[#allocation2 + $0x28] sm:$0xff]  }
 0x31c   : > { %v3341_v46 = vrot.slane %v7515_v15, 7  ;;  %v3584_v38 = vrot.slane %v7515_v15, 1  ;;  %v3340_v52 = vrot.slane %v7517_v16, 7  ;;  %v3583_v1 = vrot.slane %v7517_v16, 1 }
 0x31d   : > { %5835 = vrot.lane.b32.xlu2 %v5834_v0, %s6043_s27  ;;  %5830 = vrot.lane.b32.xlu1 %v5829_v36, %s6043_s27  ;;  %v3461_v61 = vunpack.c.l.bf16 %v3441_v19  ;;  %v4042_v12 = vunpack.c.h.bf16 %v3441_v19  ;;  %v3395_v0 = vunpack.c.l.bf16 %v7377_v53  ;;  %v4043_v19 = vunpack.c.h.bf16 %v3442_v41 }
 0x31e   : > { %v3353_v62 = vsel %vm3348_vm15, %v3340_v52, %v3341_v46  ;;  %v3354_v34 = vsel %vm3348_vm15, %v3339_v51, %v3340_v52  ;;  %v3594_v37 = vsel %vm3589_vm0, %v3583_v1, %v3584_v38  ;;  %v3595_v33 = vsel %vm3589_vm0, %v3582_v43, %v3583_v1 }
 0x31f   : > { %v3364_v63 = vpack.c.bf16 %v3354_v34, %v3354_v34  ;;  %v3365_v55 = vpack.c.bf16 %v3353_v62, %v3353_v62  ;;  %v3604_v27 = vpack.c.bf16 %v3595_v33, %v3595_v33  ;;  %v3605_v7 = vpack.c.bf16 %v3594_v37, %v3594_v37 }
 0x320   : > { %v5844_v36 = vpack.i.bf16 %v3462_v26, %v3461_v61  ;;  %v5839_v62 = vpack.i.bf16 %v4043_v19, %v4042_v12 }
 0x321   : > { %v7542_v39 = vunpack.c.l.bf16 %v3364_v63  ;;  %v7544_v51 = vunpack.c.l.bf16 %v3365_v55  ;;  %v7546_v52 = vunpack.c.l.bf16 %v3604_v27  ;;  %v7548_v17 = vunpack.c.l.bf16 %v3605_v7  ;;  %v5826_v18 = vpop.permute.xlu1 %5825  ;;  %v4424_v27 = vld [vmem:[#allocation2 + $0x54] sm:$0xff]  }
 0x322   : > { %5845 = vrot.lane.b32.xlu0 %v5844_v36, %s6043_s27  ;;  %v5828_v43 = vunpack.i.h.bf16 %v5826_v18  ;;  %v7551_v1 = vunpack.i.l.bf16 %v5826_v18  ;;  %v3979_v63 = vpack.c.bf16 %v7386_v2, %v7386_v2  ;;  %v4044_v19 = vunpack.c.l.bf16 %v4424_v27 }
 0x323   : > { %v3404_v34 = vmul.f32 %v3394_v31, %v7542_v39  ;;  %v3405_v53 = vmul.f32 %v3395_v0, %v7544_v51  ;;  %v4442_v41 = vmul.f32 %v4432_v60, %v7546_v52  ;;  %v4443_v61 = vmul.f32 %v4433_v3, %v7548_v17  ;;  %v3376_v31 = vld [vmem:[#allocation2 + $0x8c] sm:$0xf] }
 0x324   : > { %v4090_v26 = vmul.f32 %v5828_v43, %v7504_v9  ;;  %v3342_v37 = vrot.slane %v7551_v1, 7  ;;  %v3585_v33 = vrot.slane %v7551_v1, 1  ;;  %v3396_v43 = vunpack.c.l.bf16 %v3376_v31 }
 0x325   : > { %v3414_v18 = vpack.c.bf16 %v3404_v34, %v3404_v34  ;;  %v3415_v55 = vpack.c.bf16 %v3405_v53, %v3405_v53  ;;  %v4452_v12 = vpack.c.bf16 %v4442_v41, %v4442_v41  ;;  %5840 = vrot.lane.b32.xlu2 %v5839_v62, %s6043_s27  ;;  %v4453_v7 = vpack.c.bf16 %v4443_v61, %v4443_v61 }
 0x326   : > { %v4100_v60 = vpack.c.bf16 %v4090_v26, %v4090_v26  ;;  %v3352_v3 = vsel %vm3348_vm15, %v3341_v46, %v3342_v37  ;;  %v3593_v0 = vsel %vm3589_vm0, %v3584_v38, %v3585_v33  ;;  %4008 = vrot.lane.b32.xlu1 %v3979_v63, %s6043_s27  ;;  %v4434_v62 = vunpack.c.h.bf16 %v4424_v27  ;;  %v3443_v26 = vld [vmem:[#allocation2 + $0x50] sm:$0xf] }
 0x327   : > { %3424 = vst.msk [vmem:[#allocation2 + $0x64] sm:$0xf] %vm323_vm6, %v3414_v18  ;;  %v3366_v2 = vpack.c.bf16 %v3352_v3, %v3352_v3  ;;  %v3606_v36 = vpack.c.bf16 %v3593_v0, %v3593_v0  ;;  %v4045_v38 = vunpack.c.h.bf16 %v7524_v48 }
 0x328   : > { %3425 = vst.msk [vmem:[#allocation2 + $0x78] sm:$0xf] %vm323_vm6, %v3415_v55 }
 0x329   : > { %4462 = vst.msk [vmem:[#allocation2 + $0x30] sm:$0xf] %vm323_vm6, %v4452_v12  ;;  %v7575_v34 = vunpack.c.l.bf16 %v3366_v2  ;;  %v7577_v46 = vunpack.c.l.bf16 %v3606_v36  ;;  %v5849_v61 = vpack.i.bf16 %v4045_v38, %v4044_v19  ;;  %v3463_v12 = vunpack.c.l.bf16 %v3443_v26  ;;  %v3377_v36 = vld [vmem:[#allocation2 + $0xa0] sm:$0xf] }
 0x32a   : > { %4463 = vst.msk [vmem:[#allocation2 + $0x44] sm:$0xf] %vm323_vm6, %v4453_v7  ;;  %4120 = vrot.lane.b32.xlu0 %v4100_v60, %s6045_s29  ;;  %v3397_v26 = vunpack.c.l.bf16 %v3377_v36 }
 0x32b   : > { %v3406_v53 = vmul.f32 %v3396_v43, %v7575_v34  ;;  %v4444_v41 = vmul.f32 %v4434_v62, %v7577_v46 }
 0x32d   : > { %v3416_v63 = vpack.c.bf16 %v3406_v53, %v3406_v53  ;;  %v4454_v18 = vpack.c.bf16 %v4444_v41, %v4444_v41 }
 0x32e   : > { %5850 = vrot.lane.b32.xlu1 %v5849_v61, %s6043_s27  ;;  %v3444_v55 = vld [vmem:[#allocation2 + $0x64] sm:$0xf]  ;;  %v3378_v61 = vld [vmem:[#allocation2 + $0xb4] sm:$0xf] }
 0x32f   : > { %3426 = vst.msk [vmem:[#allocation2 + $0x8c] sm:$0xf] %vm323_vm6, %v3416_v63  ;;  %v3464_v27 = vunpack.c.l.bf16 %v3444_v55  ;;  %v4425_v63 = vld [vmem:[#allocation2 + $0x6c] sm:$0xf]  ;;  %v8037_v55 = vrot.slane %v7457_v35, 7 }
 0x330   : > { %4464 = vst.msk [vmem:[#allocation2 + $0x58] sm:$0xf] %vm323_vm6, %v4454_v18  ;;  %v5553_v7 = vld [vmem:[#allocation2 + $0x30] sm:$0xf] }
 0x331   : > { %v5738_v31 = vld [vmem:[#allocation2 + $0x40] sm:$0xf0]  ;;  %v5854_v48 = vpack.i.bf16 %v3464_v27, %v3463_v12  ;;  %v8038_v27 = vrot.slane %v7457_v35, 1 }
 0x332   : > { %v5554_v60 = vor.u32 %v5738_v31, %v5553_v7 }
 0x333   : > { %5855 = vrot.lane.b32.xlu2 %v5854_v48, %s6043_s27 }
 0x334   : > { %5664 = vmatmul.msk.bf16.gmra.mxu3 %vm4709_vm5, %v5554_v60 }
 0x35a   : > { %v4003_v3 = vpop.permute.xlu2 %4002 }
 0x35b   : > { %4026 = vst.msk [vmem:[#allocation2 + $0x7c] sm:$0xf] %vm323_vm6, %v4003_v3 }
 0x362   : > { %v4426_v43 = vld [vmem:[#allocation2 + $0x7c] sm:$0xff]  }
 0x363   : > { %v4046_v48 = vunpack.c.l.bf16 %v4426_v43  ;;  %v4436_v58 = vunpack.c.h.bf16 %v4426_v43 }
 0x372   : > { %v4005_v0 = vpop.permute.xlu0 %4004 }
 0x373   : > { %4027 = vst.msk [vmem:[#allocation2 + $0x90] sm:$0xf] %vm323_vm6, %v4005_v0 }
 0x377   : > { %v7591_v2 = vpop.permute.xlu2 %5835 }
 0x378   : > { %v7594_v19 = vunpack.i.h.bf16 %v7591_v2 }
 0x37a   : > { %v3343_v62 = vrot.slane %v7594_v19, 7  ;;  %v3586_v38 = vrot.slane %v7594_v19, 1  ;;  %v4007_v53 = vpop.permute.xlu0 %4006  ;;  %v4037_v41 = vld [vmem:[#allocation2 + $0x8c] sm:$0xff]  }
 0x37b   : > { %4028 = vst.msk [vmem:[#allocation2 + $0xa4] sm:$0xf] %vm323_vm6, %v4007_v53  ;;  %v4047_v18 = vunpack.c.h.bf16 %v4037_v41  ;;  %v3398_v53 = vunpack.c.l.bf16 %v3378_v61  ;;  %v3466_v43 = vunpack.c.l.bf16 %v4037_v41 }
 0x37c   : > { %v3350_v12 = vsel %vm3348_vm15, %v3343_v62, %v8037_v55  ;;  %v3591_v7 = vsel %vm3589_vm0, %v3586_v38, %v8038_v27  ;;  %v3351_v31 = vsel %vm3348_vm15, %v3342_v37, %v3343_v62  ;;  %v3592_v36 = vsel %vm3589_vm0, %v3585_v33, %v3586_v38  ;;  %v3445_v38 = vld [vmem:[#allocation2 + $0x78] sm:$0xf] }
 0x37d   : > { %v3368_v60 = vpack.c.bf16 %v3350_v12, %v3350_v12  ;;  %v3608_v3 = vpack.c.bf16 %v3591_v7, %v3591_v7  ;;  %v3367_v0 = vpack.c.bf16 %v3351_v31, %v3351_v31  ;;  %v4435_v55 = vunpack.c.l.bf16 %v4425_v63 }
 0x37e   : > { %v3607_v49 = vpack.c.bf16 %v3592_v36, %v3592_v36  ;;  %v5859_v13 = vpack.i.bf16 %v4047_v18, %v4046_v48  ;;  %v3465_v31 = vunpack.c.l.bf16 %v3445_v38 }
 0x37f   : > { %v7615_v27 = vunpack.c.l.bf16 %v3368_v60  ;;  %v7617_v29 = vunpack.c.l.bf16 %v3608_v3  ;;  %v7619_v40 = vunpack.c.l.bf16 %v3367_v0 }
 0x380   : > { %v7621_v37 = vunpack.c.l.bf16 %v3607_v49  ;;  %5860 = vrot.lane.b32.xlu2 %v5859_v13, %s6043_s27  ;;  %v5864_v13 = vpack.i.bf16 %v3466_v43, %v3465_v31 }
 0x381   : > { %v3408_v62 = vmul.f32 %v3398_v53, %v7615_v27  ;;  %v4446_v30 = vmul.f32 %v4436_v58, %v7617_v29  ;;  %v3407_v33 = vmul.f32 %v3397_v26, %v7619_v40  ;;  %v3429_v58 = vpack.c.bf16 %v7450_v5, %v7450_v5  ;;  %v5565_v26 = vld [vmem:[#allocation2 + $0x58] sm:$0xf]  ;;  %v5841_v53 = vpop.permute.xlu2 %5840 }
 0x382   : > { %v4445_v61 = vmul.f32 %v4435_v55, %v7621_v37  ;;  %v3430_v55 = vpack.c.bf16 %v7459_v42, %v7459_v42  ;;  %v5837_v5 = vunpack.i.l.bf16 %v7591_v2  ;;  %v3431_v2 = vpack.c.bf16 %v7420_v59, %v7420_v59 }
 0x383   : > { %v3418_v63 = vpack.c.bf16 %v3408_v62, %v3408_v62  ;;  %v4456_v18 = vpack.c.bf16 %v4446_v30, %v4446_v30  ;;  %v3417_v12 = vpack.c.bf16 %v3407_v33, %v3407_v33  ;;  %v7635_v60 = vunpack.c.l.bf16 %v3429_v58 }
 0x384   : > { %v4455_v7 = vpack.c.bf16 %v4445_v61, %v4445_v61  ;;  %v5842_v33 = vunpack.i.l.bf16 %v5841_v53  ;;  %v5843_v31 = vunpack.i.h.bf16 %v5841_v53 }
 0x385   : > { %3428 = vst.msk [vmem:[#allocation2 + $0xb4] sm:$0xf] %vm323_vm6, %v3418_v63  ;;  %v7643_v63 = vunpack.c.l.bf16 %v3430_v55 }
 0x386   : > { %4466 = vst.msk [vmem:[#allocation2 + $0x80] sm:$0xf] %vm323_vm6, %v4456_v18  ;;  %v4092_v18 = vmul.f32 %v5842_v33, %v7328_v14 }
 0x387   : > { %3427 = vst.msk [vmem:[#allocation2 + $0xa0] sm:$0xf] %vm323_vm6, %v3417_v12  ;;  %v3510_v42 = vmul.f32 %v5837_v5, %v7643_v63  ;;  %v3432_v5 = vpack.c.bf16 %v7301_v44, %v7301_v44 }
 0x388   : > { %4465 = vst.msk [vmem:[#allocation2 + $0x6c] sm:$0xf] %vm323_vm6, %v4455_v7  ;;  %5865 = vrot.lane.b32.xlu2 %v5864_v13, %s6043_s27  ;;  %v4102_v13 = vpack.c.bf16 %v4092_v18, %v4092_v18 }
 0x389   : > { %v3520_v7 = vpack.c.bf16 %v3510_v42, %v3510_v42 }
 0x38d   : > { %v4798_v49 = vpop.f32.mrf.mxu3 }
 0x38f   : > { %v5831_v41 = vpop.permute.xlu1 %5830  ;;  %v5741_v48 = vld [vmem:[#allocation2 + $0x68] sm:$0xf0] }
 0x390   : > { %v5833_v3 = vunpack.i.h.bf16 %v5831_v41  ;;  %v5832_v0 = vunpack.i.l.bf16 %v5831_v41  ;;  %v5566_v36 = vor.u32 %v5741_v48, %v5565_v26  ;;  %v5577_v41 = vld [vmem:[#allocation2 + $0x80] sm:$0xf]  ;;  %v7653_v26 = vunpack.c.l.bf16 %v3431_v2 }
 0x391   : > { %v4038_v48 = vld [vmem:[#allocation2 + $0xa0] sm:$0xff]  }
 0x392   : > { %v3509_v62 = vmul.f32 %v5833_v3, %v7635_v60  ;;  %v4091_v30 = vmul.f32 %v5832_v0, %v7445_v23  ;;  %5665 = vmatmul.msk.bf16.gmra.mxu3 %vm4709_vm5, %v5566_v36  ;;  %v5744_v3 = vld [vmem:[#allocation2 + $0x90] sm:$0xf0]  ;;  %v4093_v0 = vmul.f32 %v5843_v31, %v7546_v52  ;;  %v5856_v31 = vpop.permute.xlu2 %5855 }
 0x393   : > { %v5578_v36 = vor.u32 %v5744_v3, %v5577_v41 }
 0x394   : > { %v3519_v38 = vpack.c.bf16 %v3509_v62, %v3509_v62  ;;  %v4101_v61 = vpack.c.bf16 %v4091_v30, %v4091_v30  ;;  %v5846_v43 = vpop.permute.xlu0 %5845  ;;  %v4048_v62 = vunpack.c.h.bf16 %v4038_v48 }
 0x395   : > { %v5847_v58 = vunpack.i.l.bf16 %v5846_v43 }
 0x396   : > { %4122 = vrot.lane.b32.xlu1 %v4101_v61, %s6045_s29  ;;  %3539 = vrot.lane.b32.xlu0 %v3519_v38, %s6045_s29  ;;  %v4103_v38 = vpack.c.bf16 %v4093_v0, %v4093_v0  ;;  %v5848_v61 = vunpack.i.h.bf16 %v5846_v43  ;;  %v3467_v43 = vunpack.c.l.bf16 %v4038_v48  ;;  %v5858_v0 = vunpack.i.h.bf16 %v5856_v31 }
 0x397   : > { %v3511_v59 = vmul.f32 %v5847_v58, %v7653_v26  ;;  %v3434_v58 = vpack.c.bf16 %v7517_v16, %v7517_v16 }
 0x398   : > { %v4009_v12 = vpop.permute.xlu1 %4008 }
 0x399   : > { %4029 = vst.msk [vmem:[#allocation2 + $0xb8] sm:$0xf] %vm323_vm6, %v4009_v12  ;;  %v3521_v42 = vpack.c.bf16 %v3511_v59, %v3511_v59  ;;  %v7663_v12 = vunpack.c.l.bf16 %v3432_v5  ;;  %v7676_v5 = vunpack.c.l.bf16 %v3434_v58  ;;  %v3436_v58 = vpack.c.bf16 %v7551_v1, %v7551_v1  ;;  %v7703_v1 = vpop.f32.mrf.mxu3 }
 0x39b   : > { %v3514_v16 = vmul.f32 %v5858_v0, %v7676_v5 }
 0x39c   : > { %v4121_v49 = vpop.permute.xlu0 %4120 }
 0x39d   : > { %4150 = vst.msk [vmem:[#allocation2 + $0x4] sm:$0xf] %vm384_vm7, %v4121_v49  ;;  %v5857_v49 = vunpack.i.l.bf16 %v5856_v31 }
 0x39e   : > { %3541 = vrot.lane.b32.xlu1 %v3520_v7, %s6045_s29  ;;  %4124 = vrot.lane.b32.xlu0 %v4102_v13, %s6045_s29  ;;  %v3512_v7 = vmul.f32 %v5848_v61, %v7663_v12  ;;  %v3433_v13 = vpack.c.bf16 %v7299_v20, %v7299_v20 }
 0x3a0   : > { %v4039_v53 = vld [vmem:[#allocation2 + $0xb4] sm:$0xff]   ;;  %v5851_v55 = vpop.permute.xlu1 %5850  ;;  %v3522_v3 = vpack.c.bf16 %v3512_v7, %v3512_v7 }
 0x3a1   : > { %v4049_v30 = vunpack.c.h.bf16 %v4039_v53  ;;  %v5852_v18 = vunpack.i.l.bf16 %v5851_v55  ;;  %v3468_v2 = vunpack.c.l.bf16 %v4039_v53  ;;  %v5853_v59 = vunpack.i.h.bf16 %v5851_v55  ;;  %v5589_v53 = vld [vmem:[#allocation2 + $0xa8] sm:$0xf] }
 0x3a2   : > { %5666 = vmatmul.msk.bf16.gmra.mxu3 %vm4709_vm5, %v5578_v36 }
 0x3a3   : > { %v5869_v33 = vpack.i.bf16 %v4049_v30, %v4048_v62  ;;  %v4094_v44 = vmul.f32 %v5852_v18, %v7548_v17  ;;  %v5874_v41 = vpack.i.bf16 %v3468_v2, %v3467_v43  ;;  %v7673_v62 = vunpack.c.l.bf16 %v3433_v13  ;;  %v5747_v30 = vld [vmem:[#allocation2 + $0xb8] sm:$0xf0] }
 0x3a4   : > { %v4095_v48 = vmul.f32 %v5853_v59, %v7577_v46  ;;  %v5590_v55 = vor.u32 %v5747_v30, %v5589_v53  ;;  %v3435_v43 = vpack.c.bf16 %v7515_v15, %v7515_v15 }
 0x3a5   : > { %5870 = vrot.lane.b32.xlu2 %v5869_v33, %s6043_s27  ;;  %v4104_v36 = vpack.c.bf16 %v4094_v44, %v4094_v44  ;;  %v3513_v20 = vmul.f32 %v5857_v49, %v7673_v62 }
 0x3a6   : > { %4126 = vrot.lane.b32.xlu1 %v4103_v38, %s6045_s29  ;;  %3543 = vrot.lane.b32.xlu0 %v3521_v42, %s6045_s29  ;;  %v3524_v38 = vpack.c.bf16 %v3514_v16, %v3514_v16  ;;  %v4105_v61 = vpack.c.bf16 %v4095_v48, %v4095_v48 }
 0x3a7   : > { %v3523_v33 = vpack.c.bf16 %v3513_v20, %v3513_v20 }
 0x3ad   : > { %5875 = vrot.lane.b32.xlu2 %v5874_v41, %s6043_s27  ;;  %v7695_v41 = vunpack.c.l.bf16 %v3435_v43 }
 0x3ae   : > { %3545 = vrot.lane.b32.xlu1 %v3522_v3, %s6045_s29  ;;  %4128 = vrot.lane.b32.xlu0 %v4104_v36, %s6045_s29  ;;  %v7697_v3 = vunpack.c.l.bf16 %v3436_v58 }
 0x3b2   : > { %5667 = vmatmul.msk.bf16.gmra.mxu3 %vm4709_vm5, %v5590_v55 }
 0x3b5   : > { %3547 = vrot.lane.b32.xlu2 %v3523_v33, %s6045_s29 }
 0x3b6   : > { %4130 = vrot.lane.b32.xlu1 %v4105_v61, %s6045_s29  ;;  %3549 = vrot.lane.b32.xlu0 %v3524_v38, %s6045_s29 }
 0x3b7   : > { %v7707_v38 = vpop.f32.mrf.mxu3 }
 0x3da   : > { %v5861_v42 = vpop.permute.xlu2 %5860 }
 0x3db   : > { %v5863_v18 = vunpack.i.h.bf16 %v5861_v42  ;;  %v5862_v2 = vunpack.i.l.bf16 %v5861_v42 }
 0x3dd   : > { %v4097_v7 = vmul.f32 %v5863_v18, %v7617_v29  ;;  %v4096_v31 = vmul.f32 %v5862_v2, %v7621_v37  ;;  %v3437_v18 = vpack.c.bf16 %v7594_v19, %v7594_v19  ;;  %v3438_v2 = vpack.c.bf16 %v7457_v35, %v7457_v35 }
 0x3df   : > { %v4107_v44 = vpack.c.bf16 %v4097_v7, %v4097_v7  ;;  %v4106_v13 = vpack.c.bf16 %v4096_v31, %v4096_v31  ;;  %v7715_v31 = vunpack.c.l.bf16 %v3437_v18 }
 0x3e1   : > { %4132 = vrot.lane.b32.xlu1 %v4106_v13, %s6045_s29  ;;  %4134 = vrot.lane.b32.xlu2 %v4107_v44, %s6045_s29  ;;  %v7717_v44 = vunpack.c.l.bf16 %v3438_v2 }
 0x3e2   : > { %v5866_v49 = vpop.permute.xlu2 %5865 }
 0x3e3   : > { %v5868_v0 = vunpack.i.h.bf16 %v5866_v49  ;;  %v5867_v59 = vunpack.i.l.bf16 %v5866_v49 }
 0x3e5   : > { %v3516_v36 = vmul.f32 %v5868_v0, %v7697_v3  ;;  %v3515_v53 = vmul.f32 %v5867_v59, %v7695_v41 }
 0x3e7   : > { %v3526_v30 = vpack.c.bf16 %v3516_v36, %v3516_v36  ;;  %v3525_v15 = vpack.c.bf16 %v3515_v53, %v3515_v53  ;;  %v7723_v36 = vpop.f32.mrf.mxu3 }
 0x3e9   : > { %3551 = vrot.lane.b32.xlu1 %v3525_v15, %s6045_s29  ;;  %3553 = vrot.lane.b32.xlu2 %v3526_v30, %s6045_s29 }
 0x3ff   : > { %v5871_v20 = vpop.permute.xlu2 %5870 }
 0x400   : > { %v5873_v16 = vunpack.i.h.bf16 %v5871_v20  ;;  %v5872_v48 = vunpack.i.l.bf16 %v5871_v20 }
 0x402   : > { %v4099_v55 = vmul.f32 %v5873_v16, %v7502_v47  ;;  %v4098_v33 = vmul.f32 %v5872_v48, %v7489_v10 }
 0x404   : > { %v4109_v61 = vpack.c.bf16 %v4099_v55, %v4099_v55  ;;  %v4108_v42 = vpack.c.bf16 %v4098_v33, %v4098_v33 }
 0x406   : > { %4136 = vrot.lane.b32.xlu1 %v4108_v42, %s6045_s29  ;;  %4138 = vrot.lane.b32.xlu2 %v4109_v61, %s6045_s29 }
 0x407   : > { %v5876_v7 = vpop.permute.xlu2 %5875 }
 0x408   : > { %v5878_v13 = vunpack.i.h.bf16 %v5876_v7  ;;  %v5877_v43 = vunpack.i.l.bf16 %v5876_v7  ;;  %v4123_v58 = vpop.permute.xlu1 %4122  ;;  %v3540_v49 = vpop.permute.xlu0 %3539 }
 0x409   : > { %4151 = vst.msk [vmem:[#allocation2 + $0x18] sm:$0xf] %vm384_vm7, %v4123_v58 }
 0x40a   : > { %v3518_v19 = vmul.f32 %v5878_v13, %v7717_v44  ;;  %v3517_v0 = vmul.f32 %v5877_v43, %v7715_v31  ;;  %3569 = vst.msk [vmem:[#allocation2] sm:$0xf] %vm384_vm7, %v3540_v49 }
 0x40c   : > { %v3528_v35 = vpack.c.bf16 %v3518_v19, %v3518_v19  ;;  %v3527_v59 = vpack.c.bf16 %v3517_v0, %v3517_v0 }
 0x40e   : > { %3555 = vrot.lane.b32.xlu1 %v3527_v59, %s6045_s29  ;;  %3557 = vrot.lane.b32.xlu2 %v3528_v35, %s6045_s29 }
 0x40f   : > { %v3548_v53 = vpop.permute.xlu2 %3547 }
 0x410   : > { %3573 = vst.msk [vmem:[#allocation2 + $0x50] sm:$0xf] %vm384_vm7, %v3548_v53  ;;  %v3542_v30 = vpop.permute.xlu1 %3541  ;;  %v4125_v15 = vpop.permute.xlu0 %4124 }
 0x411   : > { %3570 = vst.msk [vmem:[#allocation2 + $0x14] sm:$0xf] %vm384_vm7, %v3542_v30  ;;  %v4160_v16 = vld [vmem:[#allocation2] sm:$0xff]  }
 0x412   : > { %4152 = vst.msk [vmem:[#allocation2 + $0x2c] sm:$0xf] %vm384_vm7, %v4125_v15  ;;  %v4170_v61 = vunpack.c.h.bf16 %v4160_v16  ;;  %v3630_v58 = vunpack.c.l.bf16 %v4160_v16 }
 0x415   : > { %v7730_v20 = vpop.f32.mrf.mxu3 }
 0x418   : > { %v4161_v48 = vld [vmem:[#allocation2 + $0x14] sm:$0xff]   ;;  %v4127_v55 = vpop.permute.xlu1 %4126  ;;  %v3544_v33 = vpop.permute.xlu0 %3543 }
 0x419   : > { %v4171_v42 = vunpack.c.h.bf16 %v4161_v48  ;;  %4153 = vst.msk [vmem:[#allocation2 + $0x40] sm:$0xf] %vm384_vm7, %v4127_v55  ;;  %v3631_v7 = vunpack.c.l.bf16 %v4161_v48 }
 0x41a   : > { %3571 = vst.msk [vmem:[#allocation2 + $0x28] sm:$0xf] %vm384_vm7, %v3544_v33 }
 0x41b   : > { %v5879_v18 = vpack.i.bf16 %v4171_v42, %v4170_v61  ;;  %v5884_v49 = vpack.i.bf16 %v3631_v7, %v3630_v58 }
 0x41d   : > { %5880 = vrot.lane.b32.xlu0 %v5879_v18, %s6044_s28  ;;  %v7735_v2 = vpop.f32.mrf.mxu3 }
 0x420   : > { %v3546_v13 = vpop.permute.xlu1 %3545  ;;  %v4129_v43 = vpop.permute.xlu0 %4128 }
 0x421   : > { %3572 = vst.msk [vmem:[#allocation2 + $0x3c] sm:$0xf] %vm384_vm7, %v3546_v13  ;;  %v4162_v0 = vld [vmem:[#allocation2 + $0x28] sm:$0xff]  }
 0x422   : > { %4154 = vst.msk [vmem:[#allocation2 + $0x54] sm:$0xf] %vm384_vm7, %v4129_v43  ;;  %v4172_v30 = vunpack.c.h.bf16 %v4162_v0  ;;  %v3632_v61 = vunpack.c.l.bf16 %v4162_v0 }
 0x425   : > { %5885 = vrot.lane.b32.xlu0 %v5884_v49, %s6044_s28  ;;  %v7740_v19 = vpop.f32.mrf.mxu3 }
 0x426   : > { %8039 = vst [vmem:[#allocation9_spill] sm:$0xff] %v7740_v19 }
 0x428   : > { %v4163_v35 = vld [vmem:[#allocation2 + $0x3c] sm:$0xff]   ;;  %v4131_v59 = vpop.permute.xlu1 %4130  ;;  %v3550_v53 = vpop.permute.xlu0 %3549 }
 0x429   : > { %v4173_v15 = vunpack.c.h.bf16 %v4163_v35  ;;  %4155 = vst.msk [vmem:[#allocation2 + $0x68] sm:$0xf] %vm384_vm7, %v4131_v59  ;;  %v3633_v55 = vunpack.c.l.bf16 %v4163_v35  ;;  %v4164_v33 = vld [vmem:[#allocation2 + $0x50] sm:$0xff]  }
 0x42a   : > { %3574 = vst.msk [vmem:[#allocation2 + $0x64] sm:$0xf] %vm384_vm7, %v3550_v53  ;;  %v4174_v18 = vunpack.c.h.bf16 %v4164_v33  ;;  %v3634_v13 = vunpack.c.l.bf16 %v4164_v33 }
 0x42b   : > { %v5889_v16 = vpack.i.bf16 %v4173_v15, %v4172_v30  ;;  %v5894_v58 = vpack.i.bf16 %v3633_v55, %v3632_v61 }
 0x42d   : > { %5890 = vrot.lane.b32.xlu0 %v5889_v16, %s6044_s28  ;;  %v7745_v48 = vpop.f32.mrf.mxu3 }
 0x431   : > { %v4165_v42 = vld [vmem:[#allocation2 + $0x64] sm:$0xff]  }
 0x432   : > { %v4175_v7 = vunpack.c.h.bf16 %v4165_v42  ;;  %v3635_v43 = vunpack.c.l.bf16 %v4165_v42 }
 0x434   : > { %v5899_v49 = vpack.i.bf16 %v4175_v7, %v4174_v18  ;;  %v5904_v19 = vpack.i.bf16 %v3635_v43, %v3634_v13 }
 0x435   : > { %5895 = vrot.lane.b32.xlu0 %v5894_v58, %s6044_s28  ;;  %v7748_v59 = vpop.f32.mrf.mxu3 }
 0x436   : > { %5900 = vrot.lane.b32.xlu1 %v5899_v49, %s6044_s28  ;;  %5905 = vrot.lane.b32.xlu2 %v5904_v19, %s6044_s28 }
 0x43b   : > { %v4135_v53 = vpop.permute.xlu2 %4134 }
 0x43c   : > { %4157 = vst.msk [vmem:[#allocation2 + $0x90] sm:$0xf] %vm384_vm7, %v4135_v53 }
 0x43d   : > { %v4819_v0 = vpop.f32.mrf.mxu3 }
 0x443   : > { %v3554_v35 = vpop.permute.xlu2 %3553 }
 0x444   : > { %3576 = vst.msk [vmem:[#allocation2 + $0x8c] sm:$0xf] %vm384_vm7, %v3554_v35 }
 0x44b   : > { %v4167_v55 = vld [vmem:[#allocation2 + $0x8c] sm:$0xff]  }
 0x44c   : > { %v4177_v19 = vunpack.c.h.bf16 %v4167_v55  ;;  %v3637_v13 = vunpack.c.l.bf16 %v4167_v55 }
 0x453   : > { %v4133_v30 = vpop.permute.xlu1 %4132 }
 0x454   : > { %4156 = vst.msk [vmem:[#allocation2 + $0x7c] sm:$0xf] %vm384_vm7, %v4133_v30 }
 0x45b   : > { %v3552_v15 = vpop.permute.xlu1 %3551 }
 0x45c   : > { %3575 = vst.msk [vmem:[#allocation2 + $0x78] sm:$0xf] %vm384_vm7, %v3552_v15 }
 0x460   : > { %v4139_v16 = vpop.permute.xlu2 %4138 }
 0x461   : > { %4159 = vst.msk [vmem:[#allocation2 + $0xb8] sm:$0xf] %vm384_vm7, %v4139_v16 }
 0x463   : > { %v4166_v33 = vld [vmem:[#allocation2 + $0x78] sm:$0xff]  }
 0x464   : > { %v4176_v61 = vunpack.c.h.bf16 %v4166_v33  ;;  %v3636_v7 = vunpack.c.l.bf16 %v4166_v33 }
 0x466   : > { %v5909_v42 = vpack.i.bf16 %v4177_v19, %v4176_v61  ;;  %v5914_v43 = vpack.i.bf16 %v3637_v13, %v3636_v7 }
 0x468   : > { %5910 = vrot.lane.b32.xlu2 %v5909_v42, %s6044_s28  ;;  %v3558_v18 = vpop.permute.xlu2 %3557 }
 0x469   : > { %3578 = vst.msk [vmem:[#allocation2 + $0xb4] sm:$0xf] %vm384_vm7, %v3558_v18 }
 0x470   : > { %5915 = vrot.lane.b32.xlu2 %v5914_v43, %s6044_s28  ;;  %v4169_v53 = vld [vmem:[#allocation2 + $0xb4] sm:$0xff]  }
 0x471   : > { %v4179_v30 = vunpack.c.h.bf16 %v4169_v53  ;;  %v3639_v42 = vunpack.c.l.bf16 %v4169_v53 }
 0x478   : > { %v4137_v58 = vpop.permute.xlu1 %4136 }
 0x479   : > { %4158 = vst.msk [vmem:[#allocation2 + $0xa4] sm:$0xf] %vm384_vm7, %v4137_v58 }
 0x480   : > { %v3556_v49 = vpop.permute.xlu1 %3555 }
 0x481   : > { %3577 = vst.msk [vmem:[#allocation2 + $0xa0] sm:$0xf] %vm384_vm7, %v3556_v49 }
 0x488   : > { %v4168_v0 = vld [vmem:[#allocation2 + $0xa0] sm:$0xff]  }
 0x489   : > { %v4178_v35 = vunpack.c.h.bf16 %v4168_v0  ;;  %v3638_v61 = vunpack.c.l.bf16 %v4168_v0 }
 0x48b   : > { %v5919_v15 = vpack.i.bf16 %v4179_v30, %v4178_v35  ;;  %v5924_v13 = vpack.i.bf16 %v3639_v42, %v3638_v61 }
 0x48d   : > { %5920 = vrot.lane.b32.xlu2 %v5919_v15, %s6044_s28 }
 0x48f   : > { %v5881_v16 = vpop.permute.xlu0 %5880 }
 0x490   : > { %v5883_v33 = vunpack.i.h.bf16 %v5881_v16  ;;  %v5882_v55 = vunpack.i.l.bf16 %v5881_v16  ;;  %v5906_v19 = vpop.permute.xlu2 %5905 }
 0x491   : > { %v5907_v43 = vunpack.i.l.bf16 %v5906_v19 }
 0x492   : > { %v4221_v18 = vmul.f32 %v5883_v33, %v7443_v4  ;;  %v4220_v7 = vmul.f32 %v5882_v55, %v7493_v25 }
 0x493   : > { %v3684_v0 = vmul.f32 %v5907_v43, %v7546_v52 }
 0x494   : > { %v4231_v58 = vpack.c.bf16 %v4221_v18, %v4221_v18  ;;  %v4230_v49 = vpack.c.bf16 %v4220_v7, %v4220_v7 }
 0x495   : > { %5925 = vrot.lane.b32.xlu2 %v5924_v13, %s6044_s28  ;;  %v3694_v33 = vpack.c.bf16 %v3684_v0, %v3684_v0 }
 0x496   : > { %4252 = vrot.lane.b32.xlu1 %v4231_v58, %s6044_s28  ;;  %4250 = vrot.lane.b32.xlu0 %v4230_v49, %s6044_s28 }
 0x497   : > { %v5886_v35 = vpop.permute.xlu0 %5885 }
 0x498   : > { %v5888_v30 = vunpack.i.h.bf16 %v5886_v35  ;;  %v5887_v15 = vunpack.i.l.bf16 %v5886_v35 }
 0x49a   : > { %v3681_v53 = vmul.f32 %v5888_v30, %v7504_v9  ;;  %v3680_v16 = vmul.f32 %v5887_v15, %v7502_v47 }
 0x49c   : > { %v3691_v61 = vpack.c.bf16 %v3681_v53, %v3681_v53  ;;  %v3690_v55 = vpack.c.bf16 %v3680_v16, %v3680_v16 }
 0x49d   : > { %3718 = vrot.lane.b32.xlu2 %v3694_v33, %s6044_s28 }
 0x49e   : > { %3712 = vrot.lane.b32.xlu1 %v3691_v61, %s6044_s28  ;;  %3710 = vrot.lane.b32.xlu0 %v3690_v55, %s6044_s28 }
 0x49f   : > { %v5891_v42 = vpop.permute.xlu0 %5890 }
 0x4a0   : > { %v5893_v18 = vunpack.i.h.bf16 %v5891_v42  ;;  %v5892_v7 = vunpack.i.l.bf16 %v5891_v42  ;;  %v5908_v42 = vunpack.i.h.bf16 %v5906_v19 }
 0x4a2   : > { %v4223_v52 = vmul.f32 %v5893_v18, %v7542_v39  ;;  %v4222_v13 = vmul.f32 %v5892_v7, %v7326_v11 }
 0x4a4   : > { %v4233_v43 = vpack.c.bf16 %v4223_v52, %v4223_v52  ;;  %v4232_v9 = vpack.c.bf16 %v4222_v13, %v4222_v13 }
 0x4a6   : > { %4256 = vrot.lane.b32.xlu1 %v4233_v43, %s6044_s28  ;;  %4254 = vrot.lane.b32.xlu0 %v4232_v9, %s6044_s28 }
 0x4a7   : > { %v5896_v47 = vpop.permute.xlu0 %5895 }
 0x4a8   : > { %v5898_v58 = vunpack.i.h.bf16 %v5896_v47  ;;  %v5897_v49 = vunpack.i.l.bf16 %v5896_v47  ;;  %v5901_v35 = vpop.permute.xlu1 %5900 }
 0x4a9   : > { %v5903_v16 = vunpack.i.h.bf16 %v5901_v35  ;;  %v5902_v33 = vunpack.i.l.bf16 %v5901_v35 }
 0x4aa   : > { %v3683_v0 = vmul.f32 %v5898_v58, %v7328_v14  ;;  %v3682_v30 = vmul.f32 %v5897_v49, %v7445_v23  ;;  %v3685_v14 = vmul.f32 %v5908_v42, %v7548_v17 }
 0x4ab   : > { %v4225_v61 = vmul.f32 %v5903_v16, %v7575_v34  ;;  %v4224_v55 = vmul.f32 %v5902_v33, %v7544_v51 }
 0x4ac   : > { %v3693_v15 = vpack.c.bf16 %v3683_v0, %v3683_v0  ;;  %v3692_v53 = vpack.c.bf16 %v3682_v30, %v3682_v30  ;;  %v3695_v23 = vpack.c.bf16 %v3685_v14, %v3685_v14 }
 0x4ad   : > { %v4235_v18 = vpack.c.bf16 %v4225_v61, %v4225_v61  ;;  %v4234_v7 = vpack.c.bf16 %v4224_v55, %v4224_v55 }
 0x4ae   : > { %3716 = vrot.lane.b32.xlu1 %v3693_v15, %s6044_s28  ;;  %3714 = vrot.lane.b32.xlu0 %v3692_v53, %s6044_s28 }
 0x4b6   : > { %4260 = vrot.lane.b32.xlu1 %v4235_v18, %s6044_s28  ;;  %4258 = vrot.lane.b32.xlu0 %v4234_v7, %s6044_s28 }
 0x4be   : > { %3720 = vrot.lane.b32.xlu0 %v3695_v23, %s6044_s28 }
 0x4c2   : > { %v5911_v52 = vpop.permute.xlu2 %5910 }
 0x4c3   : > { %v5913_v13 = vunpack.i.h.bf16 %v5911_v52  ;;  %v5912_v43 = vunpack.i.l.bf16 %v5911_v52 }
 0x4c5   : > { %v4227_v9 = vmul.f32 %v5913_v13, %v7615_v27  ;;  %v4226_v47 = vmul.f32 %v5912_v43, %v7619_v40 }
 0x4c7   : > { %v4237_v58 = vpack.c.bf16 %v4227_v9, %v4227_v9  ;;  %v4236_v19 = vpack.c.bf16 %v4226_v47, %v4226_v47 }
 0x4c9   : > { %4262 = vrot.lane.b32.xlu1 %v4236_v19, %s6044_s28  ;;  %4264 = vrot.lane.b32.xlu2 %v4237_v58, %s6044_s28 }
 0x4ca   : > { %v5916_v49 = vpop.permute.xlu2 %5915 }
 0x4cb   : > { %v5918_v35 = vunpack.i.h.bf16 %v5916_v49  ;;  %v5917_v0 = vunpack.i.l.bf16 %v5916_v49 }
 0x4cd   : > { %v3687_v17 = vmul.f32 %v5918_v35, %v7621_v37  ;;  %v3686_v30 = vmul.f32 %v5917_v0, %v7577_v46 }
 0x4cf   : > { %v3697_v15 = vpack.c.bf16 %v3687_v17, %v3687_v17  ;;  %v3696_v53 = vpack.c.bf16 %v3686_v30, %v3686_v30 }
 0x4d1   : > { %3722 = vrot.lane.b32.xlu1 %v3696_v53, %s6044_s28  ;;  %3724 = vrot.lane.b32.xlu2 %v3697_v15, %s6044_s28 }
 0x4e7   : > { %v5921_v16 = vpop.permute.xlu2 %5920 }
 0x4e8   : > { %v5923_v33 = vunpack.i.h.bf16 %v5921_v16  ;;  %v5922_v61 = vunpack.i.l.bf16 %v5921_v16 }
 0x4ea   : > { %v4229_v55 = vmul.f32 %v5923_v33, %v7491_v21  ;;  %v4228_v42 = vmul.f32 %v5922_v61, %v7487_v8 }
 0x4ec   : > { %v4239_v18 = vpack.c.bf16 %v4229_v55, %v4229_v55  ;;  %v4238_v7 = vpack.c.bf16 %v4228_v42, %v4228_v42 }
 0x4ee   : > { %4266 = vrot.lane.b32.xlu1 %v4238_v7, %s6044_s28  ;;  %4268 = vrot.lane.b32.xlu2 %v4239_v18, %s6044_s28 }
 0x4ef   : > { %v5926_v46 = vpop.permute.xlu2 %5925 }
 0x4f0   : > { %v5928_v37 = vunpack.i.h.bf16 %v5926_v46  ;;  %v5927_v14 = vunpack.i.l.bf16 %v5926_v46 }
 0x4f2   : > { %v3689_v23 = vmul.f32 %v5928_v37, %v7489_v10  ;;  %v3688_v52 = vmul.f32 %v5927_v14, %v7617_v29 }
 0x4f4   : > { %v3699_v13 = vpack.c.bf16 %v3689_v23, %v3689_v23  ;;  %v3698_v43 = vpack.c.bf16 %v3688_v52, %v3688_v52 }
 0x4f6   : > { %3726 = vrot.lane.b32.xlu1 %v3698_v43, %s6044_s28  ;;  %3728 = vrot.lane.b32.xlu2 %v3699_v13, %s6044_s28 }
 0x4f7   : > { %v3719_v9 = vpop.permute.xlu2 %3718 }
 0x4f8   : > { %3744 = vst.msk [vmem:[#allocation2 + $0x50] sm:$0xf] %vm788_vm8, %v3719_v9 }
 0x508   : > { %v4253_v47 = vpop.permute.xlu1 %4252  ;;  %v4251_v58 = vpop.permute.xlu0 %4250 }
 0x509   : > { %4281 = vst.msk [vmem:[#allocation2 + $0x18] sm:$0xf] %vm788_vm8, %v4253_v47 }
 0x50a   : > { %4280 = vst.msk [vmem:[#allocation2 + $0x4] sm:$0xf] %vm788_vm8, %v4251_v58 }
 0x510   : > { %v3713_v19 = vpop.permute.xlu1 %3712  ;;  %v3711_v49 = vpop.permute.xlu0 %3710 }
 0x511   : > { %3741 = vst.msk [vmem:[#allocation2 + $0x14] sm:$0xf] %vm788_vm8, %v3713_v19 }
 0x512   : > { %3740 = vst.msk [vmem:[#allocation2] sm:$0xf] %vm788_vm8, %v3711_v49 }
 0x518   : > { %v4291_v29 = vld [vmem:[#allocation2 + $0x14] sm:$0xff]   ;;  %v4257_v10 = vpop.permute.xlu1 %4256  ;;  %v4255_v35 = vpop.permute.xlu0 %4254 }
 0x519   : > { %v4290_v0 = vld [vmem:[#allocation2] sm:$0xff]   ;;  %v4301_v17 = vunpack.c.h.bf16 %v4291_v29  ;;  %4283 = vst.msk [vmem:[#allocation2 + $0x40] sm:$0xf] %vm788_vm8, %v4257_v10  ;;  %v3761_v16 = vunpack.c.l.bf16 %v4291_v29 }
 0x51a   : > { %v4300_v30 = vunpack.c.h.bf16 %v4290_v0  ;;  %4282 = vst.msk [vmem:[#allocation2 + $0x2c] sm:$0xf] %vm788_vm8, %v4255_v35  ;;  %v3760_v53 = vunpack.c.l.bf16 %v4290_v0 }
 0x51c   : > { %v5929_v15 = vpack.i.bf16 %v4301_v17, %v4300_v30  ;;  %v5934_v42 = vpack.i.bf16 %v3761_v16, %v3760_v53 }
 0x51e   : > { %5930 = vrot.lane.b32.xlu0 %v5929_v15, %s6045_s29 }
 0x520   : > { %v3717_v33 = vpop.permute.xlu1 %3716  ;;  %v3715_v61 = vpop.permute.xlu0 %3714 }
 0x521   : > { %3743 = vst.msk [vmem:[#allocation2 + $0x3c] sm:$0xf] %vm788_vm8, %v3717_v33 }
 0x522   : > { %3742 = vst.msk [vmem:[#allocation2 + $0x28] sm:$0xf] %vm788_vm8, %v3715_v61 }
 0x523   : > { %v4265_v55 = vpop.permute.xlu2 %4264 }
 0x524   : > { %4287 = vst.msk [vmem:[#allocation2 + $0x90] sm:$0xf] %vm788_vm8, %v4265_v55 }
 0x526   : > { %5935 = vrot.lane.b32.xlu0 %v5934_v42, %s6045_s29 }
 0x528   : > { %v4293_v18 = vld [vmem:[#allocation2 + $0x3c] sm:$0xff]   ;;  %v4261_v7 = vpop.permute.xlu1 %4260  ;;  %v4259_v46 = vpop.permute.xlu0 %4258 }
 0x529   : > { %v4292_v37 = vld [vmem:[#allocation2 + $0x28] sm:$0xff]   ;;  %v4303_v14 = vunpack.c.h.bf16 %v4293_v18  ;;  %4285 = vst.msk [vmem:[#allocation2 + $0x68] sm:$0xf] %vm788_vm8, %v4261_v7  ;;  %v3763_v9 = vunpack.c.l.bf16 %v4293_v18 }
 0x52a   : > { %v4302_v23 = vunpack.c.h.bf16 %v4292_v37  ;;  %4284 = vst.msk [vmem:[#allocation2 + $0x54] sm:$0xf] %vm788_vm8, %v4259_v46  ;;  %v3762_v43 = vunpack.c.l.bf16 %v4292_v37 }
 0x52b   : > { %v3725_v52 = vpop.permute.xlu2 %3724 }
 0x52c   : > { %v5939_v13 = vpack.i.bf16 %v4303_v14, %v4302_v23  ;;  %3747 = vst.msk [vmem:[#allocation2 + $0x8c] sm:$0xf] %vm788_vm8, %v3725_v52  ;;  %v5944_v58 = vpack.i.bf16 %v3763_v9, %v3762_v43 }
 0x52e   : > { %5940 = vrot.lane.b32.xlu0 %v5939_v13, %s6045_s29 }
 0x530   : > { %v3721_v47 = vpop.permute.xlu0 %3720 }
 0x531   : > { %3745 = vst.msk [vmem:[#allocation2 + $0x64] sm:$0xf] %vm788_vm8, %v3721_v47  ;;  %v4294_v19 = vld [vmem:[#allocation2 + $0x50] sm:$0xff]  }
 0x532   : > { %v4304_v29 = vunpack.c.h.bf16 %v4294_v19  ;;  %v3764_v35 = vunpack.c.l.bf16 %v4294_v19 }
 0x533   : > { %v4297_v33 = vld [vmem:[#allocation2 + $0x8c] sm:$0xff]  }
 0x534   : > { %v4307_v42 = vunpack.c.h.bf16 %v4297_v33  ;;  %v3767_v37 = vunpack.c.l.bf16 %v4297_v33 }
 0x536   : > { %5945 = vrot.lane.b32.xlu0 %v5944_v58, %s6045_s29 }
 0x538   : > { %v4295_v49 = vld [vmem:[#allocation2 + $0x64] sm:$0xff]  }
 0x539   : > { %v4305_v10 = vunpack.c.h.bf16 %v4295_v49  ;;  %v3765_v0 = vunpack.c.l.bf16 %v4295_v49 }
 0x53b   : > { %v5949_v17 = vpack.i.bf16 %v4305_v10, %v4304_v29  ;;  %v4263_v30 = vpop.permute.xlu1 %4262  ;;  %v5954_v15 = vpack.i.bf16 %v3765_v0, %v3764_v35 }
 0x53c   : > { %4286 = vst.msk [vmem:[#allocation2 + $0x7c] sm:$0xf] %vm788_vm8, %v4263_v30 }
 0x53d   : > { %5950 = vrot.lane.b32.xlu1 %v5949_v17, %s6045_s29  ;;  %5955 = vrot.lane.b32.xlu2 %v5954_v15, %s6045_s29 }
 0x543   : > { %v3723_v53 = vpop.permute.xlu1 %3722 }
 0x544   : > { %3746 = vst.msk [vmem:[#allocation2 + $0x78] sm:$0xf] %vm788_vm8, %v3723_v53 }
 0x548   : > { %v4269_v16 = vpop.permute.xlu2 %4268 }
 0x549   : > { %4289 = vst.msk [vmem:[#allocation2 + $0xb8] sm:$0xf] %vm788_vm8, %v4269_v16 }
 0x54b   : > { %v4296_v61 = vld [vmem:[#allocation2 + $0x78] sm:$0xff]  }
 0x54c   : > { %v4306_v55 = vunpack.c.h.bf16 %v4296_v61  ;;  %v3766_v46 = vunpack.c.l.bf16 %v4296_v61 }
 0x54e   : > { %v5959_v18 = vpack.i.bf16 %v4307_v42, %v4306_v55  ;;  %v5964_v14 = vpack.i.bf16 %v3767_v37, %v3766_v46 }
 0x550   : > { %5960 = vrot.lane.b32.xlu2 %v5959_v18, %s6045_s29  ;;  %v3729_v7 = vpop.permute.xlu2 %3728 }
 0x551   : > { %3749 = vst.msk [vmem:[#allocation2 + $0xb4] sm:$0xf] %vm788_vm8, %v3729_v7 }
 0x558   : > { %5965 = vrot.lane.b32.xlu2 %v5964_v14, %s6045_s29  ;;  %v4299_v13 = vld [vmem:[#allocation2 + $0xb4] sm:$0xff]  }
 0x559   : > { %v4309_v47 = vunpack.c.h.bf16 %v4299_v13  ;;  %v3769_v49 = vunpack.c.l.bf16 %v4299_v13  ;;  %v5763_v14 = vld [vmem:[%s8017_s5 + $0x78] sm:$0xff] }
 0x55a   : > { %4757 = vmatpush.bf16.msrb.mxu2 %v5763_v14 }
 0x560   : > { %v4267_v23 = vpop.permute.xlu1 %4266 }
 0x561   : > { %4288 = vst.msk [vmem:[#allocation2 + $0xa4] sm:$0xf] %vm788_vm8, %v4267_v23 }
 0x568   : > { %v3727_v52 = vpop.permute.xlu1 %3726 }
 0x569   : > { %3748 = vst.msk [vmem:[#allocation2 + $0xa0] sm:$0xf] %vm788_vm8, %v3727_v52 }
 0x570   : > { %v4298_v43 = vld [vmem:[#allocation2 + $0xa0] sm:$0xff]  }
 0x571   : > { %v4308_v9 = vunpack.c.h.bf16 %v4298_v43  ;;  %v3768_v19 = vunpack.c.l.bf16 %v4298_v43 }
 0x573   : > { %v5969_v58 = vpack.i.bf16 %v4309_v47, %v4308_v9  ;;  %v5974_v29 = vpack.i.bf16 %v3769_v49, %v3768_v19  ;;  %v5755_v9 = vld [vmem:[%s8017_s5 + $0x38] sm:$0xff] }
 0x574   : > { %4725 = vmatpush.bf16.msrb.mxu1 %v5755_v9 }
 0x575   : > { %5970 = vrot.lane.b32.xlu2 %v5969_v58, %s6045_s29 }
 0x57d   : > { %5975 = vrot.lane.b32.xlu2 %v5974_v29, %s6045_s29 }
 0x590   : > { %v5931_v10 = vpop.permute.xlu0 %5930 }
 0x591   : > { %v5933_v35 = vunpack.i.h.bf16 %v5931_v10  ;;  %v5932_v0 = vunpack.i.l.bf16 %v5931_v10 }
 0x593   : > { %v4351_v17 = vmul.f32 %v5933_v35, %v7663_v12  ;;  %v4350_v30 = vmul.f32 %v5932_v0, %v7653_v26 }
 0x595   : > { %v4361_v15 = vpack.c.bf16 %v4351_v17, %v4351_v17  ;;  %v4360_v53 = vpack.c.bf16 %v4350_v30, %v4350_v30 }
 0x597   : > { %4382 = vrot.lane.b32.xlu1 %v4361_v15, %s6043_s27  ;;  %4380 = vrot.lane.b32.xlu0 %v4360_v53, %s6043_s27  ;;  %v5956_v16 = vpop.permute.xlu2 %5955 }
 0x598   : > { %v5936_v33 = vpop.permute.xlu0 %5935  ;;  %v5957_v61 = vunpack.i.l.bf16 %v5956_v16 }
 0x599   : > { %v5938_v55 = vunpack.i.h.bf16 %v5936_v33  ;;  %v5937_v42 = vunpack.i.l.bf16 %v5936_v33 }
 0x59a   : > { %v3814_v18 = vmul.f32 %v5957_v61, %v7542_v39 }
 0x59b   : > { %v3811_v7 = vmul.f32 %v5938_v55, %v7493_v25  ;;  %v3810_v46 = vmul.f32 %v5937_v42, %v7491_v21  ;;  %v5754_v55 = vld [vmem:[%s8017_s5 + $0x30] sm:$0xff]  ;;  %v5958_v42 = vunpack.i.h.bf16 %v5956_v16 }
 0x59c   : > { %v3824_v12 = vpack.c.bf16 %v3814_v18, %v3814_v18  ;;  %4726 = vmatpush.bf16.msrb.mxu1 %v5754_v55 }
 0x59d   : > { %v3821_v37 = vpack.c.bf16 %v3811_v7, %v3811_v7  ;;  %v3820_v26 = vpack.c.bf16 %v3810_v46, %v3810_v46  ;;  %v5761_v46 = vld [vmem:[%s8017_s5 + $0x68] sm:$0xff] }
 0x59e   : > { %3848 = vrot.lane.b32.xlu2 %v3824_v12, %s6043_s27 }
 0x59f   : > { %3842 = vrot.lane.b32.xlu1 %v3821_v37, %s6043_s27  ;;  %3840 = vrot.lane.b32.xlu0 %v3820_v26, %s6043_s27 }
 0x5a0   : > { %v5941_v23 = vpop.permute.xlu0 %5940 }
 0x5a1   : > { %v5943_v52 = vunpack.i.h.bf16 %v5941_v23  ;;  %v5942_v39 = vunpack.i.l.bf16 %v5941_v23 }
 0x5a3   : > { %v4353_v25 = vmul.f32 %v5943_v52, %v7676_v5  ;;  %v4352_v21 = vmul.f32 %v5942_v39, %v7673_v62 }
 0x5a5   : > { %v4363_v13 = vpack.c.bf16 %v4353_v25, %v4353_v25  ;;  %v4362_v43 = vpack.c.bf16 %v4352_v21, %v4352_v21  ;;  %v5752_v25 = vld [vmem:[%s8017_s5 + $0x20] sm:$0xff]  ;;  %v5759_v21 = vld [vmem:[%s8017_s5 + $0x58] sm:$0xff] }
 0x5a7   : > { %4386 = vrot.lane.b32.xlu1 %v4363_v13, %s6043_s27  ;;  %4384 = vrot.lane.b32.xlu0 %v4362_v43, %s6043_s27 }
 0x5a8   : > { %v5946_v47 = vpop.permute.xlu0 %5945 }
 0x5a9   : > { %v5948_v58 = vunpack.i.h.bf16 %v5946_v47  ;;  %v5947_v19 = vunpack.i.l.bf16 %v5946_v47 }
 0x5aa   : > { %v5961_v49 = vpop.permute.xlu2 %5960 }
 0x5ab   : > { %v3813_v29 = vmul.f32 %v5948_v58, %v7326_v11  ;;  %v3812_v5 = vmul.f32 %v5947_v19, %v7443_v4  ;;  %v5963_v62 = vunpack.i.h.bf16 %v5961_v49  ;;  %v5962_v18 = vunpack.i.l.bf16 %v5961_v49  ;;  %v5758_v49 = vld [vmem:[%s8017_s5 + $0x50] sm:$0xff] }
 0x5ad   : > { %v3823_v10 = vpack.c.bf16 %v3813_v29, %v3813_v29  ;;  %v3822_v35 = vpack.c.bf16 %v3812_v5, %v3812_v5  ;;  %v4357_v0 = vmul.f32 %v5963_v62, %v7717_v44  ;;  %v5762_v44 = vld [vmem:[%s8017_s5 + $0x70] sm:$0xff] }
 0x5ae   : > { %4758 = vmatpush.bf16.msrb.mxu2 %v5762_v44  ;;  %v5750_v29 = vld [vmem:[%s8017_s5 + $0x10] sm:$0xff] }
 0x5af   : > { %v4367_v17 = vpack.c.bf16 %v4357_v0, %v4357_v0  ;;  %3846 = vrot.lane.b32.xlu1 %v3823_v10, %s6043_s27  ;;  %3844 = vrot.lane.b32.xlu0 %v3822_v35, %s6043_s27  ;;  %v5951_v30 = vpop.permute.xlu1 %5950 }
 0x5b0   : > { %v5953_v15 = vunpack.i.h.bf16 %v5951_v30  ;;  %v5952_v53 = vunpack.i.l.bf16 %v5951_v30 }
 0x5b1   : > { %4394 = vrot.lane.b32.xlu2 %v4367_v17, %s6043_s27 }
 0x5b2   : > { %v4355_v33 = vmul.f32 %v5953_v15, %v7697_v3  ;;  %v4354_v11 = vmul.f32 %v5952_v53, %v7695_v41  ;;  %v3815_v41 = vmul.f32 %v5958_v42, %v7544_v51  ;;  %v4356_v3 = vmul.f32 %v5962_v18, %v7715_v31  ;;  %v5966_v7 = vpop.permute.xlu2 %5965  ;;  %4759 = vmatpush.bf16.msrb.mxu2 %v5761_v46  ;;  %v5753_v51 = vld [vmem:[%s8017_s5 + $0x28] sm:$0xff]  ;;  %v5760_v31 = vld [vmem:[%s8017_s5 + $0x60] sm:$0xff] }
 0x5b3   : > { %v5968_v26 = vunpack.i.h.bf16 %v5966_v7  ;;  %v5967_v16 = vunpack.i.l.bf16 %v5966_v7  ;;  %4727 = vmatpush.bf16.msrb.mxu1 %v5753_v51 }
 0x5b4   : > { %v4365_v4 = vpack.c.bf16 %v4355_v33, %v4355_v33  ;;  %v4364_v61 = vpack.c.bf16 %v4354_v11, %v4354_v11  ;;  %v3825_v12 = vpack.c.bf16 %v3815_v41, %v3815_v41  ;;  %v4366_v37 = vpack.c.bf16 %v4356_v3, %v4356_v3 }
 0x5b5   : > { %v3817_v14 = vmul.f32 %v5968_v26, %v7619_v40  ;;  %v3816_v23 = vmul.f32 %v5967_v16, %v7575_v34  ;;  %v5751_v34 = vld [vmem:[%s8017_s5 + $0x18] sm:$0xff] }
 0x5b6   : > { %4760 = vmatpush.bf16.msrb.mxu2 %v5760_v31 }
 0x5b7   : > { %4390 = vrot.lane.b32.xlu1 %v4365_v4, %s6043_s27  ;;  %4388 = vrot.lane.b32.xlu0 %v4364_v61, %s6043_s27  ;;  %v3827_v52 = vpack.c.bf16 %v3817_v14, %v3817_v14  ;;  %v3826_v39 = vpack.c.bf16 %v3816_v23, %v3816_v23 }
 0x5b8   : > { %4728 = vmatpush.bf16.msrb.mxu1 %v5752_v25 }
 0x5ba   : > { %4761 = vmatpush.bf16.msrb.mxu2 %v5759_v21 }
 0x5bc   : > { %4729 = vmatpush.bf16.msrb.mxu1 %v5751_v34 }
 0x5be   : > { %4762 = vmatpush.bf16.msrb.mxu2 %v5758_v49 }
 0x5bf   : > { %4392 = vrot.lane.b32.xlu1 %v4366_v37, %s6043_s27  ;;  %3850 = vrot.lane.b32.xlu0 %v3825_v12, %s6043_s27 }
 0x5c0   : > { %4730 = vmatpush.bf16.msrb.mxu1 %v5750_v29 }
 0x5c7   : > { %3854 = vrot.lane.b32.xlu1 %v3827_v52, %s6043_s27  ;;  %3852 = vrot.lane.b32.xlu0 %v3826_v39, %s6043_s27 }
 0x5cf   : > { %v5971_v40 = vpop.permute.xlu2 %5970 }
 0x5d0   : > { %v5973_v13 = vunpack.i.h.bf16 %v5971_v40  ;;  %v5972_v43 = vunpack.i.l.bf16 %v5971_v40 }
 0x5d2   : > { %v4359_v9 = vmul.f32 %v5973_v13, %v7643_v63  ;;  %v4358_v47 = vmul.f32 %v5972_v43, %v7635_v60  ;;  %v5757_v60 = vld [vmem:[%s8017_s5 + $0x48] sm:$0xff] }
 0x5d3   : > { %v5749_v63 = vld [vmem:[%s8017_s5 + $0x8] sm:$0xff]  ;;  %4763 = vmatpush.bf16.msrb.mxu2 %v5757_v60 }
 0x5d4   : > { %v4369_v58 = vpack.c.bf16 %v4359_v9, %v4359_v9  ;;  %v4368_v19 = vpack.c.bf16 %v4358_v47, %v4358_v47  ;;  %4731 = vmatpush.bf16.msrb.mxu1 %v5749_v63 }
 0x5d6   : > { %4398 = vrot.lane.b32.xlu0 %v4369_v58, %s6043_s27  ;;  %4396 = vrot.lane.b32.xlu2 %v4368_v19, %s6043_s27 }
 0x5d7   : > { %v5976_v5 = vpop.permute.xlu2 %5975 }
 0x5d8   : > { %v5978_v62 = vunpack.i.h.bf16 %v5976_v5  ;;  %v5977_v10 = vunpack.i.l.bf16 %v5976_v5 }
 0x5da   : > { %v3819_v35 = vmul.f32 %v5978_v62, %v7487_v8  ;;  %v3818_v0 = vmul.f32 %v5977_v10, %v7615_v27  ;;  %v5756_v8 = vld [vmem:[%s8017_s5 + $0x40] sm:$0xff] }
 0x5db   : > { %4764 = vmatpush.bf16.msrb.mxu2 %v5756_v8 }
 0x5dc   : > { %v3829_v17 = vpack.c.bf16 %v3819_v35, %v3819_v35  ;;  %v3828_v30 = vpack.c.bf16 %v3818_v0, %v3818_v0 }
 0x5de   : > { %3856 = vrot.lane.b32.xlu1 %v3828_v30, %s6043_s27  ;;  %4829 = vrot.lane.b32.xlu0 %v7156_v24, %s6044_s28  ;;  %v5748_v24 = vld [vmem:[%s8017_s5] sm:$0xff] }
 0x5df   : > { %3858 = vrot.lane.b32.xlu2 %v3829_v17, %s6043_s27  ;;  %4732 = vmatpush.bf16.msrb.mxu1 %v5748_v24 }
 0x5e6   : > { %4831 = vrot.lane.b32.xlu1 %v7223_v57, %s6044_s28  ;;  %4835 = vrot.lane.b32.xlu0 %v7264_v32, %s6044_s28 }
 0x5e7   : > { %4833 = vrot.lane.b32.xlu2 %v7237_v28, %s6044_s28 }
 0x5ee   : > { %4837 = vrot.lane.b32.xlu1 %v7266_v45, %s6044_s28  ;;  %4841 = vrot.lane.b32.xlu0 %v7285_v22, %s6044_s28 }
 0x5ef   : > { %4839 = vrot.lane.b32.xlu2 %v7338_v6, %s6044_s28 }
 0x5f6   : > { %4843 = vrot.lane.b32.xlu1 %v7322_v50, %s6044_s28  ;;  %s5670_s28 = sshll.u32 %s8048_s22, 6 }
 0x5f7   : > { %s7963_s14 = scalar_lea.vmem %s8014_s2, %s5670_s28  ;;  %s7971_s16 = scalar_lea.vmem %s8018_s6, %s5670_s28 }
 0x5f8   : > { %v3849_v57 = vpop.permute.xlu2 %3848 }
 0x5f9   : > { %3874 = vst.msk [vmem:[#allocation2 + $0x50] sm:$0xf] %vm1032_vm9, %v3849_v57 }
 0x600   : > { %v5557_v21 = vld [vmem:[#allocation2 + $0x50] sm:$0xf] }
 0x609   : > { %v4383_v28 = vpop.permute.xlu1 %4382  ;;  %v4381_v32 = vpop.permute.xlu0 %4380 }
 0x60a   : > { %4411 = vst.msk [vmem:[#allocation2 + $0x18] sm:$0xf] %vm1032_vm9, %v4383_v28 }
 0x60b   : > { %4410 = vst.msk [vmem:[#allocation2 + $0x4] sm:$0xf] %vm1032_vm9, %v4381_v32  ;;  %v4395_v45 = vpop.permute.xlu2 %4394 }
 0x60c   : > { %4417 = vst.msk [vmem:[#allocation2 + $0x90] sm:$0xf] %vm1032_vm9, %v4395_v45 }
 0x611   : > { %v3843_v22 = vpop.permute.xlu1 %3842  ;;  %v3841_v6 = vpop.permute.xlu0 %3840  ;;  %v5535_v27 = vld [vmem:[#allocation2 + $0x14] sm:$0xf0] }
 0x612   : > { %3871 = vst.msk [vmem:[#allocation2 + $0x14] sm:$0xf] %vm1032_vm9, %v3843_v22  ;;  %v5733_v15 = vld [vmem:[#allocation2 + $0x4] sm:$0xf] }
 0x613   : > { %3870 = vst.msk [vmem:[#allocation2] sm:$0xf] %vm1032_vm9, %v3841_v6  ;;  %v5538_v50 = vor.u32 %v5733_v15, %v5535_v27  ;;  %v5571_v43 = vld [vmem:[#allocation2 + $0x8c] sm:$0xf0]  ;;  %v4869_v27 = vld [vmem:[%s7963_s14] sm:$0xff] }
 0x615   : > { %4765 = vmatmul.bf16.vlgmr.msrb.gmra.mxu2 %v5538_v50 }
 0x619   : > { %v4387_v53 = vpop.permute.xlu1 %4386  ;;  %v4385_v33 = vpop.permute.xlu0 %4384  ;;  %v5734_v11 = vld [vmem:[#allocation2 + $0x10] sm:$0xf0] }
 0x61a   : > { %4413 = vst.msk [vmem:[#allocation2 + $0x40] sm:$0xf] %vm1032_vm9, %v4387_v53  ;;  %v5533_v4 = vld [vmem:[#allocation2] sm:$0xf] }
 0x61b   : > { %4412 = vst.msk [vmem:[#allocation2 + $0x2c] sm:$0xf] %vm1032_vm9, %v4385_v33  ;;  %v5534_v61 = vor.u32 %v5734_v11, %v5533_v4 }
 0x61d   : > { %4733 = vmatmul.bf16.vlgmr.msrb.gmra.mxu1 %v5534_v61 }
 0x621   : > { %v3847_v44 = vpop.permute.xlu1 %3846  ;;  %v3845_v55 = vpop.permute.xlu0 %3844  ;;  %v5547_v42 = vld [vmem:[#allocation2 + $0x3c] sm:$0xf0] }
 0x622   : > { %3873 = vst.msk [vmem:[#allocation2 + $0x3c] sm:$0xf] %vm1032_vm9, %v3847_v44  ;;  %v5736_v18 = vld [vmem:[#allocation2 + $0x2c] sm:$0xf] }
 0x623   : > { %3872 = vst.msk [vmem:[#allocation2 + $0x28] sm:$0xf] %vm1032_vm9, %v3845_v55  ;;  %v5550_v41 = vor.u32 %v5736_v18, %v5547_v42  ;;  %v4870_v42 = vld [vmem:[%s7963_s14 + $0x8] sm:$0xff] }
 0x625   : > { %4769 = vmatmul.bf16.gmra.mxu2 %v5550_v41 }
 0x629   : > { %v4391_v3 = vpop.permute.xlu1 %4390  ;;  %v4389_v7 = vpop.permute.xlu0 %4388  ;;  %v5737_v46 = vld [vmem:[#allocation2 + $0x38] sm:$0xf0] }
 0x62a   : > { %4415 = vst.msk [vmem:[#allocation2 + $0x68] sm:$0xf] %vm1032_vm9, %v4391_v3  ;;  %v5545_v12 = vld [vmem:[#allocation2 + $0x28] sm:$0xf] }
 0x62b   : > { %4414 = vst.msk [vmem:[#allocation2 + $0x54] sm:$0xf] %vm1032_vm9, %v4389_v7  ;;  %v5546_v37 = vor.u32 %v5737_v46, %v5545_v12 }
 0x62d   : > { %4737 = vmatmul.bf16.gmra.mxu1 %v5546_v37 }
 0x630   : > { %v4397_v26 = vpop.permute.xlu2 %4396 }
 0x631   : > { %4418 = vst.msk [vmem:[#allocation2 + $0xa4] sm:$0xf] %vm1032_vm9, %v4397_v26  ;;  %v4393_v16 = vpop.permute.xlu1 %4392  ;;  %v3851_v51 = vpop.permute.xlu0 %3850  ;;  %v5559_v31 = vld [vmem:[#allocation2 + $0x64] sm:$0xf0] }
 0x632   : > { %4416 = vst.msk [vmem:[#allocation2 + $0x7c] sm:$0xf] %vm1032_vm9, %v4393_v16  ;;  %v5739_v14 = vld [vmem:[#allocation2 + $0x54] sm:$0xf] }
 0x633   : > { %3875 = vst.msk [vmem:[#allocation2 + $0x64] sm:$0xf] %vm1032_vm9, %v3851_v51  ;;  %v5562_v23 = vor.u32 %v5739_v14, %v5559_v31  ;;  %v4871_v16 = vld [vmem:[%s7963_s14 + $0x10] sm:$0xff] }
 0x635   : > { %4774 = vmatmul.bf16.gmra.mxu2 %v5562_v23 }
 0x638   : > { %v5745_v5 = vld [vmem:[#allocation2 + $0xa4] sm:$0xf] }
 0x639   : > { %v3859_v52 = vpop.permute.xlu2 %3858  ;;  %v3855_v39 = vpop.permute.xlu1 %3854  ;;  %v5742_v13 = vld [vmem:[#allocation2 + $0x7c] sm:$0xf] }
 0x63a   : > { %3879 = vst.msk [vmem:[#allocation2 + $0xb4] sm:$0xf] %vm1032_vm9, %v3859_v52  ;;  %v3853_v25 = vpop.permute.xlu0 %3852  ;;  %v5740_v40 = vld [vmem:[#allocation2 + $0x60] sm:$0xf0]  ;;  %v5574_v9 = vor.u32 %v5742_v13, %v5571_v43 }
 0x63b   : > { %3877 = vst.msk [vmem:[#allocation2 + $0x8c] sm:$0xf] %vm1032_vm9, %v3855_v39  ;;  %v5558_v34 = vor.u32 %v5740_v40, %v5557_v21  ;;  %v8040_v39 = vld [vmem:[#allocation3_spill] sm:$0xff] }
 0x63c   : > { %3876 = vst.msk [vmem:[#allocation2 + $0x78] sm:$0xf] %vm1032_vm9, %v3853_v25 }
 0x63d   : > { %4742 = vmatmul.bf16.gmra.mxu1 %v5558_v34  ;;  %v4872_v34 = vld [vmem:[%s7963_s14 + $0x18] sm:$0xff] }
 0x641   : > { %v5746_v63 = vld [vmem:[#allocation2 + $0xb0] sm:$0xf0]  ;;  %v4834_v18 = vpop.permute.xlu2 %4833 }
 0x642   : > { %v5743_v19 = vld [vmem:[#allocation2 + $0x88] sm:$0xf0] }
 0x643   : > { %v5569_v58 = vld [vmem:[#allocation2 + $0x78] sm:$0xf] }
 0x644   : > { %v5570_v49 = vor.u32 %v5743_v19, %v5569_v58  ;;  %v8041_v19 = vld [vmem:[#allocation6_spill] sm:$0xff] }
 0x645   : > { %4779 = vmatmul.bf16.gmra.mxu2 %v5574_v9 }
 0x648   : > { %v4399_v47 = vpop.permute.xlu0 %4398 }
 0x649   : > { %4419 = vst.msk [vmem:[#allocation2 + $0xb8] sm:$0xf] %vm1032_vm9, %v4399_v47 }
 0x64d   : > { %4747 = vmatmul.bf16.gmra.mxu1 %v5570_v49 }
 0x650   : > { %v3857_v29 = vpop.permute.xlu1 %3856  ;;  %v5583_v62 = vld [vmem:[#allocation2 + $0xb4] sm:$0xf0]  ;;  %v4830_v28 = vpop.permute.xlu0 %4829 }
 0x651   : > { %3878 = vst.msk [vmem:[#allocation2 + $0xa0] sm:$0xf] %vm1032_vm9, %v3857_v29  ;;  %v5586_v10 = vor.u32 %v5745_v5, %v5583_v62 }
 0x655   : > { %4784 = vmatmul.bf16.gmra.mxu2 %v5586_v10  ;;  %v4873_v10 = vld [vmem:[%s7963_s14 + $0x20] sm:$0xff] }
 0x658   : > { %v5581_v60 = vld [vmem:[#allocation2 + $0xa0] sm:$0xf]  ;;  %v4832_v50 = vpop.permute.xlu1 %4831  ;;  %v4836_v31 = vpop.permute.xlu0 %4835 }
 0x659   : > { %v5582_v35 = vor.u32 %v5746_v63, %v5581_v60  ;;  %v8042_v60 = vld [vmem:[#allocation9_spill] sm:$0xff] }
 0x65d   : > { %4752 = vmatmul.bf16.gmra.mxu1 %v5582_v35  ;;  %v4840_v35 = vpop.permute.xlu2 %4839 }
 0x660   : > { %v4838_v43 = vpop.permute.xlu1 %4837 }
 0x698   : > { %v4766_v0 = vpop.f32.mrf.mxu2 }
 0x69a   : > { %v4734_v17 = vpop.f32.mrf.mxu1 }
 0x6a0   : > { %v4767_v30 = vpop.f32.mrf.mxu2 }
 0x6a2   : > { %v4735_v8 = vpop.f32.mrf.mxu1 }
 0x6a3   : > { %v4768_v24 = vadd.f32 %v4767_v30, %v4735_v8  ;;  %v8043_v8 = vld [vmem:[#allocation4_spill] sm:$0xff] }
 0x6a5   : > { %v4800_v57 = vadd.f32 %v7703_v1, %v4768_v24 }
 0x6a7   : > { %v4853_v32 = vadd.f32 %v4830_v28, %v4800_v57 }
 0x6a8   : > { %v4770_v45 = vpop.f32.mrf.mxu2 }
 0x6a9   : > { %6019 = vtanh.f32 %v4853_v32 }
 0x6aa   : > { %v4738_v22 = vpop.f32.mrf.mxu1 }
 0x6ab   : > { %v4771_v6 = vadd.f32 %v4770_v45, %v4738_v22  ;;  %v4874_v45 = vld [vmem:[%s7963_s14 + $0x28] sm:$0xff] }
 0x6ad   : > { %v4803_v15 = vadd.f32 %v7707_v38, %v4771_v6  ;;  %v4842_v6 = vpop.permute.xlu0 %4841 }
 0x6af   : > { %v6020_v53 = vpop.eup %6019  ;;  %v4854_v1 = vadd.f32 %v4832_v50, %v4803_v15 }
 0x6b0   : > { %v4877_v33 = vsub.f32 %v6020_v53, %v4869_v27  ;;  %v4772_v11 = vpop.f32.mrf.mxu2 }
 0x6b1   : > { %6021 = vtanh.f32 %v4854_v1  ;;  %v8044_v1 = vld [vmem:[#allocation7_spill] sm:$0xff] }
 0x6b2   : > { %v4885_v4 = vmul.f32 %v4877_v33, %v7347_v54  ;;  %v4740_v61 = vpop.f32.mrf.mxu1 }
 0x6b3   : > { %v4773_v44 = vadd.f32 %v4772_v11, %v4740_v61 }
 0x6b4   : > { %v4893_v55 = vadd.f32 %v4885_v4, %v4869_v27 }
 0x6b5   : > { %v4805_v38 = vadd.f32 %v7723_v36, %v4773_v44  ;;  %v4875_v44 = vld [vmem:[%s7963_s14 + $0x30] sm:$0xff] }
 0x6b6   : > { %4901 = vst.msk [vmem:[%s7971_s16] sm:$0xff] %vm4709_vm5, %v4893_v55 }
 0x6b7   : > { %v6022_v41 = vpop.eup %6021  ;;  %v4855_v3 = vadd.f32 %v4834_v18, %v4805_v38 }
 0x6b8   : > { %v4878_v54 = vsub.f32 %v6022_v41, %v4870_v42  ;;  %v4775_v7 = vpop.f32.mrf.mxu2 }
 0x6b9   : > { %6023 = vtanh.f32 %v4855_v3  ;;  %v8045_v3 = vld [vmem:[#allocation8_spill] sm:$0xff] }
 0x6ba   : > { %v4886_v46 = vmul.f32 %v4878_v54, %v7252_v56  ;;  %v4743_v12 = vpop.f32.mrf.mxu1 }
 0x6bb   : > { %v4776_v37 = vadd.f32 %v4775_v7, %v4743_v12  ;;  %v4876_v12 = vld [vmem:[%s7963_s14 + $0x38] sm:$0xff] }
 0x6bc   : > { %v4894_v26 = vadd.f32 %v4886_v46, %v4870_v42  ;;  %v4844_v42 = vpop.permute.xlu1 %4843 }
 0x6bd   : > { %v4808_v51 = vadd.f32 %v7730_v20, %v4776_v37 }
 0x6be   : > { %4902 = vst.msk [vmem:[%s7971_s16 + $0x8] sm:$0xff] %vm4709_vm5, %v4894_v26 }
 0x6bf   : > { %v6024_v36 = vpop.eup %6023  ;;  %v4856_v14 = vadd.f32 %v4836_v31, %v4808_v51 }
 0x6c0   : > { %v4879_v23 = vsub.f32 %v6024_v36, %v4871_v16  ;;  %v4777_v52 = vpop.f32.mrf.mxu2 }
 0x6c1   : > { %6025 = vtanh.f32 %v4856_v14 }
 0x6c2   : > { %v4887_v25 = vmul.f32 %v4879_v23, %v8040_v39  ;;  %v4745_v21 = vpop.f32.mrf.mxu1 }
 0x6c3   : > { %v4778_v56 = vadd.f32 %v4777_v52, %v4745_v21 }
 0x6c4   : > { %v4895_v40 = vadd.f32 %v4887_v25, %v4871_v16  ;;  %v8046_v16 = vld [vmem:[#allocation5_spill] sm:$0xff] }
 0x6c5   : > { %v4810_v13 = vadd.f32 %v7735_v2, %v4778_v56 }
 0x6c6   : > { %4903 = vst.msk [vmem:[%s7971_s16 + $0x10] sm:$0xff] %vm4709_vm5, %v4895_v40 }
 0x6c7   : > { %v6026_v20 = vpop.eup %6025  ;;  %v4857_v9 = vadd.f32 %v4838_v43, %v4810_v13 }
 0x6c8   : > { %v4880_v47 = vsub.f32 %v6026_v20, %v4872_v34  ;;  %v4780_v58 = vpop.f32.mrf.mxu2 }
 0x6c9   : > { %6027 = vtanh.f32 %v4857_v9 }
 0x6ca   : > { %v4888_v49 = vmul.f32 %v4880_v47, %v8041_v19  ;;  %v4748_v29 = vpop.f32.mrf.mxu1 }
 0x6cb   : > { %v4781_v5 = vadd.f32 %v4780_v58, %v4748_v29 }
 0x6cc   : > { %v4896_v62 = vadd.f32 %v4888_v49, %v4872_v34 }
 0x6cd   : > { %v4813_v63 = vadd.f32 %v8042_v60, %v4781_v5 }
 0x6ce   : > { %4904 = vst.msk [vmem:[%s7971_s16 + $0x18] sm:$0xff] %vm4709_vm5, %v4896_v62 }
 0x6cf   : > { %v6028_v2 = vpop.eup %6027  ;;  %v4858_v0 = vadd.f32 %v4840_v35, %v4813_v63 }
 0x6d0   : > { %v4881_v17 = vsub.f32 %v6028_v2, %v4873_v10  ;;  %v4782_v30 = vpop.f32.mrf.mxu2 }
 0x6d1   : > { %6029 = vtanh.f32 %v4858_v0 }
 0x6d2   : > { %v4889_v24 = vmul.f32 %v4881_v17, %v8043_v8  ;;  %v4750_v57 = vpop.f32.mrf.mxu1 }
 0x6d3   : > { %v4783_v28 = vadd.f32 %v4782_v30, %v4750_v57 }
 0x6d4   : > { %v4897_v32 = vadd.f32 %v4889_v24, %v4873_v10 }
 0x6d5   : > { %v4815_v22 = vadd.f32 %v7745_v48, %v4783_v28 }
 0x6d6   : > { %4905 = vst.msk [vmem:[%s7971_s16 + $0x20] sm:$0xff] %vm4709_vm5, %v4897_v32 }
 0x6d7   : > { %v6030_v27 = vpop.eup %6029  ;;  %v4859_v15 = vadd.f32 %v4842_v6, %v4815_v22 }
 0x6d8   : > { %v4882_v50 = vsub.f32 %v6030_v27, %v4874_v45  ;;  %v4785_v53 = vpop.f32.mrf.mxu2 }
 0x6d9   : > { %6031 = vtanh.f32 %v4859_v15 }
 0x6da   : > { %v4890_v33 = vmul.f32 %v4882_v50, %v8044_v1  ;;  %v4753_v11 = vpop.f32.mrf.mxu1 }
 0x6db   : > { %v4786_v4 = vadd.f32 %v4785_v53, %v4753_v11 }
 0x6dc   : > { %v4898_v61 = vadd.f32 %v4890_v33, %v4874_v45 }
 0x6dd   : > { %v4818_v55 = vadd.f32 %v7748_v59, %v4786_v4 }
 0x6de   : > { %4906 = vst.msk [vmem:[%s7971_s16 + $0x28] sm:$0xff] %vm4709_vm5, %v4898_v61 }
 0x6df   : > { %v6032_v48 = vpop.eup %6031  ;;  %v4860_v38 = vadd.f32 %v4844_v42, %v4818_v55 }
 0x6e0   : > { %v4883_v18 = vsub.f32 %v6032_v48, %v4875_v44  ;;  %v4787_v41 = vpop.f32.mrf.mxu2 }
 0x6e1   : > { %6033 = vtanh.f32 %v4860_v38 }
 0x6e2   : > { %v4891_v54 = vmul.f32 %v4883_v18, %v8045_v3  ;;  %v4755_v7 = vpop.f32.mrf.mxu1 }
 0x6e4   : > { %v4899_v46 = vadd.f32 %v4891_v54, %v4875_v44 }
 0x6e6   : > { %4907 = vst.msk [vmem:[%s7971_s16 + $0x30] sm:$0xff] %vm4709_vm5, %v4899_v46 }
 0x6e7   : > { %v6034_v37 = vpop.eup %6033 }
 0x6e8   : > { %v4884_v26 = vsub.f32 %v6034_v37, %v4876_v12 }
 0x6ea   : > { %v4892_v59 = vmul.f32 %v4884_v26, %v8046_v16 }
 0x6ec   : > { %v4900_v51 = vadd.f32 %v4892_v59, %v4876_v12 }
 0x6ee   : > { %4908 = vst.msk [vmem:[%s7971_s16 + $0x38] sm:$0xff] %vm4709_vm5, %v4900_v51 }
 0x6ef PF: > { %s16_s21 = sadd.s32 1, %s6041_s21  }
 0x6f0   : > { %p13_p4 = scmp.ge.s32.totalorder %s16_s21, 4  }
 0x6f2   :  { %15 = sbr.rel (!%p13_p4) target bundleno = 1 (0x1), region = 87 }

</bundles_post_ra>
